<compile_context>
chip_gen: v7x
topology: tpu7x:2x2x1
jax: 0.10.0
libtpu: 0.0.40
codegen_flags: <defaults>
</compile_context>

<pallas_src>
import math
from functools import partial

import jax
import jax.numpy as jnp
from jax.experimental import pallas as pl
from jax.experimental.pallas import tpu as pltpu

EPS = 1e-5
SUB = 8                               # recurrence slab (one sublane tile)


def _round_up(x, m):
    return ((x + m - 1) // m) * m


def _default_vmem_limit():
    # v5e/v6e have 128 MiB of VMEM per core, v7x only 64 MiB.
    try:
        cap = pltpu.get_tpu_info().vmem_capacity_bytes
    except Exception:
        cap = 64 * 1024 * 1024
    return 40 * 1024 * 1024 if cap <= 64 * 1024 * 1024 else 64 * 1024 * 1024


_VMEM_LIMIT = _default_vmem_limit()


def _sigmoid(x):
    e = jnp.exp(-jnp.abs(x))
    return jnp.where(x >= 0.0, 1.0 / (1.0 + e), e / (1.0 + e))


def _softplus(x):
    return jnp.where(x > 20.0, x, jnp.log1p(jnp.exp(jnp.minimum(x, 20.0))))


def _chunk_len(L):
    """Time-chunk length shared by the conv and the scan (multiple of 8)."""
    return _round_up(L, 8) if L <= 256 else 128


def _di_tile(Di):
    """Channel tile for the conv / scan grids (lane-dim legal divisor of Di)."""
    if Di % 128 != 0:
        return Di
    for t in (512, 384, 256, 128):
        if Di % t == 0:
            return t
    return 128


# ---------------------------- matmul (+ bias) ----------------------------

def _matmul_bias_kernel(x_ref, w_ref, b_ref, o_ref, acc_ref):
    @pl.when(pl.program_id(2) == 0)
    def _():
        acc_ref[...] = jnp.zeros_like(acc_ref)

    acc_ref[...] += jnp.dot(x_ref[...], w_ref[...],
                            preferred_element_type=jnp.float32)

    @pl.when(pl.program_id(2) == pl.num_programs(2) - 1)
    def _():
        o_ref[...] = (acc_ref[...] + b_ref[...]).astype(o_ref.dtype)


def matmul_bias(x, w, b=None, out_dtype=jnp.float32):
    """(M, K) @ (K, N) + b with bf16 MXU operands and an f32 accumulator.

    Tiles use full-extent blocks when a dim is not a tile multiple, so no HBM
    zero-padding copies are materialized for small N / K (dt_proj, head, ...)."""
    M, K = x.shape
    N = w.shape[1]
    if M <= 512:
        tm, Mp = M, M
    else:
        tm = 512
        Mp = _round_up(M, tm)
    if K % 128 == 0 and K > 256:
        tk = 256 if K % 256 == 0 else 128
    else:
        tk = K
    if N % 128 == 0 and N > 256:
        tn = 256 if N % 256 == 0 else 128
    else:
        tn = N

    xp = x.astype(jnp.bfloat16)
    if Mp != M:
        xp = jnp.pad(xp, ((0, Mp - M), (0, 0)))
    wp = w.astype(jnp.bfloat16)
    bp = (jnp.zeros((1, N), jnp.float32) if b is None
          else b.reshape(1, N).astype(jnp.float32))

    out = pl.pallas_call(
        _matmul_bias_kernel,
        grid=(Mp // tm, N // tn, K // tk),
        in_specs=[
            pl.BlockSpec((tm, tk), lambda i, j, k: (i, k)),
            pl.BlockSpec((tk, tn), lambda i, j, k: (k, j)),
            pl.BlockSpec((1, tn), lambda i, j, k: (0, j)),
        ],
        out_specs=pl.BlockSpec((tm, tn), lambda i, j, k: (i, j)),
        out_shape=jax.ShapeDtypeStruct((Mp, N), out_dtype),
        scratch_shapes=[pltpu.VMEM((tm, tn), jnp.float32)],
        compiler_params=pltpu.CompilerParams(
            dimension_semantics=("parallel", "parallel", "arbitrary"),
            vmem_limit_bytes=_VMEM_LIMIT),
    )(xp, wp, bp)
    return out if Mp == M else out[:M]


# ------------------------- fused add + RMSNorm -------------------------

def _add_rmsnorm_kernel(h_ref, r_ref, w_ref, o_ref, res_ref):
    res = h_ref[...] + r_ref[...]
    var = jnp.mean(res * res, axis=-1, keepdims=True)
    o_ref[...] = (res * jax.lax.rsqrt(var + EPS) * w_ref[...]).astype(o_ref.dtype)
    res_ref[...] = res


def _rmsnorm_kernel(h_ref, w_ref, o_ref, res_ref):
    res = h_ref[...]
    var = jnp.mean(res * res, axis=-1, keepdims=True)
    o_ref[...] = (res * jax.lax.rsqrt(var + EPS) * w_ref[...]).astype(o_ref.dtype)
    res_ref[...] = res


def add_rmsnorm(hidden, residual, weight):
    """Fused residual add + RMSNorm (mamba rms_norm_fn, prenorm).

    Returns (normed [bf16, feeds the next matmul], new_residual [f32])."""
    # TODO(synk): for embed_dim < 128 the stores are lane-sparse masked vst;
    # repack 4 rows per 128-lane row if such a config is ever deployed.
    M, D = hidden.shape
    if M <= 1024:
        tm, Mp = M, M
    else:
        tm = 512
        Mp = _round_up(M, tm)
    args = [hidden.astype(jnp.float32)]
    has_res = residual is not None
    if has_res:
        args.append(residual.astype(jnp.float32))
    if Mp != M:
        args = [jnp.pad(a, ((0, Mp - M), (0, 0))) for a in args]
    args.append(weight.reshape(1, D).astype(jnp.float32))

    row_spec = pl.BlockSpec((tm, D), lambda i: (i, 0))
    in_specs = [row_spec] * (2 if has_res else 1) + \
               [pl.BlockSpec((1, D), lambda i: (0, 0))]
    normed, res = pl.pallas_call(
        _add_rmsnorm_kernel if has_res else _rmsnorm_kernel,
        grid=(Mp // tm,),
        in_specs=in_specs,
        out_specs=(row_spec, row_spec),
        out_shape=(jax.ShapeDtypeStruct((Mp, D), jnp.bfloat16),
                   jax.ShapeDtypeStruct((Mp, D), jnp.float32)),
        compiler_params=pltpu.CompilerParams(
            dimension_semantics=("parallel",),
            vmem_limit_bytes=_VMEM_LIMIT),
    )(*args)
    if Mp != M:
        normed, res = normed[:M], res[:M]
    return normed, res


# ---------------- depthwise causal conv1d + SiLU (chunked) ----------------

def _causal_conv_silu_kernel(x_ref, w_ref, b_ref, o_ref, xe_sc, carry_sc,
                             *, TC, d_conv, L, reverse):
    # Depthwise cross-correlation (matches PyTorch Conv1d tap order): weight
    # row k multiplies x[t - (d_conv-1) + k]; reverse == the flipped-sequence
    # branch of bimamba expressed in original time order (anti-causal taps).
    c = pl.program_id(2)
    NC = pl.num_programs(2)
    HALO = 8

    @pl.when(c == 0)
    def _():
        carry_sc[...] = jnp.zeros_like(carry_sc)   # zero pad beyond seq edge

    x_cur = x_ref[0].astype(jnp.float32)           # (TC, tdi)
    if not reverse:
        xe_sc[0:HALO, :] = carry_sc[...]
        xe_sc[HALO:HALO + TC, :] = x_cur
        base = HALO - (d_conv - 1)
    else:
        xe_sc[0:TC, :] = x_cur
        xe_sc[TC:TC + HALO, :] = carry_sc[...]
        base = 0

    acc = b_ref[...]                               # (1, tdi) broadcasts
    # TODO(synk): replace the sublane-unaligned tap slices with pltpu.roll
    # shifts (XLU) once this kernel shows up in profiles.
    for k in range(d_conv):
        wk = (d_conv - 1 - k) if reverse else k
        acc = acc + xe_sc[base + k:base + k + TC, :] * w_ref[wk:wk + 1, :]

    # Zero the padded tail rows so downstream projections (x_proj / dt_proj)
    # produce exact zeros there -> the backward scan can safely start in pad.
    chunk_t = (NC - 1 - c) if reverse else c
    row = jax.lax.broadcasted_iota(jnp.int32, (TC, 1), 0)
    valid = (chunk_t * TC + row) < L
    y = acc * _sigmoid(acc)
    o_ref[0] = jnp.where(valid, y, 0.0).astype(o_ref.dtype)

    # halo carry for the next chunk in processing order
    if not reverse:
        carry_sc[...] = x_cur[TC - HALO:TC, :]
    else:
        carry_sc[...] = x_cur[0:HALO, :]


def causal_conv_silu(x, w, b, *, L, TC, reverse):
    """Depthwise causal conv1d + SiLU, time-chunked with a VMEM halo carry.
    x: (B, Lp, Di) bf16 (zero padded to Lp); returns (B, Lp, Di) bf16."""
    Bb, Lp, Di = x.shape
    d_conv = w.shape[0]
    NC = Lp // TC
    tdi = _di_tile(Di)
    cmap = (lambda c: NC - 1 - c) if reverse else (lambda c: c)
    return pl.pallas_call(
        partial(_causal_conv_silu_kernel, TC=TC, d_conv=d_conv, L=L,
                reverse=reverse),
        grid=(Bb, Di // tdi, NC),
        in_specs=[
            pl.BlockSpec((1, TC, tdi), lambda bb, d, c: (bb, cmap(c), d)),
            pl.BlockSpec((d_conv, tdi), lambda bb, d, c: (0, d)),
            pl.BlockSpec((1, tdi), lambda bb, d, c: (0, d)),
        ],
        out_specs=pl.BlockSpec((1, TC, tdi), lambda bb, d, c: (bb, cmap(c), d)),
        out_shape=jax.ShapeDtypeStruct((Bb, Lp, Di), jnp.bfloat16),
        scratch_shapes=[
            pltpu.VMEM((TC + 8, tdi), jnp.float32),   # halo-extended window
            pltpu.VMEM((8, tdi), jnp.float32),        # halo carry
        ],
        compiler_params=pltpu.CompilerParams(
            dimension_semantics=("parallel", "parallel", "arbitrary"),
            vmem_limit_bytes=_VMEM_LIMIT),
    )(x, w.astype(jnp.float32), b.reshape(1, Di).astype(jnp.float32))


# ------------------------- selective state-space scan -------------------------

def _selective_scan_kernel(u_ref, dt_ref, z_ref, B_ref, C_ref, At_ref, D_ref,
                           dtb_ref, o_ref, h_sc, dlt_sc, y_sc,
                           *, TC, Ds, reverse):
    c = pl.program_id(2)

    @pl.when(c == 0)
    def _():
        # TODO(synk): when a carried inference cache (EndoMamba recurrent mode)
        # is threaded through, seed h from it here and gate pad timesteps.
        h_sc[...] = jnp.zeros_like(h_sc)

    At = At_ref[...]                                   # (Ds, tdi), negative
    u = u_ref[0].astype(jnp.float32)                   # (TC, tdi)
    z = z_ref[0].astype(jnp.float32)

    # Chunk-batched prologue: softplus over the whole chunk (EUP).
    dlt_sc[...] = _softplus(dt_ref[0].astype(jnp.float32) + dtb_ref[...])

    nslab = TC // SUB

    # Sequential recurrence over SUB-step slabs.  Only h = dA*h + dBu is on
    # the carried chain; the exp / outer products / C-reduce have no carry
    # dependence and pipeline ahead of it inside the unrolled slab.
    # TODO(synk): a fully chunk-vectorized dA/dBu prologue into (TC,Ds,tdi)
    # scratch would shorten the chain further at the cost of 3D relayouts.
    def slab_body(si, h):
        ns = (nslab - 1 - si) if reverse else si       # time-slab index
        t0 = pl.multiple_of(ns * SUB, SUB)
        r0 = pl.multiple_of(ns * Ds, Ds)
        dlt_s = dlt_sc[pl.ds(t0, SUB), :]                              # (SUB, tdi)
        du_s = dlt_s * u_ref[0, pl.ds(t0, SUB), :].astype(jnp.float32)
        B_sT = B_ref[0, pl.ds(r0, Ds), :].astype(jnp.float32)          # (Ds, SUB)
        C_sT = C_ref[0, pl.ds(r0, Ds), :].astype(jnp.float32)          # (Ds, SUB)
        rows = [None] * SUB
        for k in range(SUB):
            kk = (SUB - 1 - k) if reverse else k       # in-slab time order
            dA = jnp.exp(At * dlt_s[kk:kk + 1, :])                     # (Ds, tdi)
            dBu = B_sT[:, kk:kk + 1] * du_s[kk:kk + 1, :]              # outer prod
            h = dA * h + dBu
            rows[kk] = jnp.sum(C_sT[:, kk:kk + 1] * h, axis=0, keepdims=True)
        y_sc[pl.ds(t0, SUB), :] = jnp.concatenate(rows, axis=0)
        return h

    h_sc[...] = jax.lax.fori_loop(0, nslab, slab_body, h_sc[...])

    # Chunk-batched epilogue: D skip + SiLU(z) gate, one lane-dense store.
    o_ref[0] = ((y_sc[...] + u * D_ref[...]) *
                (z * _sigmoid(z))).astype(o_ref.dtype)


def _slab_major(x):
    """(B, Lp, Ds) -> (B, (Lp//SUB)*Ds, SUB): per-slab transpose so the scan
    reads lane-dense (Ds, SUB) tiles with Ds on the sublane axis and never
    relayouts B/C inside the serial loop."""
    Bb, Lp, Ds = x.shape
    return x.reshape(Bb, Lp // SUB, SUB, Ds).transpose(0, 1, 3, 2).reshape(
        Bb, (Lp // SUB) * Ds, SUB)


def selective_scan(u, dt, z, Bm, Cm, A_T, D, dt_bias, *, TC, reverse):
    """Sequential selective-SSM scan + SiLU(z) gating.

    u, dt, z: (B, Lp, Di) bf16; Bm, Cm: (B, Lp, Ds) bf16; A_T: (Ds, Di) f32.
    Grid: (batch, channel-block, time-chunk) = (parallel, parallel, arbitrary)
    with the (Ds, tdi) state carried in VMEM scratch.  `reverse=True` runs the
    recurrence backwards in time (bimamba branch) without any HBM flips."""
    Bb, Lp, Di = u.shape
    Ds = A_T.shape[0]
    NC = Lp // TC
    tdi = _di_tile(Di)
    bc_rows = (TC // SUB) * Ds
    cmap = (lambda c: NC - 1 - c) if reverse else (lambda c: c)

    tok_spec = pl.BlockSpec((1, TC, tdi), lambda b, d, c: (b, cmap(c), d))
    bc_spec = pl.BlockSpec((1, bc_rows, SUB), lambda b, d, c: (b, cmap(c), 0))
    vec_spec = pl.BlockSpec((1, tdi), lambda b, d, c: (0, d))

    # TODO(synk): pipeline_mode=pl.Buffered(3) on the streamed inputs would hide
    # the next chunk's DMA under the long serial compute at ~zero VMEM cost.
    return pl.pallas_call(
        partial(_selective_scan_kernel, TC=TC, Ds=Ds, reverse=reverse),
        grid=(Bb, Di // tdi, NC),
        in_specs=[
            tok_spec,                                            # u
            tok_spec,                                            # dt
            tok_spec,                                            # z
            bc_spec,                                             # B (slab-major)
            bc_spec,                                             # C (slab-major)
            pl.BlockSpec((Ds, tdi), lambda b, d, c: (0, d)),     # A^T
            vec_spec,                                            # D
            vec_spec,                                            # dt bias
        ],
        out_specs=tok_spec,
        out_shape=jax.ShapeDtypeStruct((Bb, Lp, Di), jnp.bfloat16),
        scratch_shapes=[
            pltpu.VMEM((Ds, tdi), jnp.float32),    # recurrent state carry
            pltpu.VMEM((TC, tdi), jnp.float32),    # softplus(dt + bias)
            pltpu.VMEM((TC, tdi), jnp.float32),    # y accumulator
        ],
        compiler_params=pltpu.CompilerParams(
            dimension_semantics=("parallel", "parallel", "arbitrary"),
            vmem_limit_bytes=_VMEM_LIMIT),
    )(u, dt, z, _slab_major(Bm), _slab_major(Cm),
      A_T.astype(jnp.float32),
      D.reshape(1, Di).astype(jnp.float32),
      dt_bias.reshape(1, Di).astype(jnp.float32))


# ---------------------------- token mean ----------------------------

def _token_mean_kernel(x_ref, o_ref):
    o_ref[...] = jnp.mean(x_ref[...].astype(jnp.float32), axis=1).astype(o_ref.dtype)


def token_mean(x):
    M, N, D = x.shape
    if M <= 512:
        tm, Mp = M, M
    else:
        tm = 256
        Mp = _round_up(M, tm)
    xp = x if Mp == M else jnp.pad(x, ((0, Mp - M), (0, 0), (0, 0)))
    out = pl.pallas_call(
        _token_mean_kernel,
        grid=(Mp // tm,),
        in_specs=[pl.BlockSpec((tm, N, D), lambda i: (i, 0, 0))],
        out_specs=pl.BlockSpec((tm, D), lambda i: (i, 0)),
        out_shape=jax.ShapeDtypeStruct((Mp, D), jnp.bfloat16),
        compiler_params=pltpu.CompilerParams(
            dimension_semantics=("parallel",),
            vmem_limit_bytes=_VMEM_LIMIT),
    )(xp)
    return out if Mp == M else out[:M]


# ------------------------- model glue (plain JAX) -------------------------

def sinusoidal_pe(T, d_model):
    pos = jnp.arange(T, dtype=jnp.float32)[:, None]
    i = jnp.arange(0, d_model, 2, dtype=jnp.float32)
    div = jnp.exp(-jnp.log(10000.0) * i / d_model)
    pe = jnp.zeros((T, d_model), jnp.float32)
    pe = pe.at[:, 0::2].set(jnp.sin(pos * div))
    pe = pe.at[:, 1::2].set(jnp.cos(pos * div))
    return pe


def mamba_mixer(xn, p, bimamba):
    """Mamba mixer (bidirectional if bimamba=True).  xn: (B, L, d_model) bf16."""
    Bb, L, Dm = xn.shape
    Di = p['in_proj_wT'].shape[1] // 2
    xz = matmul_bias(xn.reshape(Bb * L, Dm), p['in_proj_wT'],
                     out_dtype=jnp.bfloat16).reshape(Bb, L, 2 * Di)
    xm, z = xz[..., :Di], xz[..., Di:]

    TC = _chunk_len(L)
    Lp = _round_up(L, TC)
    if Lp != L:
        pad3 = ((0, 0), (0, Lp - L), (0, 0))
        xm, z = jnp.pad(xm, pad3), jnp.pad(z, pad3)

    def one_dir(sfx, reverse):
        xc = causal_conv_silu(xm, p['conv_w' + sfx], p['conv_b' + sfx],
                              L=L, TC=TC, reverse=reverse)      # (B, Lp, Di) bf16
        x_dbl = matmul_bias(xc.reshape(Bb * Lp, Di), p['x_proj_wT' + sfx],
                            out_dtype=jnp.bfloat16)
        dt_rank = p['dt_proj_wT' + sfx].shape[0]
        Ds = (x_dbl.shape[1] - dt_rank) // 2
        # TODO(synk): dt_rank is tiny; fold the dt projection into the scan
        # prologue as a VPU broadcast-multiply instead of an MXU matmul.
        dt = matmul_bias(x_dbl[:, :dt_rank], p['dt_proj_wT' + sfx],
                         out_dtype=jnp.bfloat16).reshape(Bb, Lp, Di)
        Bm = x_dbl[:, dt_rank:dt_rank + Ds].reshape(Bb, Lp, Ds)
        Cm = x_dbl[:, dt_rank + Ds:].reshape(Bb, Lp, Ds)
        return selective_scan(xc, dt, z, Bm, Cm, p['A_T' + sfx],
                              p['D' + sfx], p['dt_bias' + sfx],
                              TC=TC, reverse=reverse)

    y = one_dir('', False)
    if bimamba:
        y = y + one_dir('_b', True)      # backward branch, no flips materialized
    if Lp != L:
        y = y[:, :L, :]
    out = matmul_bias(y.reshape(Bb * L, Di), p['out_proj_wT'])
    return out.reshape(Bb, L, Dm)


def block_forward(hidden, residual, p, bimamba):
    """Block: fused add+RMSNorm (prenorm) -> Mamba mixer."""
    Bb, L, D = hidden.shape
    r2 = None if residual is None else residual.reshape(Bb * L, D)
    normed, new_res = add_rmsnorm(hidden.reshape(Bb * L, D), r2, p['norm_w'])
    hidden_out = mamba_mixer(normed.reshape(Bb, L, D), p, bimamba)
    return hidden_out, new_res.reshape(Bb, L, D)


def endomamba_forward(x, params, cfg):
    B, C, T, H, W = x.shape
    ps, E = cfg['patch_size'], cfg['embed_dim']
    Hp, Wp = H // ps, W // ps
    N = Hp * Wp

    # PatchEmbed: Conv3d with kernel=stride=(1,ps,ps) == patch extract + matmul
    patches = x.reshape(B, C, T, Hp, ps, Wp, ps)
    patches = jnp.transpose(patches, (0, 2, 3, 5, 1, 4, 6))
    patches = patches.reshape(B * T * Hp * Wp, C * ps * ps)
    tok = matmul_bias(patches, params['patch_wT'], params['patch_b'])
    x_tok = tok.reshape(B * T, N, E)

    cls = jnp.broadcast_to(params['cls_token'], (B * T, 1, E))
    x_tok = jnp.concatenate([cls, x_tok], axis=1) + params['pos_embed']
    cls_tokens = x_tok[:, :1, :]
    x_sp = x_tok[:, 1:, :]

    # (b t) n c -> (b n) t c ; add sinusoidal temporal positional encoding
    x_bn = x_sp.reshape(B, T, N, E).transpose(0, 2, 1, 3).reshape(B * N, T, E)
    x_bn = x_bn + sinusoidal_pe(T, E)[None, :, :]
    x_btnc = x_bn.reshape(B, N, T, E).transpose(0, 2, 1, 3)      # (B, T, N, E)
    hidden = jnp.concatenate([cls_tokens.reshape(B, T, 1, E), x_btnc], axis=2)

    Np1 = N + 1
    residual = None
    for i, lp in enumerate(params['layers']):
        bimamba = i < cfg['num_spatial_layers']
        if bimamba:   # spatial layers: per-frame token sequence, bidirectional
            h = hidden.reshape(B * T, Np1, E)
            r = None if residual is None else residual.reshape(B * T, Np1, E)
        else:         # temporal layers: flattened (t n) sequence, causal
            h = hidden.reshape(B, T * Np1, E)
            r = None if residual is None else residual.reshape(B, T * Np1, E)
        h, r = block_forward(h, r, lp, bimamba)
        hidden = h.reshape(B, T, Np1, E)
        residual = r.reshape(B, T, Np1, E)

    # final fused add + RMSNorm (prenorm=False)
    hn, _ = add_rmsnorm(hidden.reshape(B * T * Np1, E),
                        residual.reshape(B * T * Np1, E), params['norm_f_w'])
    hn = hn.reshape(B * T, Np1, E)

    pooled = token_mean(hn)                                      # mean over tokens
    logits = matmul_bias(pooled, params['head_wT'], params['head_b'])
    return logits.reshape(B, T, cfg['num_classes'])


# ------------------------- deterministic parameters -------------------------

def init_params(key, cfg):
    E, C, ps = cfg['embed_dim'], cfg['channels'], cfg['patch_size']
    Ds, d_conv = cfg['d_state'], cfg['d_conv']
    Di = cfg['expand'] * E
    dt_rank = max(1, math.ceil(E / 16))
    N = (cfg['img_size'] // ps) ** 2
    keys = iter(jax.random.split(key, 8 + cfg['depth'] * 16))
    nrm = lambda shape, std=0.02: jax.random.normal(next(keys), shape, jnp.float32) * std
    # Matmul weights are stored pre-transposed (K, N) and pre-cast to bf16.
    bf16_T = lambda w: jnp.asarray(w.T, jnp.bfloat16)

    params = {
        'patch_wT': bf16_T(nrm((E, C * ps * ps))),
        'patch_b': jnp.zeros((E,), jnp.float32),
        'cls_token': jnp.zeros((1, 1, E), jnp.float32),
        'pos_embed': nrm((1, N + 1, E)),
        'norm_f_w': jnp.ones((E,), jnp.float32),
        'head_wT': bf16_T(nrm((cfg['num_classes'], E))),
        'head_b': jnp.zeros((cfg['num_classes'],), jnp.float32),
        'layers': [],
    }
    # A = -exp(A_log), A_log[d, s] = log(s+1); stored pre-negated & transposed.
    A_T_init = -jnp.broadcast_to(
        jnp.arange(1, Ds + 1, dtype=jnp.float32)[:, None], (Ds, Di))
    dt_b = jnp.full((Di,), math.log(math.expm1(0.01)), jnp.float32)

    def direction_params(sfx):
        return {
            # depthwise conv taps in natural (cross-correlation) order, (d_conv, Di)
            'conv_w' + sfx: nrm((d_conv, Di), 0.1),
            'conv_b' + sfx: jnp.zeros((Di,), jnp.float32),
            'x_proj_wT' + sfx: bf16_T(nrm((dt_rank + 2 * Ds, Di))),
            'dt_proj_wT' + sfx: bf16_T(nrm((Di, dt_rank), 0.1)),
            'dt_bias' + sfx: dt_b,
            'A_T' + sfx: A_T_init,
            'D' + sfx: jnp.ones((Di,), jnp.float32),
        }

    for i in range(cfg['depth']):
        lp = {'norm_w': jnp.ones((E,), jnp.float32),
              'in_proj_wT': bf16_T(nrm((2 * Di, E))),
              'out_proj_wT': bf16_T(nrm((E, Di)))}
        lp.update(direction_params(''))
        if i < cfg['num_spatial_layers']:        # bimamba layers get backward params
            lp.update(direction_params('_b'))
        params['layers'].append(lp)
    return params


# ---------------------------------- main ----------------------------------

if __name__ == "__main__":
    cfg = dict(img_size=16, patch_size=8, depth=4, num_spatial_layers=2,
               embed_dim=32, channels=3, num_classes=10,
               d_state=16, d_conv=4, expand=2)
    B, T = 2, 2
    key = jax.random.PRNGKey(0)
    pkey, xkey = jax.random.split(key)
    params = init_params(pkey, cfg)
    x = jax.random.normal(xkey, (B, cfg['channels'], T,
                                 cfg['img_size'], cfg['img_size']), jnp.float32)

    # Whole forward compiled as one program.
    fwd = jax.jit(partial(endomamba_forward, cfg=cfg))
    # TODO(synk): dropout / DropPath / inference_params cache / intermediate
    # feature collection are identity or unused at inference and not exercised.
    out = jax.block_until_ready(fwd(x, params))
    assert out.shape == (B, T, cfg['num_classes'])
    print("KERNEL_OK")
</pallas_src>

<mosaic_0001>
module attributes {stable_mosaic.version = 11 : i64} {
  func.func @_matmul_bias_kernel(%arg0: i32, %arg1: i32, %arg2: i32, %arg3: memref<16x192xbf16, #tpu.memory_space<vmem>>, %arg4: memref<192x32xbf16, #tpu.memory_space<vmem>>, %arg5: memref<1x32xf32, #tpu.memory_space<vmem>>, %arg6: memref<16x32xf32, #tpu.memory_space<vmem>>, %arg7: memref<16x32xf32, #tpu.memory_space<vmem>>) attributes {dimension_semantics = [#tpu.dimension_semantics<parallel>, #tpu.dimension_semantics<parallel>, #tpu.dimension_semantics<arbitrary>], iteration_bounds = array<i64: 1, 1, 1>, scalar_prefetch = 0 : i64, scratch_operands = 1 : i64, tpu.core_type = #tpu.core_type<tc>, window_params = [{transform_indices = @transform_0, window_bounds = array<i64: 16, 192>}, {transform_indices = @transform_1, window_bounds = array<i64: 192, 32>}, {transform_indices = @transform_2, window_bounds = array<i64: 1, 32>}, {transform_indices = @transform_3, window_bounds = array<i64: 16, 32>}]} {
    %c0_i32 = arith.constant 0 : i32
    %0 = arith.cmpi eq, %arg2, %c0_i32 : i32
    %1 = arith.extui %0 : i1 to i32
    %c0_i32_0 = arith.constant 0 : i32
    %2 = arith.cmpi ne, %1, %c0_i32_0 : i32
    scf.if %2 {
      %cst_10 = arith.constant 0.000000e+00 : f32
      %12 = vector.broadcast %cst_10 : f32 to vector<16x32xf32>
      %c0_11 = arith.constant 0 : index
      %c0_12 = arith.constant 0 : index
      %13 = vector.load %arg7[%c0_11, %c0_12] : memref<16x32xf32, #tpu.memory_space<vmem>>, vector<16x32xf32>
      tpu.vector_store %arg7[%c0_11, %c0_12], %12 {strides = array<i32>} : memref<16x32xf32, #tpu.memory_space<vmem>>, vector<16x32xf32>,
    } else {
    }
    %c0 = arith.constant 0 : index
    %c0_1 = arith.constant 0 : index
    %3 = vector.load %arg7[%c0, %c0_1] : memref<16x32xf32, #tpu.memory_space<vmem>>, vector<16x32xf32>
    %c0_2 = arith.constant 0 : index
    %c0_3 = arith.constant 0 : index
    %4 = vector.load %arg3[%c0_2, %c0_3] : memref<16x192xbf16, #tpu.memory_space<vmem>>, vector<16x192xbf16>
    %c0_4 = arith.constant 0 : index
    %c0_5 = arith.constant 0 : index
    %5 = vector.load %arg4[%c0_4, %c0_5] : memref<192x32xbf16, #tpu.memory_space<vmem>>, vector<192x32xbf16>
    %cst = arith.constant dense<0.000000e+00> : vector<16x32xf32>
    %6 = tpu.matmul %4, %5, %cst {dimension_numbers = #tpu.dot_dimension_numbers<[1], [0], [0], [1], [0, 0, 1, 1], [], []>} : vector<16x192xbf16>, vector<192x32xbf16>, vector<16x32xf32> -> vector<16x32xf32>
    %7 = arith.addf %3, %6 : vector<16x32xf32>
    %c0_6 = arith.constant 0 : index
    %c0_7 = arith.constant 0 : index
    %8 = vector.load %arg7[%c0_6, %c0_7] : memref<16x32xf32, #tpu.memory_space<vmem>>, vector<16x32xf32>
    tpu.vector_store %arg7[%c0_6, %c0_7], %7 {strides = array<i32>} : memref<16x32xf32, #tpu.memory_space<vmem>>, vector<16x32xf32>,
    %c0_i32_8 = arith.constant 0 : i32
    %9 = arith.cmpi eq, %arg2, %c0_i32_8 : i32
    %10 = arith.extui %9 : i1 to i32
    %c0_i32_9 = arith.constant 0 : i32
    %11 = arith.cmpi ne, %10, %c0_i32_9 : i32
    scf.if %11 {
      %c0_10 = arith.constant 0 : index
      %c0_11 = arith.constant 0 : index
      %12 = vector.load %arg7[%c0_10, %c0_11] : memref<16x32xf32, #tpu.memory_space<vmem>>, vector<16x32xf32>
      %c0_12 = arith.constant 0 : index
      %c0_13 = arith.constant 0 : index
      %13 = vector.load %arg5[%c0_12, %c0_13] : memref<1x32xf32, #tpu.memory_space<vmem>>, vector<1x32xf32>
      %14 = vector.broadcast %13 : vector<1x32xf32> to vector<16x32xf32>
      %15 = arith.addf %12, %14 : vector<16x32xf32>
      %c0_14 = arith.constant 0 : index
      %c0_15 = arith.constant 0 : index
      %16 = vector.load %arg6[%c0_14, %c0_15] : memref<16x32xf32, #tpu.memory_space<vmem>>, vector<16x32xf32>
      tpu.vector_store %arg6[%c0_14, %c0_15], %15 {strides = array<i32>} : memref<16x32xf32, #tpu.memory_space<vmem>>, vector<16x32xf32>,
    } else {
    }
    return
  }
  func.func @transform_0(%arg0: i32, %arg1: i32, %arg2: i32) -> (i32, i32) {
    %c0_i32 = arith.constant 0 : i32
    return %arg0, %arg2 : i32, i32
  }
  func.func @transform_1(%arg0: i32, %arg1: i32, %arg2: i32) -> (i32, i32) {
    %c0_i32 = arith.constant 0 : i32
    return %arg2, %arg1 : i32, i32
  }
  func.func @transform_2(%arg0: i32, %arg1: i32, %arg2: i32) -> (i32, i32) {
    %c0_i32 = arith.constant 0 : i32
    %c0_i32_0 = arith.constant 0 : i32
    return %c0_i32, %arg1 : i32, i32
  }
  func.func @transform_3(%arg0: i32, %arg1: i32, %arg2: i32) -> (i32, i32) {
    %c0_i32 = arith.constant 0 : i32
    return %arg0, %arg1 : i32, i32
  }
}

module attributes {stable_mosaic.version = 11 : i64} {
  func.func @_rmsnorm_kernel(%arg0: i32, %arg1: memref<20x32xf32, #tpu.memory_space<vmem>>, %arg2: memref<1x32xf32, #tpu.memory_space<vmem>>, %arg3: memref<20x32xbf16, #tpu.memory_space<vmem>>, %arg4: memref<20x32xf32, #tpu.memory_space<vmem>>) attributes {dimension_semantics = [#tpu.dimension_semantics<parallel>], iteration_bounds = array<i64: 1>, scalar_prefetch = 0 : i64, scratch_operands = 0 : i64, tpu.core_type = #tpu.core_type<tc>, window_params = [{transform_indices = @transform_0, window_bounds = array<i64: 20, 32>}, {pipeline_mode = #tpu.pipeline_mode<synchronous>, transform_indices = @transform_1, window_bounds = array<i64: 1, 32>}, {transform_indices = @transform_2, window_bounds = array<i64: 20, 32>}, {transform_indices = @transform_3, window_bounds = array<i64: 20, 32>}]} {
    %c0 = arith.constant 0 : index
    %c0_0 = arith.constant 0 : index
    %0 = vector.load %arg1[%c0, %c0_0] : memref<20x32xf32, #tpu.memory_space<vmem>>, vector<20x32xf32>
    %1 = arith.mulf %0, %0 : vector<20x32xf32>
    %cst = arith.constant dense<0.000000e+00> : vector<20xf32>
    %2 = vector.multi_reduction <add>, %1, %cst [1] : vector<20x32xf32> to vector<20xf32>
    %3 = vector.shape_cast %2 : vector<20xf32> to vector<20x1xf32>
    %cst_1 = arith.constant 3.200000e+01 : f32
    %4 = vector.broadcast %cst_1 : f32 to vector<20x1xf32>
    %5 = arith.divf %3, %4 : vector<20x1xf32>
    %cst_2 = arith.constant 9.99999974E-6 : f32
    %6 = vector.broadcast %cst_2 : f32 to vector<20x1xf32>
    %7 = arith.addf %5, %6 : vector<20x1xf32>
    %8 = math.rsqrt %7 : vector<20x1xf32>
    %9 = vector.broadcast %8 : vector<20x1xf32> to vector<20x32xf32>
    %10 = arith.mulf %0, %9 : vector<20x32xf32>
    %c0_3 = arith.constant 0 : index
    %c0_4 = arith.constant 0 : index
    %11 = vector.load %arg2[%c0_3, %c0_4] : memref<1x32xf32, #tpu.memory_space<vmem>>, vector<1x32xf32>
    %12 = vector.broadcast %11 : vector<1x32xf32> to vector<20x32xf32>
    %13 = arith.mulf %10, %12 : vector<20x32xf32>
    %14 = arith.truncf %13 : vector<20x32xf32> to vector<20x32xbf16>
    %c0_5 = arith.constant 0 : index
    %c0_6 = arith.constant 0 : index
    %15 = vector.load %arg3[%c0_5, %c0_6] : memref<20x32xbf16, #tpu.memory_space<vmem>>, vector<20x32xbf16>
    tpu.vector_store %arg3[%c0_5, %c0_6], %14 {strides = array<i32>} : memref<20x32xbf16, #tpu.memory_space<vmem>>, vector<20x32xbf16>,
    %c0_7 = arith.constant 0 : index
    %c0_8 = arith.constant 0 : index
    %16 = vector.load %arg4[%c0_7, %c0_8] : memref<20x32xf32, #tpu.memory_space<vmem>>, vector<20x32xf32>
    tpu.vector_store %arg4[%c0_7, %c0_8], %0 {strides = array<i32>} : memref<20x32xf32, #tpu.memory_space<vmem>>, vector<20x32xf32>,
    return
  }
  func.func @transform_0(%arg0: i32) -> (i32, i32) {
    %c0_i32 = arith.constant 0 : i32
    %c0_i32_0 = arith.constant 0 : i32
    return %arg0, %c0_i32 : i32, i32
  }
  func.func @transform_1(%arg0: i32) -> (i32, i32) {
    %c0_i32 = arith.constant 0 : i32
    %c0_i32_0 = arith.constant 0 : i32
    %c0_i32_1 = arith.constant 0 : i32
    return %c0_i32, %c0_i32_0 : i32, i32
  }
  func.func @transform_2(%arg0: i32) -> (i32, i32) {
    %c0_i32 = arith.constant 0 : i32
    %c0_i32_0 = arith.constant 0 : i32
    return %arg0, %c0_i32 : i32, i32
  }
  func.func @transform_3(%arg0: i32) -> (i32, i32) {
    %c0_i32 = arith.constant 0 : i32
    %c0_i32_0 = arith.constant 0 : i32
    return %arg0, %c0_i32 : i32, i32
  }
}

module attributes {stable_mosaic.version = 11 : i64} {
  func.func @_matmul_bias_kernel(%arg0: i32, %arg1: i32, %arg2: i32, %arg3: memref<20x32xbf16, #tpu.memory_space<vmem>>, %arg4: memref<32x128xbf16, #tpu.memory_space<vmem>>, %arg5: memref<1x128xf32, #tpu.memory_space<vmem>>, %arg6: memref<20x128xbf16, #tpu.memory_space<vmem>>, %arg7: memref<20x128xf32, #tpu.memory_space<vmem>>) attributes {dimension_semantics = [#tpu.dimension_semantics<parallel>, #tpu.dimension_semantics<parallel>, #tpu.dimension_semantics<arbitrary>], iteration_bounds = array<i64: 1, 1, 1>, scalar_prefetch = 0 : i64, scratch_operands = 1 : i64, tpu.core_type = #tpu.core_type<tc>, window_params = [{transform_indices = @transform_0, window_bounds = array<i64: 20, 32>}, {transform_indices = @transform_1, window_bounds = array<i64: 32, 128>}, {transform_indices = @transform_2, window_bounds = array<i64: 1, 128>}, {transform_indices = @transform_3, window_bounds = array<i64: 20, 128>}]} {
    %c0_i32 = arith.constant 0 : i32
    %0 = arith.cmpi eq, %arg2, %c0_i32 : i32
    %1 = arith.extui %0 : i1 to i32
    %c0_i32_0 = arith.constant 0 : i32
    %2 = arith.cmpi ne, %1, %c0_i32_0 : i32
    scf.if %2 {
      %cst_10 = arith.constant 0.000000e+00 : f32
      %12 = vector.broadcast %cst_10 : f32 to vector<20x128xf32>
      %c0_11 = arith.constant 0 : index
      %c0_12 = arith.constant 0 : index
      %13 = vector.load %arg7[%c0_11, %c0_12] : memref<20x128xf32, #tpu.memory_space<vmem>>, vector<20x128xf32>
      tpu.vector_store %arg7[%c0_11, %c0_12], %12 {strides = array<i32>} : memref<20x128xf32, #tpu.memory_space<vmem>>, vector<20x128xf32>,
    } else {
    }
    %c0 = arith.constant 0 : index
    %c0_1 = arith.constant 0 : index
    %3 = vector.load %arg7[%c0, %c0_1] : memref<20x128xf32, #tpu.memory_space<vmem>>, vector<20x128xf32>
    %c0_2 = arith.constant 0 : index
    %c0_3 = arith.constant 0 : index
    %4 = vector.load %arg3[%c0_2, %c0_3] : memref<20x32xbf16, #tpu.memory_space<vmem>>, vector<20x32xbf16>
    %c0_4 = arith.constant 0 : index
    %c0_5 = arith.constant 0 : index
    %5 = vector.load %arg4[%c0_4, %c0_5] : memref<32x128xbf16, #tpu.memory_space<vmem>>, vector<32x128xbf16>
    %cst = arith.constant dense<0.000000e+00> : vector<20x128xf32>
    %6 = tpu.matmul %4, %5, %cst {dimension_numbers = #tpu.dot_dimension_numbers<[1], [0], [0], [1], [0, 0, 1, 1], [], []>} : vector<20x32xbf16>, vector<32x128xbf16>, vector<20x128xf32> -> vector<20x128xf32>
    %7 = arith.addf %3, %6 : vector<20x128xf32>
    %c0_6 = arith.constant 0 : index
    %c0_7 = arith.constant 0 : index
    %8 = vector.load %arg7[%c0_6, %c0_7] : memref<20x128xf32, #tpu.memory_space<vmem>>, vector<20x128xf32>
    tpu.vector_store %arg7[%c0_6, %c0_7], %7 {strides = array<i32>} : memref<20x128xf32, #tpu.memory_space<vmem>>, vector<20x128xf32>,
    %c0_i32_8 = arith.constant 0 : i32
    %9 = arith.cmpi eq, %arg2, %c0_i32_8 : i32
    %10 = arith.extui %9 : i1 to i32
    %c0_i32_9 = arith.constant 0 : i32
    %11 = arith.cmpi ne, %10, %c0_i32_9 : i32
    scf.if %11 {
      %c0_10 = arith.constant 0 : index
      %c0_11 = arith.constant 0 : index
      %12 = vector.load %arg7[%c0_10, %c0_11] : memref<20x128xf32, #tpu.memory_space<vmem>>, vector<20x128xf32>
      %c0_12 = arith.constant 0 : index
      %c0_13 = arith.constant 0 : index
      %13 = vector.load %arg5[%c0_12, %c0_13] : memref<1x128xf32, #tpu.memory_space<vmem>>, vector<1x128xf32>
      %14 = vector.broadcast %13 : vector<1x128xf32> to vector<20x128xf32>
      %15 = arith.addf %12, %14 : vector<20x128xf32>
      %16 = arith.truncf %15 : vector<20x128xf32> to vector<20x128xbf16>
      %c0_14 = arith.constant 0 : index
      %c0_15 = arith.constant 0 : index
      %17 = vector.load %arg6[%c0_14, %c0_15] : memref<20x128xbf16, #tpu.memory_space<vmem>>, vector<20x128xbf16>
      tpu.vector_store %arg6[%c0_14, %c0_15], %16 {strides = array<i32>} : memref<20x128xbf16, #tpu.memory_space<vmem>>, vector<20x128xbf16>,
    } else {
    }
    return
  }
  func.func @transform_0(%arg0: i32, %arg1: i32, %arg2: i32) -> (i32, i32) {
    %c0_i32 = arith.constant 0 : i32
    return %arg0, %arg2 : i32, i32
  }
  func.func @transform_1(%arg0: i32, %arg1: i32, %arg2: i32) -> (i32, i32) {
    %c0_i32 = arith.constant 0 : i32
    return %arg2, %arg1 : i32, i32
  }
  func.func @transform_2(%arg0: i32, %arg1: i32, %arg2: i32) -> (i32, i32) {
    %c0_i32 = arith.constant 0 : i32
    %c0_i32_0 = arith.constant 0 : i32
    return %c0_i32, %arg1 : i32, i32
  }
  func.func @transform_3(%arg0: i32, %arg1: i32, %arg2: i32) -> (i32, i32) {
    %c0_i32 = arith.constant 0 : i32
    return %arg0, %arg1 : i32, i32
  }
}

module attributes {stable_mosaic.version = 11 : i64} {
  func.func @_causal_conv_silu_kernel(%arg0: i32, %arg1: i32, %arg2: i32, %arg3: memref<1x8x64xbf16, #tpu.memory_space<vmem>>, %arg4: memref<4x64xf32, #tpu.memory_space<vmem>>, %arg5: memref<1x64xf32, #tpu.memory_space<vmem>>, %arg6: memref<1x8x64xbf16, #tpu.memory_space<vmem>>, %arg7: memref<16x64xf32, #tpu.memory_space<vmem>>, %arg8: memref<8x64xf32, #tpu.memory_space<vmem>>) attributes {dimension_semantics = [#tpu.dimension_semantics<parallel>, #tpu.dimension_semantics<parallel>, #tpu.dimension_semantics<arbitrary>], iteration_bounds = array<i64: 4, 1, 1>, scalar_prefetch = 0 : i64, scratch_operands = 2 : i64, tpu.core_type = #tpu.core_type<tc>, window_params = [{transform_indices = @transform_0, window_bounds = array<i64: 1, 8, 64>}, {transform_indices = @transform_1, window_bounds = array<i64: 4, 64>}, {transform_indices = @transform_2, window_bounds = array<i64: 1, 64>}, {transform_indices = @transform_3, window_bounds = array<i64: 1, 8, 64>}]} {
    %c0_i32 = arith.constant 0 : i32
    %0 = arith.cmpi eq, %arg2, %c0_i32 : i32
    %1 = arith.extui %0 : i1 to i32
    %c0_i32_0 = arith.constant 0 : i32
    %2 = arith.cmpi ne, %1, %c0_i32_0 : i32
    scf.if %2 {
      %cst_34 = arith.constant 0.000000e+00 : f32
      %62 = vector.broadcast %cst_34 : f32 to vector<8x64xf32>
      %c0_35 = arith.constant 0 : index
      %c0_36 = arith.constant 0 : index
      %63 = vector.load %arg8[%c0_35, %c0_36] : memref<8x64xf32, #tpu.memory_space<vmem>>, vector<8x64xf32>
      tpu.vector_store %arg8[%c0_35, %c0_36], %62 {strides = array<i32>} : memref<8x64xf32, #tpu.memory_space<vmem>>, vector<8x64xf32>,
    } else {
    }
    %c0 = arith.constant 0 : index
    %c0_1 = arith.constant 0 : index
    %c0_2 = arith.constant 0 : index
    %3 = vector.load %arg3[%c0, %c0_1, %c0_2] : memref<1x8x64xbf16, #tpu.memory_space<vmem>>, vector<1x8x64xbf16>
    %4 = vector.shape_cast %3 : vector<1x8x64xbf16> to vector<8x64xbf16>
    %5 = arith.extf %4 : vector<8x64xbf16> to vector<8x64xf32>
    %c0_3 = arith.constant 0 : index
    %c0_4 = arith.constant 0 : index
    %6 = vector.load %arg7[%c0_3, %c0_4] : memref<16x64xf32, #tpu.memory_space<vmem>>, vector<8x64xf32>
    tpu.vector_store %arg7[%c0_3, %c0_4], %5 {strides = array<i32>} : memref<16x64xf32, #tpu.memory_space<vmem>>, vector<8x64xf32>,
    %c0_5 = arith.constant 0 : index
    %c0_6 = arith.constant 0 : index
    %7 = vector.load %arg8[%c0_5, %c0_6] : memref<8x64xf32, #tpu.memory_space<vmem>>, vector<8x64xf32>
    %c8 = arith.constant 8 : index
    %c0_7 = arith.constant 0 : index
    %8 = vector.load %arg7[%c8, %c0_7] : memref<16x64xf32, #tpu.memory_space<vmem>>, vector<8x64xf32>
    tpu.vector_store %arg7[%c8, %c0_7], %7 {strides = array<i32>} : memref<16x64xf32, #tpu.memory_space<vmem>>, vector<8x64xf32>,
    %c0_8 = arith.constant 0 : index
    %c0_9 = arith.constant 0 : index
    %9 = vector.load %arg5[%c0_8, %c0_9] : memref<1x64xf32, #tpu.memory_space<vmem>>, vector<1x64xf32>
    %c0_10 = arith.constant 0 : index
    %c0_11 = arith.constant 0 : index
    %10 = vector.load %arg7[%c0_10, %c0_11] : memref<16x64xf32, #tpu.memory_space<vmem>>, vector<8x64xf32>
    %c3 = arith.constant 3 : index
    %c0_12 = arith.constant 0 : index
    %11 = vector.load %arg4[%c3, %c0_12] : memref<4x64xf32, #tpu.memory_space<vmem>>, vector<1x64xf32>
    %12 = vector.broadcast %11 : vector<1x64xf32> to vector<8x64xf32>
    %13 = arith.mulf %10, %12 : vector<8x64xf32>
    %14 = vector.broadcast %9 : vector<1x64xf32> to vector<8x64xf32>
    %15 = arith.addf %14, %13 : vector<8x64xf32>
    %c1 = arith.constant 1 : index
    %c0_13 = arith.constant 0 : index
    %16 = vector.load %arg7[%c1, %c0_13] : memref<16x64xf32, #tpu.memory_space<vmem>>, vector<8x64xf32>
    %c2 = arith.constant 2 : index
    %c0_14 = arith.constant 0 : index
    %17 = vector.load %arg4[%c2, %c0_14] : memref<4x64xf32, #tpu.memory_space<vmem>>, vector<1x64xf32>
    %18 = vector.broadcast %17 : vector<1x64xf32> to vector<8x64xf32>
    %19 = arith.mulf %16, %18 : vector<8x64xf32>
    %20 = arith.addf %15, %19 : vector<8x64xf32>
    %c2_15 = arith.constant 2 : index
    %c0_16 = arith.constant 0 : index
    %21 = vector.load %arg7[%c2_15, %c0_16] : memref<16x64xf32, #tpu.memory_space<vmem>>, vector<8x64xf32>
    %c1_17 = arith.constant 1 : index
    %c0_18 = arith.constant 0 : index
    %22 = vector.load %arg4[%c1_17, %c0_18] : memref<4x64xf32, #tpu.memory_space<vmem>>, vector<1x64xf32>
    %23 = vector.broadcast %22 : vector<1x64xf32> to vector<8x64xf32>
    %24 = arith.mulf %21, %23 : vector<8x64xf32>
    %25 = arith.addf %20, %24 : vector<8x64xf32>
    %c3_19 = arith.constant 3 : index
    %c0_20 = arith.constant 0 : index
    %26 = vector.load %arg7[%c3_19, %c0_20] : memref<16x64xf32, #tpu.memory_space<vmem>>, vector<8x64xf32>
    %c0_21 = arith.constant 0 : index
    %c0_22 = arith.constant 0 : index
    %27 = vector.load %arg4[%c0_21, %c0_22] : memref<4x64xf32, #tpu.memory_space<vmem>>, vector<1x64xf32>
    %28 = vector.broadcast %27 : vector<1x64xf32> to vector<8x64xf32>
    %29 = arith.mulf %26, %28 : vector<8x64xf32>
    %30 = arith.addf %25, %29 : vector<8x64xf32>
    %c0_i32_23 = arith.constant 0 : i32
    %31 = arith.subi %c0_i32_23, %arg2 : i32
    %32 = tpu.iota {dimensions = array<i32: 0>} : vector<8x1xi32>
    %c8_i32 = arith.constant 8 : i32
    %33 = arith.muli %31, %c8_i32 : i32
    %34 = vector.broadcast %33 : i32 to vector<8x1xi32>
    %35 = arith.addi %34, %32 : vector<8x1xi32>
    %c5_i32 = arith.constant 5 : i32
    %36 = vector.broadcast %c5_i32 : i32 to vector<8x1xi32>
    %37 = arith.cmpi slt, %35, %36 : vector<8x1xi32>
    %38 = math.absf %30 : vector<8x64xf32>
    %cst = arith.constant 0.000000e+00 : f32
    %39 = vector.broadcast %cst : f32 to vector<8x64xf32>
    %40 = arith.subf %39, %38 : vector<8x64xf32>
    %41 = math.exp %40 : vector<8x64xf32>
    %cst_24 = arith.constant 0.000000e+00 : f32
    %42 = vector.broadcast %cst_24 : f32 to vector<8x64xf32>
    %43 = arith.cmpf oge, %30, %42 : vector<8x64xf32>
    %cst_25 = arith.constant 1.000000e+00 : f32
    %44 = vector.broadcast %cst_25 : f32 to vector<8x64xf32>
    %45 = arith.addf %44, %41 : vector<8x64xf32>
    %cst_26 = arith.constant 1.000000e+00 : f32
    %46 = vector.broadcast %cst_26 : f32 to vector<8x64xf32>
    %47 = arith.divf %46, %45 : vector<8x64xf32>
    %cst_27 = arith.constant 1.000000e+00 : f32
    %48 = vector.broadcast %cst_27 : f32 to vector<8x64xf32>
    %49 = arith.addf %48, %41 : vector<8x64xf32>
    %50 = arith.divf %41, %49 : vector<8x64xf32>
    %51 = arith.select %43, %47, %50 : vector<8x64xi1>, vector<8x64xf32>
    %52 = arith.mulf %30, %51 : vector<8x64xf32>
    %cst_28 = arith.constant 0.000000e+00 : f32
    %53 = vector.shape_cast %37 : vector<8x1xi1> to vector<8x1xi1>
    %54 = vector.broadcast %53 : vector<8x1xi1> to vector<8x64xi1>
    %55 = vector.broadcast %cst_28 : f32 to vector<8x64xf32>
    %56 = arith.select %54, %52, %55 : vector<8x64xi1>, vector<8x64xf32>
    %57 = arith.truncf %56 : vector<8x64xf32> to vector<8x64xbf16>
    %c0_29 = arith.constant 0 : index
    %c0_30 = arith.constant 0 : index
    %c0_31 = arith.constant 0 : index
    %58 = vector.load %arg6[%c0_29, %c0_30, %c0_31] : memref<1x8x64xbf16, #tpu.memory_space<vmem>>, vector<1x8x64xbf16>
    %59 = vector.shape_cast %58 : vector<1x8x64xbf16> to vector<8x64xbf16>
    %60 = vector.shape_cast %57 : vector<8x64xbf16> to vector<1x8x64xbf16>
    tpu.vector_store %arg6[%c0_29, %c0_30, %c0_31], %60 {strides = array<i32>} : memref<1x8x64xbf16, #tpu.memory_space<vmem>>, vector<1x8x64xbf16>,
    %c0_32 = arith.constant 0 : index
    %c0_33 = arith.constant 0 : index
    %61 = vector.load %arg8[%c0_32, %c0_33] : memref<8x64xf32, #tpu.memory_space<vmem>>, vector<8x64xf32>
    tpu.vector_store %arg8[%c0_32, %c0_33], %5 {strides = array<i32>} : memref<8x64xf32, #tpu.memory_space<vmem>>, vector<8x64xf32>,
    return
  }
  func.func @transform_0(%arg0: i32, %arg1: i32, %arg2: i32) -> (i32, i32, i32) {
    %c0_i32 = arith.constant 0 : i32
    %0 = arith.subi %c0_i32, %arg2 : i32
    %c0_i32_0 = arith.constant 0 : i32
    return %arg0, %0, %arg1 : i32, i32, i32
  }
  func.func @transform_1(%arg0: i32, %arg1: i32, %arg2: i32) -> (i32, i32) {
    %c0_i32 = arith.constant 0 : i32
    %c0_i32_0 = arith.constant 0 : i32
    return %c0_i32, %arg1 : i32, i32
  }
  func.func @transform_2(%arg0: i32, %arg1: i32, %arg2: i32) -> (i32, i32) {
    %c0_i32 = arith.constant 0 : i32
    %c0_i32_0 = arith.constant 0 : i32
    return %c0_i32, %arg1 : i32, i32
  }
  func.func @transform_3(%arg0: i32, %arg1: i32, %arg2: i32) -> (i32, i32, i32) {
    %c0_i32 = arith.constant 0 : i32
    %0 = arith.subi %c0_i32, %arg2 : i32
    %c0_i32_0 = arith.constant 0 : i32
    return %arg0, %0, %arg1 : i32, i32, i32
  }
}

module attributes {stable_mosaic.version = 11 : i64} {
  func.func @_matmul_bias_kernel(%arg0: i32, %arg1: i32, %arg2: i32, %arg3: memref<32x64xbf16, #tpu.memory_space<vmem>>, %arg4: memref<64x34xbf16, #tpu.memory_space<vmem>>, %arg5: memref<1x34xf32, #tpu.memory_space<vmem>>, %arg6: memref<32x34xbf16, #tpu.memory_space<vmem>>, %arg7: memref<32x34xf32, #tpu.memory_space<vmem>>) attributes {dimension_semantics = [#tpu.dimension_semantics<parallel>, #tpu.dimension_semantics<parallel>, #tpu.dimension_semantics<arbitrary>], iteration_bounds = array<i64: 1, 1, 1>, scalar_prefetch = 0 : i64, scratch_operands = 1 : i64, tpu.core_type = #tpu.core_type<tc>, window_params = [{transform_indices = @transform_0, window_bounds = array<i64: 32, 64>}, {transform_indices = @transform_1, window_bounds = array<i64: 64, 34>}, {transform_indices = @transform_2, window_bounds = array<i64: 1, 34>}, {transform_indices = @transform_3, window_bounds = array<i64: 32, 34>}]} {
    %c0_i32 = arith.constant 0 : i32
    %0 = arith.cmpi eq, %arg2, %c0_i32 : i32
    %1 = arith.extui %0 : i1 to i32
    %c0_i32_0 = arith.constant 0 : i32
    %2 = arith.cmpi ne, %1, %c0_i32_0 : i32
    scf.if %2 {
      %cst_10 = arith.constant 0.000000e+00 : f32
      %12 = vector.broadcast %cst_10 : f32 to vector<32x34xf32>
      %c0_11 = arith.constant 0 : index
      %c0_12 = arith.constant 0 : index
      %13 = vector.load %arg7[%c0_11, %c0_12] : memref<32x34xf32, #tpu.memory_space<vmem>>, vector<32x34xf32>
      tpu.vector_store %arg7[%c0_11, %c0_12], %12 {strides = array<i32>} : memref<32x34xf32, #tpu.memory_space<vmem>>, vector<32x34xf32>,
    } else {
    }
    %c0 = arith.constant 0 : index
    %c0_1 = arith.constant 0 : index
    %3 = vector.load %arg7[%c0, %c0_1] : memref<32x34xf32, #tpu.memory_space<vmem>>, vector<32x34xf32>
    %c0_2 = arith.constant 0 : index
    %c0_3 = arith.constant 0 : index
    %4 = vector.load %arg3[%c0_2, %c0_3] : memref<32x64xbf16, #tpu.memory_space<vmem>>, vector<32x64xbf16>
    %c0_4 = arith.constant 0 : index
    %c0_5 = arith.constant 0 : index
    %5 = vector.load %arg4[%c0_4, %c0_5] : memref<64x34xbf16, #tpu.memory_space<vmem>>, vector<64x34xbf16>
    %cst = arith.constant dense<0.000000e+00> : vector<32x34xf32>
    %6 = tpu.matmul %4, %5, %cst {dimension_numbers = #tpu.dot_dimension_numbers<[1], [0], [0], [1], [0, 0, 1, 1], [], []>} : vector<32x64xbf16>, vector<64x34xbf16>, vector<32x34xf32> -> vector<32x34xf32>
    %7 = arith.addf %3, %6 : vector<32x34xf32>
    %c0_6 = arith.constant 0 : index
    %c0_7 = arith.constant 0 : index
    %8 = vector.load %arg7[%c0_6, %c0_7] : memref<32x34xf32, #tpu.memory_space<vmem>>, vector<32x34xf32>
    tpu.vector_store %arg7[%c0_6, %c0_7], %7 {strides = array<i32>} : memref<32x34xf32, #tpu.memory_space<vmem>>, vector<32x34xf32>,
    %c0_i32_8 = arith.constant 0 : i32
    %9 = arith.cmpi eq, %arg2, %c0_i32_8 : i32
    %10 = arith.extui %9 : i1 to i32
    %c0_i32_9 = arith.constant 0 : i32
    %11 = arith.cmpi ne, %10, %c0_i32_9 : i32
    scf.if %11 {
      %c0_10 = arith.constant 0 : index
      %c0_11 = arith.constant 0 : index
      %12 = vector.load %arg7[%c0_10, %c0_11] : memref<32x34xf32, #tpu.memory_space<vmem>>, vector<32x34xf32>
      %c0_12 = arith.constant 0 : index
      %c0_13 = arith.constant 0 : index
      %13 = vector.load %arg5[%c0_12, %c0_13] : memref<1x34xf32, #tpu.memory_space<vmem>>, vector<1x34xf32>
      %14 = vector.broadcast %13 : vector<1x34xf32> to vector<32x34xf32>
      %15 = arith.addf %12, %14 : vector<32x34xf32>
      %16 = arith.truncf %15 : vector<32x34xf32> to vector<32x34xbf16>
      %c0_14 = arith.constant 0 : index
      %c0_15 = arith.constant 0 : index
      %17 = vector.load %arg6[%c0_14, %c0_15] : memref<32x34xbf16, #tpu.memory_space<vmem>>, vector<32x34xbf16>
      tpu.vector_store %arg6[%c0_14, %c0_15], %16 {strides = array<i32>} : memref<32x34xbf16, #tpu.memory_space<vmem>>, vector<32x34xbf16>,
    } else {
    }
    return
  }
  func.func @transform_0(%arg0: i32, %arg1: i32, %arg2: i32) -> (i32, i32) {
    %c0_i32 = arith.constant 0 : i32
    return %arg0, %arg2 : i32, i32
  }
  func.func @transform_1(%arg0: i32, %arg1: i32, %arg2: i32) -> (i32, i32) {
    %c0_i32 = arith.constant 0 : i32
    return %arg2, %arg1 : i32, i32
  }
  func.func @transform_2(%arg0: i32, %arg1: i32, %arg2: i32) -> (i32, i32) {
    %c0_i32 = arith.constant 0 : i32
    %c0_i32_0 = arith.constant 0 : i32
    return %c0_i32, %arg1 : i32, i32
  }
  func.func @transform_3(%arg0: i32, %arg1: i32, %arg2: i32) -> (i32, i32) {
    %c0_i32 = arith.constant 0 : i32
    return %arg0, %arg1 : i32, i32
  }
}

module attributes {stable_mosaic.version = 11 : i64} {
  func.func @_matmul_bias_kernel(%arg0: i32, %arg1: i32, %arg2: i32, %arg3: memref<32x2xbf16, #tpu.memory_space<vmem>>, %arg4: memref<2x64xbf16, #tpu.memory_space<vmem>>, %arg5: memref<1x64xf32, #tpu.memory_space<vmem>>, %arg6: memref<32x64xbf16, #tpu.memory_space<vmem>>, %arg7: memref<32x64xf32, #tpu.memory_space<vmem>>) attributes {dimension_semantics = [#tpu.dimension_semantics<parallel>, #tpu.dimension_semantics<parallel>, #tpu.dimension_semantics<arbitrary>], iteration_bounds = array<i64: 1, 1, 1>, scalar_prefetch = 0 : i64, scratch_operands = 1 : i64, tpu.core_type = #tpu.core_type<tc>, window_params = [{transform_indices = @transform_0, window_bounds = array<i64: 32, 2>}, {transform_indices = @transform_1, window_bounds = array<i64: 2, 64>}, {transform_indices = @transform_2, window_bounds = array<i64: 1, 64>}, {transform_indices = @transform_3, window_bounds = array<i64: 32, 64>}]} {
    %c0_i32 = arith.constant 0 : i32
    %0 = arith.cmpi eq, %arg2, %c0_i32 : i32
    %1 = arith.extui %0 : i1 to i32
    %c0_i32_0 = arith.constant 0 : i32
    %2 = arith.cmpi ne, %1, %c0_i32_0 : i32
    scf.if %2 {
      %cst_10 = arith.constant 0.000000e+00 : f32
      %12 = vector.broadcast %cst_10 : f32 to vector<32x64xf32>
      %c0_11 = arith.constant 0 : index
      %c0_12 = arith.constant 0 : index
      %13 = vector.load %arg7[%c0_11, %c0_12] : memref<32x64xf32, #tpu.memory_space<vmem>>, vector<32x64xf32>
      tpu.vector_store %arg7[%c0_11, %c0_12], %12 {strides = array<i32>} : memref<32x64xf32, #tpu.memory_space<vmem>>, vector<32x64xf32>,
    } else {
    }
    %c0 = arith.constant 0 : index
    %c0_1 = arith.constant 0 : index
    %3 = vector.load %arg7[%c0, %c0_1] : memref<32x64xf32, #tpu.memory_space<vmem>>, vector<32x64xf32>
    %c0_2 = arith.constant 0 : index
    %c0_3 = arith.constant 0 : index
    %4 = vector.load %arg3[%c0_2, %c0_3] : memref<32x2xbf16, #tpu.memory_space<vmem>>, vector<32x2xbf16>
    %c0_4 = arith.constant 0 : index
    %c0_5 = arith.constant 0 : index
    %5 = vector.load %arg4[%c0_4, %c0_5] : memref<2x64xbf16, #tpu.memory_space<vmem>>, vector<2x64xbf16>
    %cst = arith.constant dense<0.000000e+00> : vector<32x64xf32>
    %6 = tpu.matmul %4, %5, %cst {dimension_numbers = #tpu.dot_dimension_numbers<[1], [0], [0], [1], [0, 0, 1, 1], [], []>} : vector<32x2xbf16>, vector<2x64xbf16>, vector<32x64xf32> -> vector<32x64xf32>
    %7 = arith.addf %3, %6 : vector<32x64xf32>
    %c0_6 = arith.constant 0 : index
    %c0_7 = arith.constant 0 : index
    %8 = vector.load %arg7[%c0_6, %c0_7] : memref<32x64xf32, #tpu.memory_space<vmem>>, vector<32x64xf32>
    tpu.vector_store %arg7[%c0_6, %c0_7], %7 {strides = array<i32>} : memref<32x64xf32, #tpu.memory_space<vmem>>, vector<32x64xf32>,
    %c0_i32_8 = arith.constant 0 : i32
    %9 = arith.cmpi eq, %arg2, %c0_i32_8 : i32
    %10 = arith.extui %9 : i1 to i32
    %c0_i32_9 = arith.constant 0 : i32
    %11 = arith.cmpi ne, %10, %c0_i32_9 : i32
    scf.if %11 {
      %c0_10 = arith.constant 0 : index
      %c0_11 = arith.constant 0 : index
      %12 = vector.load %arg7[%c0_10, %c0_11] : memref<32x64xf32, #tpu.memory_space<vmem>>, vector<32x64xf32>
      %c0_12 = arith.constant 0 : index
      %c0_13 = arith.constant 0 : index
      %13 = vector.load %arg5[%c0_12, %c0_13] : memref<1x64xf32, #tpu.memory_space<vmem>>, vector<1x64xf32>
      %14 = vector.broadcast %13 : vector<1x64xf32> to vector<32x64xf32>
      %15 = arith.addf %12, %14 : vector<32x64xf32>
      %16 = arith.truncf %15 : vector<32x64xf32> to vector<32x64xbf16>
      %c0_14 = arith.constant 0 : index
      %c0_15 = arith.constant 0 : index
      %17 = vector.load %arg6[%c0_14, %c0_15] : memref<32x64xbf16, #tpu.memory_space<vmem>>, vector<32x64xbf16>
      tpu.vector_store %arg6[%c0_14, %c0_15], %16 {strides = array<i32>} : memref<32x64xbf16, #tpu.memory_space<vmem>>, vector<32x64xbf16>,
    } else {
    }
    return
  }
  func.func @transform_0(%arg0: i32, %arg1: i32, %arg2: i32) -> (i32, i32) {
    %c0_i32 = arith.constant 0 : i32
    return %arg0, %arg2 : i32, i32
  }
  func.func @transform_1(%arg0: i32, %arg1: i32, %arg2: i32) -> (i32, i32) {
    %c0_i32 = arith.constant 0 : i32
    return %arg2, %arg1 : i32, i32
  }
  func.func @transform_2(%arg0: i32, %arg1: i32, %arg2: i32) -> (i32, i32) {
    %c0_i32 = arith.constant 0 : i32
    %c0_i32_0 = arith.constant 0 : i32
    return %c0_i32, %arg1 : i32, i32
  }
  func.func @transform_3(%arg0: i32, %arg1: i32, %arg2: i32) -> (i32, i32) {
    %c0_i32 = arith.constant 0 : i32
    return %arg0, %arg1 : i32, i32
  }
}

module attributes {stable_mosaic.version = 11 : i64} {
  func.func @_selective_scan_kernel(%arg0: i32, %arg1: i32, %arg2: i32, %arg3: memref<1x8x64xbf16, #tpu.memory_space<vmem>>, %arg4: memref<1x8x64xbf16, #tpu.memory_space<vmem>>, %arg5: memref<1x8x64xbf16, #tpu.memory_space<vmem>>, %arg6: memref<1x16x8xbf16, #tpu.memory_space<vmem>>, %arg7: memref<1x16x8xbf16, #tpu.memory_space<vmem>>, %arg8: memref<16x64xf32, #tpu.memory_space<vmem>>, %arg9: memref<1x64xf32, #tpu.memory_space<vmem>>, %arg10: memref<1x64xf32, #tpu.memory_space<vmem>>, %arg11: memref<1x8x64xbf16, #tpu.memory_space<vmem>>, %arg12: memref<16x64xf32, #tpu.memory_space<vmem>>, %arg13: memref<8x64xf32, #tpu.memory_space<vmem>>, %arg14: memref<8x64xf32, #tpu.memory_space<vmem>>) attributes {dimension_semantics = [#tpu.dimension_semantics<parallel>, #tpu.dimension_semantics<parallel>, #tpu.dimension_semantics<arbitrary>], iteration_bounds = array<i64: 4, 1, 1>, scalar_prefetch = 0 : i64, scratch_operands = 3 : i64, tpu.core_type = #tpu.core_type<tc>, window_params = [{transform_indices = @transform_0, window_bounds = array<i64: 1, 8, 64>}, {transform_indices = @transform_1, window_bounds = array<i64: 1, 8, 64>}, {transform_indices = @transform_2, window_bounds = array<i64: 1, 8, 64>}, {transform_indices = @transform_3, window_bounds = array<i64: 1, 16, 8>}, {transform_indices = @transform_4, window_bounds = array<i64: 1, 16, 8>}, {transform_indices = @transform_5, window_bounds = array<i64: 16, 64>}, {transform_indices = @transform_6, window_bounds = array<i64: 1, 64>}, {transform_indices = @transform_7, window_bounds = array<i64: 1, 64>}, {transform_indices = @transform_8, window_bounds = array<i64: 1, 8, 64>}]} {
    %c0_i32 = arith.constant 0 : i32
    %0 = arith.cmpi eq, %arg2, %c0_i32 : i32
    %1 = arith.extui %0 : i1 to i32
    %c0_i32_0 = arith.constant 0 : i32
    %2 = arith.cmpi ne, %1, %c0_i32_0 : i32
    scf.if %2 {
      %cst_50 = arith.constant 0.000000e+00 : f32
      %202 = vector.broadcast %cst_50 : f32 to vector<16x64xf32>
      %c0_51 = arith.constant 0 : index
      %c0_52 = arith.constant 0 : index
      %203 = vector.load %arg12[%c0_51, %c0_52] : memref<16x64xf32, #tpu.memory_space<vmem>>, vector<16x64xf32>
      tpu.vector_store %arg12[%c0_51, %c0_52], %202 {strides = array<i32>} : memref<16x64xf32, #tpu.memory_space<vmem>>, vector<16x64xf32>,
    } else {
    }
    %c0 = arith.constant 0 : index
    %c0_1 = arith.constant 0 : index
    %3 = vector.load %arg8[%c0, %c0_1] : memref<16x64xf32, #tpu.memory_space<vmem>>, vector<16x64xf32>
    %c0_2 = arith.constant 0 : index
    %c0_3 = arith.constant 0 : index
    %c0_4 = arith.constant 0 : index
    %4 = vector.load %arg3[%c0_2, %c0_3, %c0_4] : memref<1x8x64xbf16, #tpu.memory_space<vmem>>, vector<1x8x64xbf16>
    %5 = vector.shape_cast %4 : vector<1x8x64xbf16> to vector<8x64xbf16>
    %6 = arith.extf %5 : vector<8x64xbf16> to vector<8x64xf32>
    %c0_5 = arith.constant 0 : index
    %c0_6 = arith.constant 0 : index
    %c0_7 = arith.constant 0 : index
    %7 = vector.load %arg5[%c0_5, %c0_6, %c0_7] : memref<1x8x64xbf16, #tpu.memory_space<vmem>>, vector<1x8x64xbf16>
    %8 = vector.shape_cast %7 : vector<1x8x64xbf16> to vector<8x64xbf16>
    %9 = arith.extf %8 : vector<8x64xbf16> to vector<8x64xf32>
    %c0_8 = arith.constant 0 : index
    %c0_9 = arith.constant 0 : index
    %c0_10 = arith.constant 0 : index
    %10 = vector.load %arg4[%c0_8, %c0_9, %c0_10] : memref<1x8x64xbf16, #tpu.memory_space<vmem>>, vector<1x8x64xbf16>
    %11 = vector.shape_cast %10 : vector<1x8x64xbf16> to vector<8x64xbf16>
    %12 = arith.extf %11 : vector<8x64xbf16> to vector<8x64xf32>
    %c0_11 = arith.constant 0 : index
    %c0_12 = arith.constant 0 : index
    %13 = vector.load %arg10[%c0_11, %c0_12] : memref<1x64xf32, #tpu.memory_space<vmem>>, vector<1x64xf32>
    %14 = vector.broadcast %13 : vector<1x64xf32> to vector<8x64xf32>
    %15 = arith.addf %12, %14 : vector<8x64xf32>
    %cst = arith.constant 2.000000e+01 : f32
    %16 = vector.broadcast %cst : f32 to vector<8x64xf32>
    %17 = arith.cmpf ogt, %15, %16 : vector<8x64xf32>
    %cst_13 = arith.constant 2.000000e+01 : f32
    %18 = vector.broadcast %cst_13 : f32 to vector<8x64xf32>
    %19 = arith.minimumf %15, %18 : vector<8x64xf32>
    %20 = math.exp %19 : vector<8x64xf32>
    %21 = math.log1p %20 : vector<8x64xf32>
    %22 = arith.select %17, %15, %21 : vector<8x64xi1>, vector<8x64xf32>
    %c0_14 = arith.constant 0 : index
    %c0_15 = arith.constant 0 : index
    %23 = vector.load %arg13[%c0_14, %c0_15] : memref<8x64xf32, #tpu.memory_space<vmem>>, vector<8x64xf32>
    tpu.vector_store %arg13[%c0_14, %c0_15], %22 {strides = array<i32>} : memref<8x64xf32, #tpu.memory_space<vmem>>, vector<8x64xf32>,
    %c0_16 = arith.constant 0 : index
    %c0_17 = arith.constant 0 : index
    %24 = vector.load %arg12[%c0_16, %c0_17] : memref<16x64xf32, #tpu.memory_space<vmem>>, vector<16x64xf32>
    %c0_i32_18 = arith.constant 0 : i32
    %c0_i32_19 = arith.constant 0 : i32
    %25 = arith.subi %c0_i32_19, %c0_i32_18 : i32
    %c8_i32 = arith.constant 8 : i32
    %26 = arith.muli %25, %c8_i32 : i32
    %27 = tpu.assume_multiple %26, 8 : i32
    %c16_i32 = arith.constant 16 : i32
    %28 = arith.muli %25, %c16_i32 : i32
    %29 = tpu.assume_multiple %28, 16 : i32
    %30 = arith.index_cast %27 : i32 to index
    %c0_20 = arith.constant 0 : index
    %31 = vector.load %arg13[%30, %c0_20] : memref<8x64xf32, #tpu.memory_space<vmem>>, vector<8x64xf32>
    %c0_21 = arith.constant 0 : index
    %32 = arith.index_cast %27 : i32 to index
    %c0_22 = arith.constant 0 : index
    %33 = vector.load %arg3[%c0_21, %32, %c0_22] : memref<1x8x64xbf16, #tpu.memory_space<vmem>>, vector<1x8x64xbf16>
    %34 = vector.shape_cast %33 : vector<1x8x64xbf16> to vector<8x64xbf16>
    %35 = arith.extf %34 : vector<8x64xbf16> to vector<8x64xf32>
    %36 = arith.mulf %31, %35 : vector<8x64xf32>
    %c0_23 = arith.constant 0 : index
    %37 = arith.index_cast %29 : i32 to index
    %c0_24 = arith.constant 0 : index
    %38 = vector.load %arg6[%c0_23, %37, %c0_24] : memref<1x16x8xbf16, #tpu.memory_space<vmem>>, vector<1x16x8xbf16>
    %39 = vector.shape_cast %38 : vector<1x16x8xbf16> to vector<16x8xbf16>
    %40 = arith.extf %39 : vector<16x8xbf16> to vector<16x8xf32>
    %c0_25 = arith.constant 0 : index
    %41 = arith.index_cast %29 : i32 to index
    %c0_26 = arith.constant 0 : index
    %42 = vector.load %arg7[%c0_25, %41, %c0_26] : memref<1x16x8xbf16, #tpu.memory_space<vmem>>, vector<1x16x8xbf16>
    %43 = vector.shape_cast %42 : vector<1x16x8xbf16> to vector<16x8xbf16>
    %44 = arith.extf %43 : vector<16x8xbf16> to vector<16x8xf32>
    %45 = vector.extract_strided_slice %31 {offsets = [7, 0], sizes = [1, 64], strides = [1, 1]} : vector<8x64xf32> to vector<1x64xf32>
    %46 = vector.broadcast %45 : vector<1x64xf32> to vector<16x64xf32>
    %47 = arith.mulf %3, %46 : vector<16x64xf32>
    %48 = math.exp %47 : vector<16x64xf32>
    %49 = vector.extract_strided_slice %40 {offsets = [0, 7], sizes = [16, 1], strides = [1, 1]} : vector<16x8xf32> to vector<16x1xf32>
    %50 = vector.extract_strided_slice %36 {offsets = [7, 0], sizes = [1, 64], strides = [1, 1]} : vector<8x64xf32> to vector<1x64xf32>
    %51 = vector.broadcast %49 : vector<16x1xf32> to vector<16x64xf32>
    %52 = vector.broadcast %50 : vector<1x64xf32> to vector<16x64xf32>
    %53 = arith.mulf %51, %52 : vector<16x64xf32>
    %54 = arith.mulf %48, %24 : vector<16x64xf32>
    %55 = arith.addf %54, %53 : vector<16x64xf32>
    %56 = vector.extract_strided_slice %44 {offsets = [0, 7], sizes = [16, 1], strides = [1, 1]} : vector<16x8xf32> to vector<16x1xf32>
    %57 = vector.broadcast %56 : vector<16x1xf32> to vector<16x64xf32>
    %58 = arith.mulf %57, %55 : vector<16x64xf32>
    %cst_27 = arith.constant dense<0.000000e+00> : vector<64xf32>
    %59 = vector.multi_reduction <add>, %58, %cst_27 [0] : vector<16x64xf32> to vector<64xf32>
    %60 = vector.shape_cast %59 : vector<64xf32> to vector<1x64xf32>
    %61 = vector.extract_strided_slice %31 {offsets = [6, 0], sizes = [1, 64], strides = [1, 1]} : vector<8x64xf32> to vector<1x64xf32>
    %62 = vector.broadcast %61 : vector<1x64xf32> to vector<16x64xf32>
    %63 = arith.mulf %3, %62 : vector<16x64xf32>
    %64 = math.exp %63 : vector<16x64xf32>
    %65 = vector.extract_strided_slice %40 {offsets = [0, 6], sizes = [16, 1], strides = [1, 1]} : vector<16x8xf32> to vector<16x1xf32>
    %66 = vector.extract_strided_slice %36 {offsets = [6, 0], sizes = [1, 64], strides = [1, 1]} : vector<8x64xf32> to vector<1x64xf32>
    %67 = vector.broadcast %65 : vector<16x1xf32> to vector<16x64xf32>
    %68 = vector.broadcast %66 : vector<1x64xf32> to vector<16x64xf32>
    %69 = arith.mulf %67, %68 : vector<16x64xf32>
    %70 = arith.mulf %64, %55 : vector<16x64xf32>
    %71 = arith.addf %70, %69 : vector<16x64xf32>
    %72 = vector.extract_strided_slice %44 {offsets = [0, 6], sizes = [16, 1], strides = [1, 1]} : vector<16x8xf32> to vector<16x1xf32>
    %73 = vector.broadcast %72 : vector<16x1xf32> to vector<16x64xf32>
    %74 = arith.mulf %73, %71 : vector<16x64xf32>
    %cst_28 = arith.constant dense<0.000000e+00> : vector<64xf32>
    %75 = vector.multi_reduction <add>, %74, %cst_28 [0] : vector<16x64xf32> to vector<64xf32>
    %76 = vector.shape_cast %75 : vector<64xf32> to vector<1x64xf32>
    %77 = vector.extract_strided_slice %31 {offsets = [5, 0], sizes = [1, 64], strides = [1, 1]} : vector<8x64xf32> to vector<1x64xf32>
    %78 = vector.broadcast %77 : vector<1x64xf32> to vector<16x64xf32>
    %79 = arith.mulf %3, %78 : vector<16x64xf32>
    %80 = math.exp %79 : vector<16x64xf32>
    %81 = vector.extract_strided_slice %40 {offsets = [0, 5], sizes = [16, 1], strides = [1, 1]} : vector<16x8xf32> to vector<16x1xf32>
    %82 = vector.extract_strided_slice %36 {offsets = [5, 0], sizes = [1, 64], strides = [1, 1]} : vector<8x64xf32> to vector<1x64xf32>
    %83 = vector.broadcast %81 : vector<16x1xf32> to vector<16x64xf32>
    %84 = vector.broadcast %82 : vector<1x64xf32> to vector<16x64xf32>
    %85 = arith.mulf %83, %84 : vector<16x64xf32>
    %86 = arith.mulf %80, %71 : vector<16x64xf32>
    %87 = arith.addf %86, %85 : vector<16x64xf32>
    %88 = vector.extract_strided_slice %44 {offsets = [0, 5], sizes = [16, 1], strides = [1, 1]} : vector<16x8xf32> to vector<16x1xf32>
    %89 = vector.broadcast %88 : vector<16x1xf32> to vector<16x64xf32>
    %90 = arith.mulf %89, %87 : vector<16x64xf32>
    %cst_29 = arith.constant dense<0.000000e+00> : vector<64xf32>
    %91 = vector.multi_reduction <add>, %90, %cst_29 [0] : vector<16x64xf32> to vector<64xf32>
    %92 = vector.shape_cast %91 : vector<64xf32> to vector<1x64xf32>
    %93 = vector.extract_strided_slice %31 {offsets = [4, 0], sizes = [1, 64], strides = [1, 1]} : vector<8x64xf32> to vector<1x64xf32>
    %94 = vector.broadcast %93 : vector<1x64xf32> to vector<16x64xf32>
    %95 = arith.mulf %3, %94 : vector<16x64xf32>
    %96 = math.exp %95 : vector<16x64xf32>
    %97 = vector.extract_strided_slice %40 {offsets = [0, 4], sizes = [16, 1], strides = [1, 1]} : vector<16x8xf32> to vector<16x1xf32>
    %98 = vector.extract_strided_slice %36 {offsets = [4, 0], sizes = [1, 64], strides = [1, 1]} : vector<8x64xf32> to vector<1x64xf32>
    %99 = vector.broadcast %97 : vector<16x1xf32> to vector<16x64xf32>
    %100 = vector.broadcast %98 : vector<1x64xf32> to vector<16x64xf32>
    %101 = arith.mulf %99, %100 : vector<16x64xf32>
    %102 = arith.mulf %96, %87 : vector<16x64xf32>
    %103 = arith.addf %102, %101 : vector<16x64xf32>
    %104 = vector.extract_strided_slice %44 {offsets = [0, 4], sizes = [16, 1], strides = [1, 1]} : vector<16x8xf32> to vector<16x1xf32>
    %105 = vector.broadcast %104 : vector<16x1xf32> to vector<16x64xf32>
    %106 = arith.mulf %105, %103 : vector<16x64xf32>
    %cst_30 = arith.constant dense<0.000000e+00> : vector<64xf32>
    %107 = vector.multi_reduction <add>, %106, %cst_30 [0] : vector<16x64xf32> to vector<64xf32>
    %108 = vector.shape_cast %107 : vector<64xf32> to vector<1x64xf32>
    %109 = vector.extract_strided_slice %31 {offsets = [3, 0], sizes = [1, 64], strides = [1, 1]} : vector<8x64xf32> to vector<1x64xf32>
    %110 = vector.broadcast %109 : vector<1x64xf32> to vector<16x64xf32>
    %111 = arith.mulf %3, %110 : vector<16x64xf32>
    %112 = math.exp %111 : vector<16x64xf32>
    %113 = vector.extract_strided_slice %40 {offsets = [0, 3], sizes = [16, 1], strides = [1, 1]} : vector<16x8xf32> to vector<16x1xf32>
    %114 = vector.extract_strided_slice %36 {offsets = [3, 0], sizes = [1, 64], strides = [1, 1]} : vector<8x64xf32> to vector<1x64xf32>
    %115 = vector.broadcast %113 : vector<16x1xf32> to vector<16x64xf32>
    %116 = vector.broadcast %114 : vector<1x64xf32> to vector<16x64xf32>
    %117 = arith.mulf %115, %116 : vector<16x64xf32>
    %118 = arith.mulf %112, %103 : vector<16x64xf32>
    %119 = arith.addf %118, %117 : vector<16x64xf32>
    %120 = vector.extract_strided_slice %44 {offsets = [0, 3], sizes = [16, 1], strides = [1, 1]} : vector<16x8xf32> to vector<16x1xf32>
    %121 = vector.broadcast %120 : vector<16x1xf32> to vector<16x64xf32>
    %122 = arith.mulf %121, %119 : vector<16x64xf32>
    %cst_31 = arith.constant dense<0.000000e+00> : vector<64xf32>
    %123 = vector.multi_reduction <add>, %122, %cst_31 [0] : vector<16x64xf32> to vector<64xf32>
    %124 = vector.shape_cast %123 : vector<64xf32> to vector<1x64xf32>
    %125 = vector.extract_strided_slice %31 {offsets = [2, 0], sizes = [1, 64], strides = [1, 1]} : vector<8x64xf32> to vector<1x64xf32>
    %126 = vector.broadcast %125 : vector<1x64xf32> to vector<16x64xf32>
    %127 = arith.mulf %3, %126 : vector<16x64xf32>
    %128 = math.exp %127 : vector<16x64xf32>
    %129 = vector.extract_strided_slice %40 {offsets = [0, 2], sizes = [16, 1], strides = [1, 1]} : vector<16x8xf32> to vector<16x1xf32>
    %130 = vector.extract_strided_slice %36 {offsets = [2, 0], sizes = [1, 64], strides = [1, 1]} : vector<8x64xf32> to vector<1x64xf32>
    %131 = vector.broadcast %129 : vector<16x1xf32> to vector<16x64xf32>
    %132 = vector.broadcast %130 : vector<1x64xf32> to vector<16x64xf32>
    %133 = arith.mulf %131, %132 : vector<16x64xf32>
    %134 = arith.mulf %128, %119 : vector<16x64xf32>
    %135 = arith.addf %134, %133 : vector<16x64xf32>
    %136 = vector.extract_strided_slice %44 {offsets = [0, 2], sizes = [16, 1], strides = [1, 1]} : vector<16x8xf32> to vector<16x1xf32>
    %137 = vector.broadcast %136 : vector<16x1xf32> to vector<16x64xf32>
    %138 = arith.mulf %137, %135 : vector<16x64xf32>
    %cst_32 = arith.constant dense<0.000000e+00> : vector<64xf32>
    %139 = vector.multi_reduction <add>, %138, %cst_32 [0] : vector<16x64xf32> to vector<64xf32>
    %140 = vector.shape_cast %139 : vector<64xf32> to vector<1x64xf32>
    %141 = vector.extract_strided_slice %31 {offsets = [1, 0], sizes = [1, 64], strides = [1, 1]} : vector<8x64xf32> to vector<1x64xf32>
    %142 = vector.broadcast %141 : vector<1x64xf32> to vector<16x64xf32>
    %143 = arith.mulf %3, %142 : vector<16x64xf32>
    %144 = math.exp %143 : vector<16x64xf32>
    %145 = vector.extract_strided_slice %40 {offsets = [0, 1], sizes = [16, 1], strides = [1, 1]} : vector<16x8xf32> to vector<16x1xf32>
    %146 = vector.extract_strided_slice %36 {offsets = [1, 0], sizes = [1, 64], strides = [1, 1]} : vector<8x64xf32> to vector<1x64xf32>
    %147 = vector.broadcast %145 : vector<16x1xf32> to vector<16x64xf32>
    %148 = vector.broadcast %146 : vector<1x64xf32> to vector<16x64xf32>
    %149 = arith.mulf %147, %148 : vector<16x64xf32>
    %150 = arith.mulf %144, %135 : vector<16x64xf32>
    %151 = arith.addf %150, %149 : vector<16x64xf32>
    %152 = vector.extract_strided_slice %44 {offsets = [0, 1], sizes = [16, 1], strides = [1, 1]} : vector<16x8xf32> to vector<16x1xf32>
    %153 = vector.broadcast %152 : vector<16x1xf32> to vector<16x64xf32>
    %154 = arith.mulf %153, %151 : vector<16x64xf32>
    %cst_33 = arith.constant dense<0.000000e+00> : vector<64xf32>
    %155 = vector.multi_reduction <add>, %154, %cst_33 [0] : vector<16x64xf32> to vector<64xf32>
    %156 = vector.shape_cast %155 : vector<64xf32> to vector<1x64xf32>
    %157 = vector.extract_strided_slice %31 {offsets = [0, 0], sizes = [1, 64], strides = [1, 1]} : vector<8x64xf32> to vector<1x64xf32>
    %158 = vector.broadcast %157 : vector<1x64xf32> to vector<16x64xf32>
    %159 = arith.mulf %3, %158 : vector<16x64xf32>
    %160 = math.exp %159 : vector<16x64xf32>
    %161 = vector.extract_strided_slice %40 {offsets = [0, 0], sizes = [16, 1], strides = [1, 1]} : vector<16x8xf32> to vector<16x1xf32>
    %162 = vector.extract_strided_slice %36 {offsets = [0, 0], sizes = [1, 64], strides = [1, 1]} : vector<8x64xf32> to vector<1x64xf32>
    %163 = vector.broadcast %161 : vector<16x1xf32> to vector<16x64xf32>
    %164 = vector.broadcast %162 : vector<1x64xf32> to vector<16x64xf32>
    %165 = arith.mulf %163, %164 : vector<16x64xf32>
    %166 = arith.mulf %160, %151 : vector<16x64xf32>
    %167 = arith.addf %166, %165 : vector<16x64xf32>
    %168 = vector.extract_strided_slice %44 {offsets = [0, 0], sizes = [16, 1], strides = [1, 1]} : vector<16x8xf32> to vector<16x1xf32>
    %169 = vector.broadcast %168 : vector<16x1xf32> to vector<16x64xf32>
    %170 = arith.mulf %169, %167 : vector<16x64xf32>
    %cst_34 = arith.constant dense<0.000000e+00> : vector<64xf32>
    %171 = vector.multi_reduction <add>, %170, %cst_34 [0] : vector<16x64xf32> to vector<64xf32>
    %172 = vector.shape_cast %171 : vector<64xf32> to vector<1x64xf32>
    %173 = tpu.concatenate %172, %156, %140, %124, %108, %92, %76, %60 in 0 : vector<1x64xf32>, vector<1x64xf32>, vector<1x64xf32>, vector<1x64xf32>, vector<1x64xf32>, vector<1x64xf32>, vector<1x64xf32>, vector<1x64xf32> -> vector<8x64xf32>
    %174 = arith.index_cast %27 : i32 to index
    %c0_35 = arith.constant 0 : index
    %175 = vector.load %arg14[%174, %c0_35] : memref<8x64xf32, #tpu.memory_space<vmem>>, vector<8x64xf32>
    tpu.vector_store %arg14[%174, %c0_35], %173 {strides = array<i32>} : memref<8x64xf32, #tpu.memory_space<vmem>>, vector<8x64xf32>,
    %c1_i32 = arith.constant 1 : i32
    %c0_36 = arith.constant 0 : index
    %c0_37 = arith.constant 0 : index
    %176 = vector.load %arg12[%c0_36, %c0_37] : memref<16x64xf32, #tpu.memory_space<vmem>>, vector<16x64xf32>
    tpu.vector_store %arg12[%c0_36, %c0_37], %167 {strides = array<i32>} : memref<16x64xf32, #tpu.memory_space<vmem>>, vector<16x64xf32>,
    %c0_38 = arith.constant 0 : index
    %c0_39 = arith.constant 0 : index
    %177 = vector.load %arg14[%c0_38, %c0_39] : memref<8x64xf32, #tpu.memory_space<vmem>>, vector<8x64xf32>
    %c0_40 = arith.constant 0 : index
    %c0_41 = arith.constant 0 : index
    %178 = vector.load %arg9[%c0_40, %c0_41] : memref<1x64xf32, #tpu.memory_space<vmem>>, vector<1x64xf32>
    %179 = vector.broadcast %178 : vector<1x64xf32> to vector<8x64xf32>
    %180 = arith.mulf %6, %179 : vector<8x64xf32>
    %181 = arith.addf %177, %180 : vector<8x64xf32>
    %182 = math.absf %9 : vector<8x64xf32>
    %cst_42 = arith.constant 0.000000e+00 : f32
    %183 = vector.broadcast %cst_42 : f32 to vector<8x64xf32>
    %184 = arith.subf %183, %182 : vector<8x64xf32>
    %185 = math.exp %184 : vector<8x64xf32>
    %cst_43 = arith.constant 0.000000e+00 : f32
    %186 = vector.broadcast %cst_43 : f32 to vector<8x64xf32>
    %187 = arith.cmpf oge, %9, %186 : vector<8x64xf32>
    %cst_44 = arith.constant 1.000000e+00 : f32
    %188 = vector.broadcast %cst_44 : f32 to vector<8x64xf32>
    %189 = arith.addf %188, %185 : vector<8x64xf32>
    %cst_45 = arith.constant 1.000000e+00 : f32
    %190 = vector.broadcast %cst_45 : f32 to vector<8x64xf32>
    %191 = arith.divf %190, %189 : vector<8x64xf32>
    %cst_46 = arith.constant 1.000000e+00 : f32
    %192 = vector.broadcast %cst_46 : f32 to vector<8x64xf32>
    %193 = arith.addf %192, %185 : vector<8x64xf32>
    %194 = arith.divf %185, %193 : vector<8x64xf32>
    %195 = arith.select %187, %191, %194 : vector<8x64xi1>, vector<8x64xf32>
    %196 = arith.mulf %9, %195 : vector<8x64xf32>
    %197 = arith.mulf %181, %196 : vector<8x64xf32>
    %198 = arith.truncf %197 : vector<8x64xf32> to vector<8x64xbf16>
    %c0_47 = arith.constant 0 : index
    %c0_48 = arith.constant 0 : index
    %c0_49 = arith.constant 0 : index
    %199 = vector.load %arg11[%c0_47, %c0_48, %c0_49] : memref<1x8x64xbf16, #tpu.memory_space<vmem>>, vector<1x8x64xbf16>
    %200 = vector.shape_cast %199 : vector<1x8x64xbf16> to vector<8x64xbf16>
    %201 = vector.shape_cast %198 : vector<8x64xbf16> to vector<1x8x64xbf16>
    tpu.vector_store %arg11[%c0_47, %c0_48, %c0_49], %201 {strides = array<i32>} : memref<1x8x64xbf16, #tpu.memory_space<vmem>>, vector<1x8x64xbf16>,
    return
  }
  func.func @transform_0(%arg0: i32, %arg1: i32, %arg2: i32) -> (i32, i32, i32) {
    %c0_i32 = arith.constant 0 : i32
    %0 = arith.subi %c0_i32, %arg2 : i32
    %c0_i32_0 = arith.constant 0 : i32
    return %arg0, %0, %arg1 : i32, i32, i32
  }
  func.func @transform_1(%arg0: i32, %arg1: i32, %arg2: i32) -> (i32, i32, i32) {
    %c0_i32 = arith.constant 0 : i32
    %0 = arith.subi %c0_i32, %arg2 : i32
    %c0_i32_0 = arith.constant 0 : i32
    return %arg0, %0, %arg1 : i32, i32, i32
  }
  func.func @transform_2(%arg0: i32, %arg1: i32, %arg2: i32) -> (i32, i32, i32) {
    %c0_i32 = arith.constant 0 : i32
    %0 = arith.subi %c0_i32, %arg2 : i32
    %c0_i32_0 = arith.constant 0 : i32
    return %arg0, %0, %arg1 : i32, i32, i32
  }
  func.func @transform_3(%arg0: i32, %arg1: i32, %arg2: i32) -> (i32, i32, i32) {
    %c0_i32 = arith.constant 0 : i32
    %0 = arith.subi %c0_i32, %arg2 : i32
    %c0_i32_0 = arith.constant 0 : i32
    %c0_i32_1 = arith.constant 0 : i32
    return %arg0, %0, %c0_i32_0 : i32, i32, i32
  }
  func.func @transform_4(%arg0: i32, %arg1: i32, %arg2: i32) -> (i32, i32, i32) {
    %c0_i32 = arith.constant 0 : i32
    %0 = arith.subi %c0_i32, %arg2 : i32
    %c0_i32_0 = arith.constant 0 : i32
    %c0_i32_1 = arith.constant 0 : i32
    return %arg0, %0, %c0_i32_0 : i32, i32, i32
  }
  func.func @transform_5(%arg0: i32, %arg1: i32, %arg2: i32) -> (i32, i32) {
    %c0_i32 = arith.constant 0 : i32
    %c0_i32_0 = arith.constant 0 : i32
    return %c0_i32, %arg1 : i32, i32
  }
  func.func @transform_6(%arg0: i32, %arg1: i32, %arg2: i32) -> (i32, i32) {
    %c0_i32 = arith.constant 0 : i32
    %c0_i32_0 = arith.constant 0 : i32
    return %c0_i32, %arg1 : i32, i32
  }
  func.func @transform_7(%arg0: i32, %arg1: i32, %arg2: i32) -> (i32, i32) {
    %c0_i32 = arith.constant 0 : i32
    %c0_i32_0 = arith.constant 0 : i32
    return %c0_i32, %arg1 : i32, i32
  }
  func.func @transform_8(%arg0: i32, %arg1: i32, %arg2: i32) -> (i32, i32, i32) {
    %c0_i32 = arith.constant 0 : i32
    %0 = arith.subi %c0_i32, %arg2 : i32
    %c0_i32_0 = arith.constant 0 : i32
    return %arg0, %0, %arg1 : i32, i32, i32
  }
}

module attributes {stable_mosaic.version = 11 : i64} {
  func.func @_causal_conv_silu_kernel(%arg0: i32, %arg1: i32, %arg2: i32, %arg3: memref<1x8x64xbf16, #tpu.memory_space<vmem>>, %arg4: memref<4x64xf32, #tpu.memory_space<vmem>>, %arg5: memref<1x64xf32, #tpu.memory_space<vmem>>, %arg6: memref<1x8x64xbf16, #tpu.memory_space<vmem>>, %arg7: memref<16x64xf32, #tpu.memory_space<vmem>>, %arg8: memref<8x64xf32, #tpu.memory_space<vmem>>) attributes {dimension_semantics = [#tpu.dimension_semantics<parallel>, #tpu.dimension_semantics<parallel>, #tpu.dimension_semantics<arbitrary>], iteration_bounds = array<i64: 4, 1, 1>, scalar_prefetch = 0 : i64, scratch_operands = 2 : i64, tpu.core_type = #tpu.core_type<tc>, window_params = [{transform_indices = @transform_0, window_bounds = array<i64: 1, 8, 64>}, {transform_indices = @transform_1, window_bounds = array<i64: 4, 64>}, {transform_indices = @transform_2, window_bounds = array<i64: 1, 64>}, {transform_indices = @transform_3, window_bounds = array<i64: 1, 8, 64>}]} {
    %c0_i32 = arith.constant 0 : i32
    %0 = arith.cmpi eq, %arg2, %c0_i32 : i32
    %1 = arith.extui %0 : i1 to i32
    %c0_i32_0 = arith.constant 0 : i32
    %2 = arith.cmpi ne, %1, %c0_i32_0 : i32
    scf.if %2 {
      %cst_30 = arith.constant 0.000000e+00 : f32
      %61 = vector.broadcast %cst_30 : f32 to vector<8x64xf32>
      %c0_31 = arith.constant 0 : index
      %c0_32 = arith.constant 0 : index
      %62 = vector.load %arg8[%c0_31, %c0_32] : memref<8x64xf32, #tpu.memory_space<vmem>>, vector<8x64xf32>
      tpu.vector_store %arg8[%c0_31, %c0_32], %61 {strides = array<i32>} : memref<8x64xf32, #tpu.memory_space<vmem>>, vector<8x64xf32>,
    } else {
    }
    %c0 = arith.constant 0 : index
    %c0_1 = arith.constant 0 : index
    %c0_2 = arith.constant 0 : index
    %3 = vector.load %arg3[%c0, %c0_1, %c0_2] : memref<1x8x64xbf16, #tpu.memory_space<vmem>>, vector<1x8x64xbf16>
    %4 = vector.shape_cast %3 : vector<1x8x64xbf16> to vector<8x64xbf16>
    %5 = arith.extf %4 : vector<8x64xbf16> to vector<8x64xf32>
    %c0_3 = arith.constant 0 : index
    %c0_4 = arith.constant 0 : index
    %6 = vector.load %arg8[%c0_3, %c0_4] : memref<8x64xf32, #tpu.memory_space<vmem>>, vector<8x64xf32>
    %c0_5 = arith.constant 0 : index
    %c0_6 = arith.constant 0 : index
    %7 = vector.load %arg7[%c0_5, %c0_6] : memref<16x64xf32, #tpu.memory_space<vmem>>, vector<8x64xf32>
    tpu.vector_store %arg7[%c0_5, %c0_6], %6 {strides = array<i32>} : memref<16x64xf32, #tpu.memory_space<vmem>>, vector<8x64xf32>,
    %c8 = arith.constant 8 : index
    %c0_7 = arith.constant 0 : index
    %8 = vector.load %arg7[%c8, %c0_7] : memref<16x64xf32, #tpu.memory_space<vmem>>, vector<8x64xf32>
    tpu.vector_store %arg7[%c8, %c0_7], %5 {strides = array<i32>} : memref<16x64xf32, #tpu.memory_space<vmem>>, vector<8x64xf32>,
    %c0_8 = arith.constant 0 : index
    %c0_9 = arith.constant 0 : index
    %9 = vector.load %arg5[%c0_8, %c0_9] : memref<1x64xf32, #tpu.memory_space<vmem>>, vector<1x64xf32>
    %c5 = arith.constant 5 : index
    %c0_10 = arith.constant 0 : index
    %10 = vector.load %arg7[%c5, %c0_10] : memref<16x64xf32, #tpu.memory_space<vmem>>, vector<8x64xf32>
    %c0_11 = arith.constant 0 : index
    %c0_12 = arith.constant 0 : index
    %11 = vector.load %arg4[%c0_11, %c0_12] : memref<4x64xf32, #tpu.memory_space<vmem>>, vector<1x64xf32>
    %12 = vector.broadcast %11 : vector<1x64xf32> to vector<8x64xf32>
    %13 = arith.mulf %10, %12 : vector<8x64xf32>
    %14 = vector.broadcast %9 : vector<1x64xf32> to vector<8x64xf32>
    %15 = arith.addf %14, %13 : vector<8x64xf32>
    %c6 = arith.constant 6 : index
    %c0_13 = arith.constant 0 : index
    %16 = vector.load %arg7[%c6, %c0_13] : memref<16x64xf32, #tpu.memory_space<vmem>>, vector<8x64xf32>
    %c1 = arith.constant 1 : index
    %c0_14 = arith.constant 0 : index
    %17 = vector.load %arg4[%c1, %c0_14] : memref<4x64xf32, #tpu.memory_space<vmem>>, vector<1x64xf32>
    %18 = vector.broadcast %17 : vector<1x64xf32> to vector<8x64xf32>
    %19 = arith.mulf %16, %18 : vector<8x64xf32>
    %20 = arith.addf %15, %19 : vector<8x64xf32>
    %c7 = arith.constant 7 : index
    %c0_15 = arith.constant 0 : index
    %21 = vector.load %arg7[%c7, %c0_15] : memref<16x64xf32, #tpu.memory_space<vmem>>, vector<8x64xf32>
    %c2 = arith.constant 2 : index
    %c0_16 = arith.constant 0 : index
    %22 = vector.load %arg4[%c2, %c0_16] : memref<4x64xf32, #tpu.memory_space<vmem>>, vector<1x64xf32>
    %23 = vector.broadcast %22 : vector<1x64xf32> to vector<8x64xf32>
    %24 = arith.mulf %21, %23 : vector<8x64xf32>
    %25 = arith.addf %20, %24 : vector<8x64xf32>
    %c8_17 = arith.constant 8 : index
    %c0_18 = arith.constant 0 : index
    %26 = vector.load %arg7[%c8_17, %c0_18] : memref<16x64xf32, #tpu.memory_space<vmem>>, vector<8x64xf32>
    %c3 = arith.constant 3 : index
    %c0_19 = arith.constant 0 : index
    %27 = vector.load %arg4[%c3, %c0_19] : memref<4x64xf32, #tpu.memory_space<vmem>>, vector<1x64xf32>
    %28 = vector.broadcast %27 : vector<1x64xf32> to vector<8x64xf32>
    %29 = arith.mulf %26, %28 : vector<8x64xf32>
    %30 = arith.addf %25, %29 : vector<8x64xf32>
    %31 = tpu.iota {dimensions = array<i32: 0>} : vector<8x1xi32>
    %c8_i32 = arith.constant 8 : i32
    %32 = arith.muli %arg2, %c8_i32 : i32
    %33 = vector.broadcast %32 : i32 to vector<8x1xi32>
    %34 = arith.addi %33, %31 : vector<8x1xi32>
    %c5_i32 = arith.constant 5 : i32
    %35 = vector.broadcast %c5_i32 : i32 to vector<8x1xi32>
    %36 = arith.cmpi slt, %34, %35 : vector<8x1xi32>
    %37 = math.absf %30 : vector<8x64xf32>
    %cst = arith.constant 0.000000e+00 : f32
    %38 = vector.broadcast %cst : f32 to vector<8x64xf32>
    %39 = arith.subf %38, %37 : vector<8x64xf32>
    %40 = math.exp %39 : vector<8x64xf32>
    %cst_20 = arith.constant 0.000000e+00 : f32
    %41 = vector.broadcast %cst_20 : f32 to vector<8x64xf32>
    %42 = arith.cmpf oge, %30, %41 : vector<8x64xf32>
    %cst_21 = arith.constant 1.000000e+00 : f32
    %43 = vector.broadcast %cst_21 : f32 to vector<8x64xf32>
    %44 = arith.addf %43, %40 : vector<8x64xf32>
    %cst_22 = arith.constant 1.000000e+00 : f32
    %45 = vector.broadcast %cst_22 : f32 to vector<8x64xf32>
    %46 = arith.divf %45, %44 : vector<8x64xf32>
    %cst_23 = arith.constant 1.000000e+00 : f32
    %47 = vector.broadcast %cst_23 : f32 to vector<8x64xf32>
    %48 = arith.addf %47, %40 : vector<8x64xf32>
    %49 = arith.divf %40, %48 : vector<8x64xf32>
    %50 = arith.select %42, %46, %49 : vector<8x64xi1>, vector<8x64xf32>
    %51 = arith.mulf %30, %50 : vector<8x64xf32>
    %cst_24 = arith.constant 0.000000e+00 : f32
    %52 = vector.shape_cast %36 : vector<8x1xi1> to vector<8x1xi1>
    %53 = vector.broadcast %52 : vector<8x1xi1> to vector<8x64xi1>
    %54 = vector.broadcast %cst_24 : f32 to vector<8x64xf32>
    %55 = arith.select %53, %51, %54 : vector<8x64xi1>, vector<8x64xf32>
    %56 = arith.truncf %55 : vector<8x64xf32> to vector<8x64xbf16>
    %c0_25 = arith.constant 0 : index
    %c0_26 = arith.constant 0 : index
    %c0_27 = arith.constant 0 : index
    %57 = vector.load %arg6[%c0_25, %c0_26, %c0_27] : memref<1x8x64xbf16, #tpu.memory_space<vmem>>, vector<1x8x64xbf16>
    %58 = vector.shape_cast %57 : vector<1x8x64xbf16> to vector<8x64xbf16>
    %59 = vector.shape_cast %56 : vector<8x64xbf16> to vector<1x8x64xbf16>
    tpu.vector_store %arg6[%c0_25, %c0_26, %c0_27], %59 {strides = array<i32>} : memref<1x8x64xbf16, #tpu.memory_space<vmem>>, vector<1x8x64xbf16>,
    %c0_28 = arith.constant 0 : index
    %c0_29 = arith.constant 0 : index
    %60 = vector.load %arg8[%c0_28, %c0_29] : memref<8x64xf32, #tpu.memory_space<vmem>>, vector<8x64xf32>
    tpu.vector_store %arg8[%c0_28, %c0_29], %5 {strides = array<i32>} : memref<8x64xf32, #tpu.memory_space<vmem>>, vector<8x64xf32>,
    return
  }
  func.func @transform_0(%arg0: i32, %arg1: i32, %arg2: i32) -> (i32, i32, i32) {
    %c0_i32 = arith.constant 0 : i32
    return %arg0, %arg2, %arg1 : i32, i32, i32
  }
  func.func @transform_1(%arg0: i32, %arg1: i32, %arg2: i32) -> (i32, i32) {
    %c0_i32 = arith.constant 0 : i32
    %c0_i32_0 = arith.constant 0 : i32
    return %c0_i32, %arg1 : i32, i32
  }
  func.func @transform_2(%arg0: i32, %arg1: i32, %arg2: i32) -> (i32, i32) {
    %c0_i32 = arith.constant 0 : i32
    %c0_i32_0 = arith.constant 0 : i32
    return %c0_i32, %arg1 : i32, i32
  }
  func.func @transform_3(%arg0: i32, %arg1: i32, %arg2: i32) -> (i32, i32, i32) {
    %c0_i32 = arith.constant 0 : i32
    return %arg0, %arg2, %arg1 : i32, i32, i32
  }
}

module attributes {stable_mosaic.version = 11 : i64} {
  func.func @_selective_scan_kernel(%arg0: i32, %arg1: i32, %arg2: i32, %arg3: memref<1x8x64xbf16, #tpu.memory_space<vmem>>, %arg4: memref<1x8x64xbf16, #tpu.memory_space<vmem>>, %arg5: memref<1x8x64xbf16, #tpu.memory_space<vmem>>, %arg6: memref<1x16x8xbf16, #tpu.memory_space<vmem>>, %arg7: memref<1x16x8xbf16, #tpu.memory_space<vmem>>, %arg8: memref<16x64xf32, #tpu.memory_space<vmem>>, %arg9: memref<1x64xf32, #tpu.memory_space<vmem>>, %arg10: memref<1x64xf32, #tpu.memory_space<vmem>>, %arg11: memref<1x8x64xbf16, #tpu.memory_space<vmem>>, %arg12: memref<16x64xf32, #tpu.memory_space<vmem>>, %arg13: memref<8x64xf32, #tpu.memory_space<vmem>>, %arg14: memref<8x64xf32, #tpu.memory_space<vmem>>) attributes {dimension_semantics = [#tpu.dimension_semantics<parallel>, #tpu.dimension_semantics<parallel>, #tpu.dimension_semantics<arbitrary>], iteration_bounds = array<i64: 4, 1, 1>, scalar_prefetch = 0 : i64, scratch_operands = 3 : i64, tpu.core_type = #tpu.core_type<tc>, window_params = [{transform_indices = @transform_0, window_bounds = array<i64: 1, 8, 64>}, {transform_indices = @transform_1, window_bounds = array<i64: 1, 8, 64>}, {transform_indices = @transform_2, window_bounds = array<i64: 1, 8, 64>}, {transform_indices = @transform_3, window_bounds = array<i64: 1, 16, 8>}, {transform_indices = @transform_4, window_bounds = array<i64: 1, 16, 8>}, {transform_indices = @transform_5, window_bounds = array<i64: 16, 64>}, {transform_indices = @transform_6, window_bounds = array<i64: 1, 64>}, {transform_indices = @transform_7, window_bounds = array<i64: 1, 64>}, {transform_indices = @transform_8, window_bounds = array<i64: 1, 8, 64>}]} {
    %c0_i32 = arith.constant 0 : i32
    %0 = arith.cmpi eq, %arg2, %c0_i32 : i32
    %1 = arith.extui %0 : i1 to i32
    %c0_i32_0 = arith.constant 0 : i32
    %2 = arith.cmpi ne, %1, %c0_i32_0 : i32
    scf.if %2 {
      %cst_49 = arith.constant 0.000000e+00 : f32
      %201 = vector.broadcast %cst_49 : f32 to vector<16x64xf32>
      %c0_50 = arith.constant 0 : index
      %c0_51 = arith.constant 0 : index
      %202 = vector.load %arg12[%c0_50, %c0_51] : memref<16x64xf32, #tpu.memory_space<vmem>>, vector<16x64xf32>
      tpu.vector_store %arg12[%c0_50, %c0_51], %201 {strides = array<i32>} : memref<16x64xf32, #tpu.memory_space<vmem>>, vector<16x64xf32>,
    } else {
    }
    %c0 = arith.constant 0 : index
    %c0_1 = arith.constant 0 : index
    %3 = vector.load %arg8[%c0, %c0_1] : memref<16x64xf32, #tpu.memory_space<vmem>>, vector<16x64xf32>
    %c0_2 = arith.constant 0 : index
    %c0_3 = arith.constant 0 : index
    %c0_4 = arith.constant 0 : index
    %4 = vector.load %arg3[%c0_2, %c0_3, %c0_4] : memref<1x8x64xbf16, #tpu.memory_space<vmem>>, vector<1x8x64xbf16>
    %5 = vector.shape_cast %4 : vector<1x8x64xbf16> to vector<8x64xbf16>
    %6 = arith.extf %5 : vector<8x64xbf16> to vector<8x64xf32>
    %c0_5 = arith.constant 0 : index
    %c0_6 = arith.constant 0 : index
    %c0_7 = arith.constant 0 : index
    %7 = vector.load %arg5[%c0_5, %c0_6, %c0_7] : memref<1x8x64xbf16, #tpu.memory_space<vmem>>, vector<1x8x64xbf16>
    %8 = vector.shape_cast %7 : vector<1x8x64xbf16> to vector<8x64xbf16>
    %9 = arith.extf %8 : vector<8x64xbf16> to vector<8x64xf32>
    %c0_8 = arith.constant 0 : index
    %c0_9 = arith.constant 0 : index
    %c0_10 = arith.constant 0 : index
    %10 = vector.load %arg4[%c0_8, %c0_9, %c0_10] : memref<1x8x64xbf16, #tpu.memory_space<vmem>>, vector<1x8x64xbf16>
    %11 = vector.shape_cast %10 : vector<1x8x64xbf16> to vector<8x64xbf16>
    %12 = arith.extf %11 : vector<8x64xbf16> to vector<8x64xf32>
    %c0_11 = arith.constant 0 : index
    %c0_12 = arith.constant 0 : index
    %13 = vector.load %arg10[%c0_11, %c0_12] : memref<1x64xf32, #tpu.memory_space<vmem>>, vector<1x64xf32>
    %14 = vector.broadcast %13 : vector<1x64xf32> to vector<8x64xf32>
    %15 = arith.addf %12, %14 : vector<8x64xf32>
    %cst = arith.constant 2.000000e+01 : f32
    %16 = vector.broadcast %cst : f32 to vector<8x64xf32>
    %17 = arith.cmpf ogt, %15, %16 : vector<8x64xf32>
    %cst_13 = arith.constant 2.000000e+01 : f32
    %18 = vector.broadcast %cst_13 : f32 to vector<8x64xf32>
    %19 = arith.minimumf %15, %18 : vector<8x64xf32>
    %20 = math.exp %19 : vector<8x64xf32>
    %21 = math.log1p %20 : vector<8x64xf32>
    %22 = arith.select %17, %15, %21 : vector<8x64xi1>, vector<8x64xf32>
    %c0_14 = arith.constant 0 : index
    %c0_15 = arith.constant 0 : index
    %23 = vector.load %arg13[%c0_14, %c0_15] : memref<8x64xf32, #tpu.memory_space<vmem>>, vector<8x64xf32>
    tpu.vector_store %arg13[%c0_14, %c0_15], %22 {strides = array<i32>} : memref<8x64xf32, #tpu.memory_space<vmem>>, vector<8x64xf32>,
    %c0_16 = arith.constant 0 : index
    %c0_17 = arith.constant 0 : index
    %24 = vector.load %arg12[%c0_16, %c0_17] : memref<16x64xf32, #tpu.memory_space<vmem>>, vector<16x64xf32>
    %c0_i32_18 = arith.constant 0 : i32
    %c8_i32 = arith.constant 8 : i32
    %25 = arith.muli %c0_i32_18, %c8_i32 : i32
    %26 = tpu.assume_multiple %25, 8 : i32
    %c16_i32 = arith.constant 16 : i32
    %27 = arith.muli %c0_i32_18, %c16_i32 : i32
    %28 = tpu.assume_multiple %27, 16 : i32
    %29 = arith.index_cast %26 : i32 to index
    %c0_19 = arith.constant 0 : index
    %30 = vector.load %arg13[%29, %c0_19] : memref<8x64xf32, #tpu.memory_space<vmem>>, vector<8x64xf32>
    %c0_20 = arith.constant 0 : index
    %31 = arith.index_cast %26 : i32 to index
    %c0_21 = arith.constant 0 : index
    %32 = vector.load %arg3[%c0_20, %31, %c0_21] : memref<1x8x64xbf16, #tpu.memory_space<vmem>>, vector<1x8x64xbf16>
    %33 = vector.shape_cast %32 : vector<1x8x64xbf16> to vector<8x64xbf16>
    %34 = arith.extf %33 : vector<8x64xbf16> to vector<8x64xf32>
    %35 = arith.mulf %30, %34 : vector<8x64xf32>
    %c0_22 = arith.constant 0 : index
    %36 = arith.index_cast %28 : i32 to index
    %c0_23 = arith.constant 0 : index
    %37 = vector.load %arg6[%c0_22, %36, %c0_23] : memref<1x16x8xbf16, #tpu.memory_space<vmem>>, vector<1x16x8xbf16>
    %38 = vector.shape_cast %37 : vector<1x16x8xbf16> to vector<16x8xbf16>
    %39 = arith.extf %38 : vector<16x8xbf16> to vector<16x8xf32>
    %c0_24 = arith.constant 0 : index
    %40 = arith.index_cast %28 : i32 to index
    %c0_25 = arith.constant 0 : index
    %41 = vector.load %arg7[%c0_24, %40, %c0_25] : memref<1x16x8xbf16, #tpu.memory_space<vmem>>, vector<1x16x8xbf16>
    %42 = vector.shape_cast %41 : vector<1x16x8xbf16> to vector<16x8xbf16>
    %43 = arith.extf %42 : vector<16x8xbf16> to vector<16x8xf32>
    %44 = vector.extract_strided_slice %30 {offsets = [0, 0], sizes = [1, 64], strides = [1, 1]} : vector<8x64xf32> to vector<1x64xf32>
    %45 = vector.broadcast %44 : vector<1x64xf32> to vector<16x64xf32>
    %46 = arith.mulf %3, %45 : vector<16x64xf32>
    %47 = math.exp %46 : vector<16x64xf32>
    %48 = vector.extract_strided_slice %39 {offsets = [0, 0], sizes = [16, 1], strides = [1, 1]} : vector<16x8xf32> to vector<16x1xf32>
    %49 = vector.extract_strided_slice %35 {offsets = [0, 0], sizes = [1, 64], strides = [1, 1]} : vector<8x64xf32> to vector<1x64xf32>
    %50 = vector.broadcast %48 : vector<16x1xf32> to vector<16x64xf32>
    %51 = vector.broadcast %49 : vector<1x64xf32> to vector<16x64xf32>
    %52 = arith.mulf %50, %51 : vector<16x64xf32>
    %53 = arith.mulf %47, %24 : vector<16x64xf32>
    %54 = arith.addf %53, %52 : vector<16x64xf32>
    %55 = vector.extract_strided_slice %43 {offsets = [0, 0], sizes = [16, 1], strides = [1, 1]} : vector<16x8xf32> to vector<16x1xf32>
    %56 = vector.broadcast %55 : vector<16x1xf32> to vector<16x64xf32>
    %57 = arith.mulf %56, %54 : vector<16x64xf32>
    %cst_26 = arith.constant dense<0.000000e+00> : vector<64xf32>
    %58 = vector.multi_reduction <add>, %57, %cst_26 [0] : vector<16x64xf32> to vector<64xf32>
    %59 = vector.shape_cast %58 : vector<64xf32> to vector<1x64xf32>
    %60 = vector.extract_strided_slice %30 {offsets = [1, 0], sizes = [1, 64], strides = [1, 1]} : vector<8x64xf32> to vector<1x64xf32>
    %61 = vector.broadcast %60 : vector<1x64xf32> to vector<16x64xf32>
    %62 = arith.mulf %3, %61 : vector<16x64xf32>
    %63 = math.exp %62 : vector<16x64xf32>
    %64 = vector.extract_strided_slice %39 {offsets = [0, 1], sizes = [16, 1], strides = [1, 1]} : vector<16x8xf32> to vector<16x1xf32>
    %65 = vector.extract_strided_slice %35 {offsets = [1, 0], sizes = [1, 64], strides = [1, 1]} : vector<8x64xf32> to vector<1x64xf32>
    %66 = vector.broadcast %64 : vector<16x1xf32> to vector<16x64xf32>
    %67 = vector.broadcast %65 : vector<1x64xf32> to vector<16x64xf32>
    %68 = arith.mulf %66, %67 : vector<16x64xf32>
    %69 = arith.mulf %63, %54 : vector<16x64xf32>
    %70 = arith.addf %69, %68 : vector<16x64xf32>
    %71 = vector.extract_strided_slice %43 {offsets = [0, 1], sizes = [16, 1], strides = [1, 1]} : vector<16x8xf32> to vector<16x1xf32>
    %72 = vector.broadcast %71 : vector<16x1xf32> to vector<16x64xf32>
    %73 = arith.mulf %72, %70 : vector<16x64xf32>
    %cst_27 = arith.constant dense<0.000000e+00> : vector<64xf32>
    %74 = vector.multi_reduction <add>, %73, %cst_27 [0] : vector<16x64xf32> to vector<64xf32>
    %75 = vector.shape_cast %74 : vector<64xf32> to vector<1x64xf32>
    %76 = vector.extract_strided_slice %30 {offsets = [2, 0], sizes = [1, 64], strides = [1, 1]} : vector<8x64xf32> to vector<1x64xf32>
    %77 = vector.broadcast %76 : vector<1x64xf32> to vector<16x64xf32>
    %78 = arith.mulf %3, %77 : vector<16x64xf32>
    %79 = math.exp %78 : vector<16x64xf32>
    %80 = vector.extract_strided_slice %39 {offsets = [0, 2], sizes = [16, 1], strides = [1, 1]} : vector<16x8xf32> to vector<16x1xf32>
    %81 = vector.extract_strided_slice %35 {offsets = [2, 0], sizes = [1, 64], strides = [1, 1]} : vector<8x64xf32> to vector<1x64xf32>
    %82 = vector.broadcast %80 : vector<16x1xf32> to vector<16x64xf32>
    %83 = vector.broadcast %81 : vector<1x64xf32> to vector<16x64xf32>
    %84 = arith.mulf %82, %83 : vector<16x64xf32>
    %85 = arith.mulf %79, %70 : vector<16x64xf32>
    %86 = arith.addf %85, %84 : vector<16x64xf32>
    %87 = vector.extract_strided_slice %43 {offsets = [0, 2], sizes = [16, 1], strides = [1, 1]} : vector<16x8xf32> to vector<16x1xf32>
    %88 = vector.broadcast %87 : vector<16x1xf32> to vector<16x64xf32>
    %89 = arith.mulf %88, %86 : vector<16x64xf32>
    %cst_28 = arith.constant dense<0.000000e+00> : vector<64xf32>
    %90 = vector.multi_reduction <add>, %89, %cst_28 [0] : vector<16x64xf32> to vector<64xf32>
    %91 = vector.shape_cast %90 : vector<64xf32> to vector<1x64xf32>
    %92 = vector.extract_strided_slice %30 {offsets = [3, 0], sizes = [1, 64], strides = [1, 1]} : vector<8x64xf32> to vector<1x64xf32>
    %93 = vector.broadcast %92 : vector<1x64xf32> to vector<16x64xf32>
    %94 = arith.mulf %3, %93 : vector<16x64xf32>
    %95 = math.exp %94 : vector<16x64xf32>
    %96 = vector.extract_strided_slice %39 {offsets = [0, 3], sizes = [16, 1], strides = [1, 1]} : vector<16x8xf32> to vector<16x1xf32>
    %97 = vector.extract_strided_slice %35 {offsets = [3, 0], sizes = [1, 64], strides = [1, 1]} : vector<8x64xf32> to vector<1x64xf32>
    %98 = vector.broadcast %96 : vector<16x1xf32> to vector<16x64xf32>
    %99 = vector.broadcast %97 : vector<1x64xf32> to vector<16x64xf32>
    %100 = arith.mulf %98, %99 : vector<16x64xf32>
    %101 = arith.mulf %95, %86 : vector<16x64xf32>
    %102 = arith.addf %101, %100 : vector<16x64xf32>
    %103 = vector.extract_strided_slice %43 {offsets = [0, 3], sizes = [16, 1], strides = [1, 1]} : vector<16x8xf32> to vector<16x1xf32>
    %104 = vector.broadcast %103 : vector<16x1xf32> to vector<16x64xf32>
    %105 = arith.mulf %104, %102 : vector<16x64xf32>
    %cst_29 = arith.constant dense<0.000000e+00> : vector<64xf32>
    %106 = vector.multi_reduction <add>, %105, %cst_29 [0] : vector<16x64xf32> to vector<64xf32>
    %107 = vector.shape_cast %106 : vector<64xf32> to vector<1x64xf32>
    %108 = vector.extract_strided_slice %30 {offsets = [4, 0], sizes = [1, 64], strides = [1, 1]} : vector<8x64xf32> to vector<1x64xf32>
    %109 = vector.broadcast %108 : vector<1x64xf32> to vector<16x64xf32>
    %110 = arith.mulf %3, %109 : vector<16x64xf32>
    %111 = math.exp %110 : vector<16x64xf32>
    %112 = vector.extract_strided_slice %39 {offsets = [0, 4], sizes = [16, 1], strides = [1, 1]} : vector<16x8xf32> to vector<16x1xf32>
    %113 = vector.extract_strided_slice %35 {offsets = [4, 0], sizes = [1, 64], strides = [1, 1]} : vector<8x64xf32> to vector<1x64xf32>
    %114 = vector.broadcast %112 : vector<16x1xf32> to vector<16x64xf32>
    %115 = vector.broadcast %113 : vector<1x64xf32> to vector<16x64xf32>
    %116 = arith.mulf %114, %115 : vector<16x64xf32>
    %117 = arith.mulf %111, %102 : vector<16x64xf32>
    %118 = arith.addf %117, %116 : vector<16x64xf32>
    %119 = vector.extract_strided_slice %43 {offsets = [0, 4], sizes = [16, 1], strides = [1, 1]} : vector<16x8xf32> to vector<16x1xf32>
    %120 = vector.broadcast %119 : vector<16x1xf32> to vector<16x64xf32>
    %121 = arith.mulf %120, %118 : vector<16x64xf32>
    %cst_30 = arith.constant dense<0.000000e+00> : vector<64xf32>
    %122 = vector.multi_reduction <add>, %121, %cst_30 [0] : vector<16x64xf32> to vector<64xf32>
    %123 = vector.shape_cast %122 : vector<64xf32> to vector<1x64xf32>
    %124 = vector.extract_strided_slice %30 {offsets = [5, 0], sizes = [1, 64], strides = [1, 1]} : vector<8x64xf32> to vector<1x64xf32>
    %125 = vector.broadcast %124 : vector<1x64xf32> to vector<16x64xf32>
    %126 = arith.mulf %3, %125 : vector<16x64xf32>
    %127 = math.exp %126 : vector<16x64xf32>
    %128 = vector.extract_strided_slice %39 {offsets = [0, 5], sizes = [16, 1], strides = [1, 1]} : vector<16x8xf32> to vector<16x1xf32>
    %129 = vector.extract_strided_slice %35 {offsets = [5, 0], sizes = [1, 64], strides = [1, 1]} : vector<8x64xf32> to vector<1x64xf32>
    %130 = vector.broadcast %128 : vector<16x1xf32> to vector<16x64xf32>
    %131 = vector.broadcast %129 : vector<1x64xf32> to vector<16x64xf32>
    %132 = arith.mulf %130, %131 : vector<16x64xf32>
    %133 = arith.mulf %127, %118 : vector<16x64xf32>
    %134 = arith.addf %133, %132 : vector<16x64xf32>
    %135 = vector.extract_strided_slice %43 {offsets = [0, 5], sizes = [16, 1], strides = [1, 1]} : vector<16x8xf32> to vector<16x1xf32>
    %136 = vector.broadcast %135 : vector<16x1xf32> to vector<16x64xf32>
    %137 = arith.mulf %136, %134 : vector<16x64xf32>
    %cst_31 = arith.constant dense<0.000000e+00> : vector<64xf32>
    %138 = vector.multi_reduction <add>, %137, %cst_31 [0] : vector<16x64xf32> to vector<64xf32>
    %139 = vector.shape_cast %138 : vector<64xf32> to vector<1x64xf32>
    %140 = vector.extract_strided_slice %30 {offsets = [6, 0], sizes = [1, 64], strides = [1, 1]} : vector<8x64xf32> to vector<1x64xf32>
    %141 = vector.broadcast %140 : vector<1x64xf32> to vector<16x64xf32>
    %142 = arith.mulf %3, %141 : vector<16x64xf32>
    %143 = math.exp %142 : vector<16x64xf32>
    %144 = vector.extract_strided_slice %39 {offsets = [0, 6], sizes = [16, 1], strides = [1, 1]} : vector<16x8xf32> to vector<16x1xf32>
    %145 = vector.extract_strided_slice %35 {offsets = [6, 0], sizes = [1, 64], strides = [1, 1]} : vector<8x64xf32> to vector<1x64xf32>
    %146 = vector.broadcast %144 : vector<16x1xf32> to vector<16x64xf32>
    %147 = vector.broadcast %145 : vector<1x64xf32> to vector<16x64xf32>
    %148 = arith.mulf %146, %147 : vector<16x64xf32>
    %149 = arith.mulf %143, %134 : vector<16x64xf32>
    %150 = arith.addf %149, %148 : vector<16x64xf32>
    %151 = vector.extract_strided_slice %43 {offsets = [0, 6], sizes = [16, 1], strides = [1, 1]} : vector<16x8xf32> to vector<16x1xf32>
    %152 = vector.broadcast %151 : vector<16x1xf32> to vector<16x64xf32>
    %153 = arith.mulf %152, %150 : vector<16x64xf32>
    %cst_32 = arith.constant dense<0.000000e+00> : vector<64xf32>
    %154 = vector.multi_reduction <add>, %153, %cst_32 [0] : vector<16x64xf32> to vector<64xf32>
    %155 = vector.shape_cast %154 : vector<64xf32> to vector<1x64xf32>
    %156 = vector.extract_strided_slice %30 {offsets = [7, 0], sizes = [1, 64], strides = [1, 1]} : vector<8x64xf32> to vector<1x64xf32>
    %157 = vector.broadcast %156 : vector<1x64xf32> to vector<16x64xf32>
    %158 = arith.mulf %3, %157 : vector<16x64xf32>
    %159 = math.exp %158 : vector<16x64xf32>
    %160 = vector.extract_strided_slice %39 {offsets = [0, 7], sizes = [16, 1], strides = [1, 1]} : vector<16x8xf32> to vector<16x1xf32>
    %161 = vector.extract_strided_slice %35 {offsets = [7, 0], sizes = [1, 64], strides = [1, 1]} : vector<8x64xf32> to vector<1x64xf32>
    %162 = vector.broadcast %160 : vector<16x1xf32> to vector<16x64xf32>
    %163 = vector.broadcast %161 : vector<1x64xf32> to vector<16x64xf32>
    %164 = arith.mulf %162, %163 : vector<16x64xf32>
    %165 = arith.mulf %159, %150 : vector<16x64xf32>
    %166 = arith.addf %165, %164 : vector<16x64xf32>
    %167 = vector.extract_strided_slice %43 {offsets = [0, 7], sizes = [16, 1], strides = [1, 1]} : vector<16x8xf32> to vector<16x1xf32>
    %168 = vector.broadcast %167 : vector<16x1xf32> to vector<16x64xf32>
    %169 = arith.mulf %168, %166 : vector<16x64xf32>
    %cst_33 = arith.constant dense<0.000000e+00> : vector<64xf32>
    %170 = vector.multi_reduction <add>, %169, %cst_33 [0] : vector<16x64xf32> to vector<64xf32>
    %171 = vector.shape_cast %170 : vector<64xf32> to vector<1x64xf32>
    %172 = tpu.concatenate %59, %75, %91, %107, %123, %139, %155, %171 in 0 : vector<1x64xf32>, vector<1x64xf32>, vector<1x64xf32>, vector<1x64xf32>, vector<1x64xf32>, vector<1x64xf32>, vector<1x64xf32>, vector<1x64xf32> -> vector<8x64xf32>
    %173 = arith.index_cast %26 : i32 to index
    %c0_34 = arith.constant 0 : index
    %174 = vector.load %arg14[%173, %c0_34] : memref<8x64xf32, #tpu.memory_space<vmem>>, vector<8x64xf32>
    tpu.vector_store %arg14[%173, %c0_34], %172 {strides = array<i32>} : memref<8x64xf32, #tpu.memory_space<vmem>>, vector<8x64xf32>,
    %c1_i32 = arith.constant 1 : i32
    %c0_35 = arith.constant 0 : index
    %c0_36 = arith.constant 0 : index
    %175 = vector.load %arg12[%c0_35, %c0_36] : memref<16x64xf32, #tpu.memory_space<vmem>>, vector<16x64xf32>
    tpu.vector_store %arg12[%c0_35, %c0_36], %166 {strides = array<i32>} : memref<16x64xf32, #tpu.memory_space<vmem>>, vector<16x64xf32>,
    %c0_37 = arith.constant 0 : index
    %c0_38 = arith.constant 0 : index
    %176 = vector.load %arg14[%c0_37, %c0_38] : memref<8x64xf32, #tpu.memory_space<vmem>>, vector<8x64xf32>
    %c0_39 = arith.constant 0 : index
    %c0_40 = arith.constant 0 : index
    %177 = vector.load %arg9[%c0_39, %c0_40] : memref<1x64xf32, #tpu.memory_space<vmem>>, vector<1x64xf32>
    %178 = vector.broadcast %177 : vector<1x64xf32> to vector<8x64xf32>
    %179 = arith.mulf %6, %178 : vector<8x64xf32>
    %180 = arith.addf %176, %179 : vector<8x64xf32>
    %181 = math.absf %9 : vector<8x64xf32>
    %cst_41 = arith.constant 0.000000e+00 : f32
    %182 = vector.broadcast %cst_41 : f32 to vector<8x64xf32>
    %183 = arith.subf %182, %181 : vector<8x64xf32>
    %184 = math.exp %183 : vector<8x64xf32>
    %cst_42 = arith.constant 0.000000e+00 : f32
    %185 = vector.broadcast %cst_42 : f32 to vector<8x64xf32>
    %186 = arith.cmpf oge, %9, %185 : vector<8x64xf32>
    %cst_43 = arith.constant 1.000000e+00 : f32
    %187 = vector.broadcast %cst_43 : f32 to vector<8x64xf32>
    %188 = arith.addf %187, %184 : vector<8x64xf32>
    %cst_44 = arith.constant 1.000000e+00 : f32
    %189 = vector.broadcast %cst_44 : f32 to vector<8x64xf32>
    %190 = arith.divf %189, %188 : vector<8x64xf32>
    %cst_45 = arith.constant 1.000000e+00 : f32
    %191 = vector.broadcast %cst_45 : f32 to vector<8x64xf32>
    %192 = arith.addf %191, %184 : vector<8x64xf32>
    %193 = arith.divf %184, %192 : vector<8x64xf32>
    %194 = arith.select %186, %190, %193 : vector<8x64xi1>, vector<8x64xf32>
    %195 = arith.mulf %9, %194 : vector<8x64xf32>
    %196 = arith.mulf %180, %195 : vector<8x64xf32>
    %197 = arith.truncf %196 : vector<8x64xf32> to vector<8x64xbf16>
    %c0_46 = arith.constant 0 : index
    %c0_47 = arith.constant 0 : index
    %c0_48 = arith.constant 0 : index
    %198 = vector.load %arg11[%c0_46, %c0_47, %c0_48] : memref<1x8x64xbf16, #tpu.memory_space<vmem>>, vector<1x8x64xbf16>
    %199 = vector.shape_cast %198 : vector<1x8x64xbf16> to vector<8x64xbf16>
    %200 = vector.shape_cast %197 : vector<8x64xbf16> to vector<1x8x64xbf16>
    tpu.vector_store %arg11[%c0_46, %c0_47, %c0_48], %200 {strides = array<i32>} : memref<1x8x64xbf16, #tpu.memory_space<vmem>>, vector<1x8x64xbf16>,
    return
  }
  func.func @transform_0(%arg0: i32, %arg1: i32, %arg2: i32) -> (i32, i32, i32) {
    %c0_i32 = arith.constant 0 : i32
    return %arg0, %arg2, %arg1 : i32, i32, i32
  }
  func.func @transform_1(%arg0: i32, %arg1: i32, %arg2: i32) -> (i32, i32, i32) {
    %c0_i32 = arith.constant 0 : i32
    return %arg0, %arg2, %arg1 : i32, i32, i32
  }
  func.func @transform_2(%arg0: i32, %arg1: i32, %arg2: i32) -> (i32, i32, i32) {
    %c0_i32 = arith.constant 0 : i32
    return %arg0, %arg2, %arg1 : i32, i32, i32
  }
  func.func @transform_3(%arg0: i32, %arg1: i32, %arg2: i32) -> (i32, i32, i32) {
    %c0_i32 = arith.constant 0 : i32
    %c0_i32_0 = arith.constant 0 : i32
    return %arg0, %arg2, %c0_i32 : i32, i32, i32
  }
  func.func @transform_4(%arg0: i32, %arg1: i32, %arg2: i32) -> (i32, i32, i32) {
    %c0_i32 = arith.constant 0 : i32
    %c0_i32_0 = arith.constant 0 : i32
    return %arg0, %arg2, %c0_i32 : i32, i32, i32
  }
  func.func @transform_5(%arg0: i32, %arg1: i32, %arg2: i32) -> (i32, i32) {
    %c0_i32 = arith.constant 0 : i32
    %c0_i32_0 = arith.constant 0 : i32
    return %c0_i32, %arg1 : i32, i32
  }
  func.func @transform_6(%arg0: i32, %arg1: i32, %arg2: i32) -> (i32, i32) {
    %c0_i32 = arith.constant 0 : i32
    %c0_i32_0 = arith.constant 0 : i32
    return %c0_i32, %arg1 : i32, i32
  }
  func.func @transform_7(%arg0: i32, %arg1: i32, %arg2: i32) -> (i32, i32) {
    %c0_i32 = arith.constant 0 : i32
    %c0_i32_0 = arith.constant 0 : i32
    return %c0_i32, %arg1 : i32, i32
  }
  func.func @transform_8(%arg0: i32, %arg1: i32, %arg2: i32) -> (i32, i32, i32) {
    %c0_i32 = arith.constant 0 : i32
    return %arg0, %arg2, %arg1 : i32, i32, i32
  }
}

module attributes {stable_mosaic.version = 11 : i64} {
  func.func @_matmul_bias_kernel(%arg0: i32, %arg1: i32, %arg2: i32, %arg3: memref<20x64xbf16, #tpu.memory_space<vmem>>, %arg4: memref<64x32xbf16, #tpu.memory_space<vmem>>, %arg5: memref<1x32xf32, #tpu.memory_space<vmem>>, %arg6: memref<20x32xf32, #tpu.memory_space<vmem>>, %arg7: memref<20x32xf32, #tpu.memory_space<vmem>>) attributes {dimension_semantics = [#tpu.dimension_semantics<parallel>, #tpu.dimension_semantics<parallel>, #tpu.dimension_semantics<arbitrary>], iteration_bounds = array<i64: 1, 1, 1>, scalar_prefetch = 0 : i64, scratch_operands = 1 : i64, tpu.core_type = #tpu.core_type<tc>, window_params = [{transform_indices = @transform_0, window_bounds = array<i64: 20, 64>}, {transform_indices = @transform_1, window_bounds = array<i64: 64, 32>}, {transform_indices = @transform_2, window_bounds = array<i64: 1, 32>}, {transform_indices = @transform_3, window_bounds = array<i64: 20, 32>}]} {
    %c0_i32 = arith.constant 0 : i32
    %0 = arith.cmpi eq, %arg2, %c0_i32 : i32
    %1 = arith.extui %0 : i1 to i32
    %c0_i32_0 = arith.constant 0 : i32
    %2 = arith.cmpi ne, %1, %c0_i32_0 : i32
    scf.if %2 {
      %cst_10 = arith.constant 0.000000e+00 : f32
      %12 = vector.broadcast %cst_10 : f32 to vector<20x32xf32>
      %c0_11 = arith.constant 0 : index
      %c0_12 = arith.constant 0 : index
      %13 = vector.load %arg7[%c0_11, %c0_12] : memref<20x32xf32, #tpu.memory_space<vmem>>, vector<20x32xf32>
      tpu.vector_store %arg7[%c0_11, %c0_12], %12 {strides = array<i32>} : memref<20x32xf32, #tpu.memory_space<vmem>>, vector<20x32xf32>,
    } else {
    }
    %c0 = arith.constant 0 : index
    %c0_1 = arith.constant 0 : index
    %3 = vector.load %arg7[%c0, %c0_1] : memref<20x32xf32, #tpu.memory_space<vmem>>, vector<20x32xf32>
    %c0_2 = arith.constant 0 : index
    %c0_3 = arith.constant 0 : index
    %4 = vector.load %arg3[%c0_2, %c0_3] : memref<20x64xbf16, #tpu.memory_space<vmem>>, vector<20x64xbf16>
    %c0_4 = arith.constant 0 : index
    %c0_5 = arith.constant 0 : index
    %5 = vector.load %arg4[%c0_4, %c0_5] : memref<64x32xbf16, #tpu.memory_space<vmem>>, vector<64x32xbf16>
    %cst = arith.constant dense<0.000000e+00> : vector<20x32xf32>
    %6 = tpu.matmul %4, %5, %cst {dimension_numbers = #tpu.dot_dimension_numbers<[1], [0], [0], [1], [0, 0, 1, 1], [], []>} : vector<20x64xbf16>, vector<64x32xbf16>, vector<20x32xf32> -> vector<20x32xf32>
    %7 = arith.addf %3, %6 : vector<20x32xf32>
    %c0_6 = arith.constant 0 : index
    %c0_7 = arith.constant 0 : index
    %8 = vector.load %arg7[%c0_6, %c0_7] : memref<20x32xf32, #tpu.memory_space<vmem>>, vector<20x32xf32>
    tpu.vector_store %arg7[%c0_6, %c0_7], %7 {strides = array<i32>} : memref<20x32xf32, #tpu.memory_space<vmem>>, vector<20x32xf32>,
    %c0_i32_8 = arith.constant 0 : i32
    %9 = arith.cmpi eq, %arg2, %c0_i32_8 : i32
    %10 = arith.extui %9 : i1 to i32
    %c0_i32_9 = arith.constant 0 : i32
    %11 = arith.cmpi ne, %10, %c0_i32_9 : i32
    scf.if %11 {
      %c0_10 = arith.constant 0 : index
      %c0_11 = arith.constant 0 : index
      %12 = vector.load %arg7[%c0_10, %c0_11] : memref<20x32xf32, #tpu.memory_space<vmem>>, vector<20x32xf32>
      %c0_12 = arith.constant 0 : index
      %c0_13 = arith.constant 0 : index
      %13 = vector.load %arg5[%c0_12, %c0_13] : memref<1x32xf32, #tpu.memory_space<vmem>>, vector<1x32xf32>
      %14 = vector.broadcast %13 : vector<1x32xf32> to vector<20x32xf32>
      %15 = arith.addf %12, %14 : vector<20x32xf32>
      %c0_14 = arith.constant 0 : index
      %c0_15 = arith.constant 0 : index
      %16 = vector.load %arg6[%c0_14, %c0_15] : memref<20x32xf32, #tpu.memory_space<vmem>>, vector<20x32xf32>
      tpu.vector_store %arg6[%c0_14, %c0_15], %15 {strides = array<i32>} : memref<20x32xf32, #tpu.memory_space<vmem>>, vector<20x32xf32>,
    } else {
    }
    return
  }
  func.func @transform_0(%arg0: i32, %arg1: i32, %arg2: i32) -> (i32, i32) {
    %c0_i32 = arith.constant 0 : i32
    return %arg0, %arg2 : i32, i32
  }
  func.func @transform_1(%arg0: i32, %arg1: i32, %arg2: i32) -> (i32, i32) {
    %c0_i32 = arith.constant 0 : i32
    return %arg2, %arg1 : i32, i32
  }
  func.func @transform_2(%arg0: i32, %arg1: i32, %arg2: i32) -> (i32, i32) {
    %c0_i32 = arith.constant 0 : i32
    %c0_i32_0 = arith.constant 0 : i32
    return %c0_i32, %arg1 : i32, i32
  }
  func.func @transform_3(%arg0: i32, %arg1: i32, %arg2: i32) -> (i32, i32) {
    %c0_i32 = arith.constant 0 : i32
    return %arg0, %arg1 : i32, i32
  }
}

module attributes {stable_mosaic.version = 11 : i64} {
  func.func @_add_rmsnorm_kernel(%arg0: i32, %arg1: memref<20x32xf32, #tpu.memory_space<vmem>>, %arg2: memref<20x32xf32, #tpu.memory_space<vmem>>, %arg3: memref<1x32xf32, #tpu.memory_space<vmem>>, %arg4: memref<20x32xbf16, #tpu.memory_space<vmem>>, %arg5: memref<20x32xf32, #tpu.memory_space<vmem>>) attributes {dimension_semantics = [#tpu.dimension_semantics<parallel>], iteration_bounds = array<i64: 1>, scalar_prefetch = 0 : i64, scratch_operands = 0 : i64, tpu.core_type = #tpu.core_type<tc>, window_params = [{transform_indices = @transform_0, window_bounds = array<i64: 20, 32>}, {transform_indices = @transform_1, window_bounds = array<i64: 20, 32>}, {pipeline_mode = #tpu.pipeline_mode<synchronous>, transform_indices = @transform_2, window_bounds = array<i64: 1, 32>}, {transform_indices = @transform_3, window_bounds = array<i64: 20, 32>}, {transform_indices = @transform_4, window_bounds = array<i64: 20, 32>}]} {
    %c0 = arith.constant 0 : index
    %c0_0 = arith.constant 0 : index
    %0 = vector.load %arg1[%c0, %c0_0] : memref<20x32xf32, #tpu.memory_space<vmem>>, vector<20x32xf32>
    %c0_1 = arith.constant 0 : index
    %c0_2 = arith.constant 0 : index
    %1 = vector.load %arg2[%c0_1, %c0_2] : memref<20x32xf32, #tpu.memory_space<vmem>>, vector<20x32xf32>
    %2 = arith.addf %0, %1 : vector<20x32xf32>
    %3 = arith.mulf %2, %2 : vector<20x32xf32>
    %cst = arith.constant dense<0.000000e+00> : vector<20xf32>
    %4 = vector.multi_reduction <add>, %3, %cst [1] : vector<20x32xf32> to vector<20xf32>
    %5 = vector.shape_cast %4 : vector<20xf32> to vector<20x1xf32>
    %cst_3 = arith.constant 3.200000e+01 : f32
    %6 = vector.broadcast %cst_3 : f32 to vector<20x1xf32>
    %7 = arith.divf %5, %6 : vector<20x1xf32>
    %cst_4 = arith.constant 9.99999974E-6 : f32
    %8 = vector.broadcast %cst_4 : f32 to vector<20x1xf32>
    %9 = arith.addf %7, %8 : vector<20x1xf32>
    %10 = math.rsqrt %9 : vector<20x1xf32>
    %11 = vector.broadcast %10 : vector<20x1xf32> to vector<20x32xf32>
    %12 = arith.mulf %2, %11 : vector<20x32xf32>
    %c0_5 = arith.constant 0 : index
    %c0_6 = arith.constant 0 : index
    %13 = vector.load %arg3[%c0_5, %c0_6] : memref<1x32xf32, #tpu.memory_space<vmem>>, vector<1x32xf32>
    %14 = vector.broadcast %13 : vector<1x32xf32> to vector<20x32xf32>
    %15 = arith.mulf %12, %14 : vector<20x32xf32>
    %16 = arith.truncf %15 : vector<20x32xf32> to vector<20x32xbf16>
    %c0_7 = arith.constant 0 : index
    %c0_8 = arith.constant 0 : index
    %17 = vector.load %arg4[%c0_7, %c0_8] : memref<20x32xbf16, #tpu.memory_space<vmem>>, vector<20x32xbf16>
    tpu.vector_store %arg4[%c0_7, %c0_8], %16 {strides = array<i32>} : memref<20x32xbf16, #tpu.memory_space<vmem>>, vector<20x32xbf16>,
    %c0_9 = arith.constant 0 : index
    %c0_10 = arith.constant 0 : index
    %18 = vector.load %arg5[%c0_9, %c0_10] : memref<20x32xf32, #tpu.memory_space<vmem>>, vector<20x32xf32>
    tpu.vector_store %arg5[%c0_9, %c0_10], %2 {strides = array<i32>} : memref<20x32xf32, #tpu.memory_space<vmem>>, vector<20x32xf32>,
    return
  }
  func.func @transform_0(%arg0: i32) -> (i32, i32) {
    %c0_i32 = arith.constant 0 : i32
    %c0_i32_0 = arith.constant 0 : i32
    return %arg0, %c0_i32 : i32, i32
  }
  func.func @transform_1(%arg0: i32) -> (i32, i32) {
    %c0_i32 = arith.constant 0 : i32
    %c0_i32_0 = arith.constant 0 : i32
    return %arg0, %c0_i32 : i32, i32
  }
  func.func @transform_2(%arg0: i32) -> (i32, i32) {
    %c0_i32 = arith.constant 0 : i32
    %c0_i32_0 = arith.constant 0 : i32
    %c0_i32_1 = arith.constant 0 : i32
    return %c0_i32, %c0_i32_0 : i32, i32
  }
  func.func @transform_3(%arg0: i32) -> (i32, i32) {
    %c0_i32 = arith.constant 0 : i32
    %c0_i32_0 = arith.constant 0 : i32
    return %arg0, %c0_i32 : i32, i32
  }
  func.func @transform_4(%arg0: i32) -> (i32, i32) {
    %c0_i32 = arith.constant 0 : i32
    %c0_i32_0 = arith.constant 0 : i32
    return %arg0, %c0_i32 : i32, i32
  }
}

module attributes {stable_mosaic.version = 11 : i64} {
  func.func @_selective_scan_kernel(%arg0: i32, %arg1: i32, %arg2: i32, %arg3: memref<1x16x64xbf16, #tpu.memory_space<vmem>>, %arg4: memref<1x16x64xbf16, #tpu.memory_space<vmem>>, %arg5: memref<1x16x64xbf16, #tpu.memory_space<vmem>>, %arg6: memref<1x32x8xbf16, #tpu.memory_space<vmem>>, %arg7: memref<1x32x8xbf16, #tpu.memory_space<vmem>>, %arg8: memref<16x64xf32, #tpu.memory_space<vmem>>, %arg9: memref<1x64xf32, #tpu.memory_space<vmem>>, %arg10: memref<1x64xf32, #tpu.memory_space<vmem>>, %arg11: memref<1x16x64xbf16, #tpu.memory_space<vmem>>, %arg12: memref<16x64xf32, #tpu.memory_space<vmem>>, %arg13: memref<16x64xf32, #tpu.memory_space<vmem>>, %arg14: memref<16x64xf32, #tpu.memory_space<vmem>>) attributes {dimension_semantics = [#tpu.dimension_semantics<parallel>, #tpu.dimension_semantics<parallel>, #tpu.dimension_semantics<arbitrary>], iteration_bounds = array<i64: 2, 1, 1>, scalar_prefetch = 0 : i64, scratch_operands = 3 : i64, tpu.core_type = #tpu.core_type<tc>, window_params = [{transform_indices = @transform_0, window_bounds = array<i64: 1, 16, 64>}, {transform_indices = @transform_1, window_bounds = array<i64: 1, 16, 64>}, {transform_indices = @transform_2, window_bounds = array<i64: 1, 16, 64>}, {transform_indices = @transform_3, window_bounds = array<i64: 1, 32, 8>}, {transform_indices = @transform_4, window_bounds = array<i64: 1, 32, 8>}, {transform_indices = @transform_5, window_bounds = array<i64: 16, 64>}, {transform_indices = @transform_6, window_bounds = array<i64: 1, 64>}, {transform_indices = @transform_7, window_bounds = array<i64: 1, 64>}, {transform_indices = @transform_8, window_bounds = array<i64: 1, 16, 64>}]} {
    %c0_i32 = arith.constant 0 : i32
    %0 = arith.cmpi eq, %arg2, %c0_i32 : i32
    %1 = arith.extui %0 : i1 to i32
    %c0_i32_0 = arith.constant 0 : i32
    %2 = arith.cmpi ne, %1, %c0_i32_0 : i32
    scf.if %2 {
      %cst_34 = arith.constant 0.000000e+00 : f32
      %53 = vector.broadcast %cst_34 : f32 to vector<16x64xf32>
      %c0_35 = arith.constant 0 : index
      %c0_36 = arith.constant 0 : index
      %54 = vector.load %arg12[%c0_35, %c0_36] : memref<16x64xf32, #tpu.memory_space<vmem>>, vector<16x64xf32>
      tpu.vector_store %arg12[%c0_35, %c0_36], %53 {strides = array<i32>} : memref<16x64xf32, #tpu.memory_space<vmem>>, vector<16x64xf32>,
    } else {
    }
    %c0 = arith.constant 0 : index
    %c0_1 = arith.constant 0 : index
    %3 = vector.load %arg8[%c0, %c0_1] : memref<16x64xf32, #tpu.memory_space<vmem>>, vector<16x64xf32>
    %c0_2 = arith.constant 0 : index
    %c0_3 = arith.constant 0 : index
    %c0_4 = arith.constant 0 : index
    %4 = vector.load %arg3[%c0_2, %c0_3, %c0_4] : memref<1x16x64xbf16, #tpu.memory_space<vmem>>, vector<1x16x64xbf16>
    %5 = vector.shape_cast %4 : vector<1x16x64xbf16> to vector<16x64xbf16>
    %6 = arith.extf %5 : vector<16x64xbf16> to vector<16x64xf32>
    %c0_5 = arith.constant 0 : index
    %c0_6 = arith.constant 0 : index
    %c0_7 = arith.constant 0 : index
    %7 = vector.load %arg5[%c0_5, %c0_6, %c0_7] : memref<1x16x64xbf16, #tpu.memory_space<vmem>>, vector<1x16x64xbf16>
    %8 = vector.shape_cast %7 : vector<1x16x64xbf16> to vector<16x64xbf16>
    %9 = arith.extf %8 : vector<16x64xbf16> to vector<16x64xf32>
    %c0_8 = arith.constant 0 : index
    %c0_9 = arith.constant 0 : index
    %c0_10 = arith.constant 0 : index
    %10 = vector.load %arg4[%c0_8, %c0_9, %c0_10] : memref<1x16x64xbf16, #tpu.memory_space<vmem>>, vector<1x16x64xbf16>
    %11 = vector.shape_cast %10 : vector<1x16x64xbf16> to vector<16x64xbf16>
    %12 = arith.extf %11 : vector<16x64xbf16> to vector<16x64xf32>
    %c0_11 = arith.constant 0 : index
    %c0_12 = arith.constant 0 : index
    %13 = vector.load %arg10[%c0_11, %c0_12] : memref<1x64xf32, #tpu.memory_space<vmem>>, vector<1x64xf32>
    %14 = vector.broadcast %13 : vector<1x64xf32> to vector<16x64xf32>
    %15 = arith.addf %12, %14 : vector<16x64xf32>
    %cst = arith.constant 2.000000e+01 : f32
    %16 = vector.broadcast %cst : f32 to vector<16x64xf32>
    %17 = arith.cmpf ogt, %15, %16 : vector<16x64xf32>
    %cst_13 = arith.constant 2.000000e+01 : f32
    %18 = vector.broadcast %cst_13 : f32 to vector<16x64xf32>
    %19 = arith.minimumf %15, %18 : vector<16x64xf32>
    %20 = math.exp %19 : vector<16x64xf32>
    %21 = math.log1p %20 : vector<16x64xf32>
    %22 = arith.select %17, %15, %21 : vector<16x64xi1>, vector<16x64xf32>
    %c0_14 = arith.constant 0 : index
    %c0_15 = arith.constant 0 : index
    %23 = vector.load %arg13[%c0_14, %c0_15] : memref<16x64xf32, #tpu.memory_space<vmem>>, vector<16x64xf32>
    tpu.vector_store %arg13[%c0_14, %c0_15], %22 {strides = array<i32>} : memref<16x64xf32, #tpu.memory_space<vmem>>, vector<16x64xf32>,
    %c0_16 = arith.constant 0 : index
    %c0_17 = arith.constant 0 : index
    %24 = vector.load %arg12[%c0_16, %c0_17] : memref<16x64xf32, #tpu.memory_space<vmem>>, vector<16x64xf32>
    %c0_i32_18 = arith.constant 0 : i32
    %c2_i32 = arith.constant 2 : i32
    %25 = arith.addi %c0_i32_18, %c2_i32 : i32
    %c1_i32 = arith.constant 1 : i32
    %26 = scf.for %arg15 = %c0_i32_18 to %25 step %c1_i32 iter_args(%arg16 = %24) -> (vector<16x64xf32>)  : i32 {
      %c8_i32 = arith.constant 8 : i32
      %53 = arith.muli %arg15, %c8_i32 : i32
      %54 = tpu.assume_multiple %53, 8 : i32
      %c16_i32 = arith.constant 16 : i32
      %55 = arith.muli %arg15, %c16_i32 : i32
      %56 = tpu.assume_multiple %55, 16 : i32
      %57 = arith.index_cast %54 : i32 to index
      %c0_34 = arith.constant 0 : index
      %58 = vector.load %arg13[%57, %c0_34] : memref<16x64xf32, #tpu.memory_space<vmem>>, vector<8x64xf32>
      %c0_35 = arith.constant 0 : index
      %59 = arith.index_cast %54 : i32 to index
      %c0_36 = arith.constant 0 : index
      %60 = vector.load %arg3[%c0_35, %59, %c0_36] : memref<1x16x64xbf16, #tpu.memory_space<vmem>>, vector<1x8x64xbf16>
      %61 = vector.shape_cast %60 : vector<1x8x64xbf16> to vector<8x64xbf16>
      %62 = arith.extf %61 : vector<8x64xbf16> to vector<8x64xf32>
      %63 = arith.mulf %58, %62 : vector<8x64xf32>
      %c0_37 = arith.constant 0 : index
      %64 = arith.index_cast %56 : i32 to index
      %c0_38 = arith.constant 0 : index
      %65 = vector.load %arg6[%c0_37, %64, %c0_38] : memref<1x32x8xbf16, #tpu.memory_space<vmem>>, vector<1x16x8xbf16>
      %66 = vector.shape_cast %65 : vector<1x16x8xbf16> to vector<16x8xbf16>
      %67 = arith.extf %66 : vector<16x8xbf16> to vector<16x8xf32>
      %c0_39 = arith.constant 0 : index
      %68 = arith.index_cast %56 : i32 to index
      %c0_40 = arith.constant 0 : index
      %69 = vector.load %arg7[%c0_39, %68, %c0_40] : memref<1x32x8xbf16, #tpu.memory_space<vmem>>, vector<1x16x8xbf16>
      %70 = vector.shape_cast %69 : vector<1x16x8xbf16> to vector<16x8xbf16>
      %71 = arith.extf %70 : vector<16x8xbf16> to vector<16x8xf32>
      %72 = vector.extract_strided_slice %58 {offsets = [0, 0], sizes = [1, 64], strides = [1, 1]} : vector<8x64xf32> to vector<1x64xf32>
      %73 = vector.broadcast %72 : vector<1x64xf32> to vector<16x64xf32>
      %74 = arith.mulf %3, %73 : vector<16x64xf32>
      %75 = math.exp %74 : vector<16x64xf32>
      %76 = vector.extract_strided_slice %67 {offsets = [0, 0], sizes = [16, 1], strides = [1, 1]} : vector<16x8xf32> to vector<16x1xf32>
      %77 = vector.extract_strided_slice %63 {offsets = [0, 0], sizes = [1, 64], strides = [1, 1]} : vector<8x64xf32> to vector<1x64xf32>
      %78 = vector.broadcast %76 : vector<16x1xf32> to vector<16x64xf32>
      %79 = vector.broadcast %77 : vector<1x64xf32> to vector<16x64xf32>
      %80 = arith.mulf %78, %79 : vector<16x64xf32>
      %81 = arith.mulf %75, %arg16 : vector<16x64xf32>
      %82 = arith.addf %81, %80 : vector<16x64xf32>
      %83 = vector.extract_strided_slice %71 {offsets = [0, 0], sizes = [16, 1], strides = [1, 1]} : vector<16x8xf32> to vector<16x1xf32>
      %84 = vector.broadcast %83 : vector<16x1xf32> to vector<16x64xf32>
      %85 = arith.mulf %84, %82 : vector<16x64xf32>
      %cst_41 = arith.constant dense<0.000000e+00> : vector<64xf32>
      %86 = vector.multi_reduction <add>, %85, %cst_41 [0] : vector<16x64xf32> to vector<64xf32>
      %87 = vector.shape_cast %86 : vector<64xf32> to vector<1x64xf32>
      %88 = vector.extract_strided_slice %58 {offsets = [1, 0], sizes = [1, 64], strides = [1, 1]} : vector<8x64xf32> to vector<1x64xf32>
      %89 = vector.broadcast %88 : vector<1x64xf32> to vector<16x64xf32>
      %90 = arith.mulf %3, %89 : vector<16x64xf32>
      %91 = math.exp %90 : vector<16x64xf32>
      %92 = vector.extract_strided_slice %67 {offsets = [0, 1], sizes = [16, 1], strides = [1, 1]} : vector<16x8xf32> to vector<16x1xf32>
      %93 = vector.extract_strided_slice %63 {offsets = [1, 0], sizes = [1, 64], strides = [1, 1]} : vector<8x64xf32> to vector<1x64xf32>
      %94 = vector.broadcast %92 : vector<16x1xf32> to vector<16x64xf32>
      %95 = vector.broadcast %93 : vector<1x64xf32> to vector<16x64xf32>
      %96 = arith.mulf %94, %95 : vector<16x64xf32>
      %97 = arith.mulf %91, %82 : vector<16x64xf32>
      %98 = arith.addf %97, %96 : vector<16x64xf32>
      %99 = vector.extract_strided_slice %71 {offsets = [0, 1], sizes = [16, 1], strides = [1, 1]} : vector<16x8xf32> to vector<16x1xf32>
      %100 = vector.broadcast %99 : vector<16x1xf32> to vector<16x64xf32>
      %101 = arith.mulf %100, %98 : vector<16x64xf32>
      %cst_42 = arith.constant dense<0.000000e+00> : vector<64xf32>
      %102 = vector.multi_reduction <add>, %101, %cst_42 [0] : vector<16x64xf32> to vector<64xf32>
      %103 = vector.shape_cast %102 : vector<64xf32> to vector<1x64xf32>
      %104 = vector.extract_strided_slice %58 {offsets = [2, 0], sizes = [1, 64], strides = [1, 1]} : vector<8x64xf32> to vector<1x64xf32>
      %105 = vector.broadcast %104 : vector<1x64xf32> to vector<16x64xf32>
      %106 = arith.mulf %3, %105 : vector<16x64xf32>
      %107 = math.exp %106 : vector<16x64xf32>
      %108 = vector.extract_strided_slice %67 {offsets = [0, 2], sizes = [16, 1], strides = [1, 1]} : vector<16x8xf32> to vector<16x1xf32>
      %109 = vector.extract_strided_slice %63 {offsets = [2, 0], sizes = [1, 64], strides = [1, 1]} : vector<8x64xf32> to vector<1x64xf32>
      %110 = vector.broadcast %108 : vector<16x1xf32> to vector<16x64xf32>
      %111 = vector.broadcast %109 : vector<1x64xf32> to vector<16x64xf32>
      %112 = arith.mulf %110, %111 : vector<16x64xf32>
      %113 = arith.mulf %107, %98 : vector<16x64xf32>
      %114 = arith.addf %113, %112 : vector<16x64xf32>
      %115 = vector.extract_strided_slice %71 {offsets = [0, 2], sizes = [16, 1], strides = [1, 1]} : vector<16x8xf32> to vector<16x1xf32>
      %116 = vector.broadcast %115 : vector<16x1xf32> to vector<16x64xf32>
      %117 = arith.mulf %116, %114 : vector<16x64xf32>
      %cst_43 = arith.constant dense<0.000000e+00> : vector<64xf32>
      %118 = vector.multi_reduction <add>, %117, %cst_43 [0] : vector<16x64xf32> to vector<64xf32>
      %119 = vector.shape_cast %118 : vector<64xf32> to vector<1x64xf32>
      %120 = vector.extract_strided_slice %58 {offsets = [3, 0], sizes = [1, 64], strides = [1, 1]} : vector<8x64xf32> to vector<1x64xf32>
      %121 = vector.broadcast %120 : vector<1x64xf32> to vector<16x64xf32>
      %122 = arith.mulf %3, %121 : vector<16x64xf32>
      %123 = math.exp %122 : vector<16x64xf32>
      %124 = vector.extract_strided_slice %67 {offsets = [0, 3], sizes = [16, 1], strides = [1, 1]} : vector<16x8xf32> to vector<16x1xf32>
      %125 = vector.extract_strided_slice %63 {offsets = [3, 0], sizes = [1, 64], strides = [1, 1]} : vector<8x64xf32> to vector<1x64xf32>
      %126 = vector.broadcast %124 : vector<16x1xf32> to vector<16x64xf32>
      %127 = vector.broadcast %125 : vector<1x64xf32> to vector<16x64xf32>
      %128 = arith.mulf %126, %127 : vector<16x64xf32>
      %129 = arith.mulf %123, %114 : vector<16x64xf32>
      %130 = arith.addf %129, %128 : vector<16x64xf32>
      %131 = vector.extract_strided_slice %71 {offsets = [0, 3], sizes = [16, 1], strides = [1, 1]} : vector<16x8xf32> to vector<16x1xf32>
      %132 = vector.broadcast %131 : vector<16x1xf32> to vector<16x64xf32>
      %133 = arith.mulf %132, %130 : vector<16x64xf32>
      %cst_44 = arith.constant dense<0.000000e+00> : vector<64xf32>
      %134 = vector.multi_reduction <add>, %133, %cst_44 [0] : vector<16x64xf32> to vector<64xf32>
      %135 = vector.shape_cast %134 : vector<64xf32> to vector<1x64xf32>
      %136 = vector.extract_strided_slice %58 {offsets = [4, 0], sizes = [1, 64], strides = [1, 1]} : vector<8x64xf32> to vector<1x64xf32>
      %137 = vector.broadcast %136 : vector<1x64xf32> to vector<16x64xf32>
      %138 = arith.mulf %3, %137 : vector<16x64xf32>
      %139 = math.exp %138 : vector<16x64xf32>
      %140 = vector.extract_strided_slice %67 {offsets = [0, 4], sizes = [16, 1], strides = [1, 1]} : vector<16x8xf32> to vector<16x1xf32>
      %141 = vector.extract_strided_slice %63 {offsets = [4, 0], sizes = [1, 64], strides = [1, 1]} : vector<8x64xf32> to vector<1x64xf32>
      %142 = vector.broadcast %140 : vector<16x1xf32> to vector<16x64xf32>
      %143 = vector.broadcast %141 : vector<1x64xf32> to vector<16x64xf32>
      %144 = arith.mulf %142, %143 : vector<16x64xf32>
      %145 = arith.mulf %139, %130 : vector<16x64xf32>
      %146 = arith.addf %145, %144 : vector<16x64xf32>
      %147 = vector.extract_strided_slice %71 {offsets = [0, 4], sizes = [16, 1], strides = [1, 1]} : vector<16x8xf32> to vector<16x1xf32>
      %148 = vector.broadcast %147 : vector<16x1xf32> to vector<16x64xf32>
      %149 = arith.mulf %148, %146 : vector<16x64xf32>
      %cst_45 = arith.constant dense<0.000000e+00> : vector<64xf32>
      %150 = vector.multi_reduction <add>, %149, %cst_45 [0] : vector<16x64xf32> to vector<64xf32>
      %151 = vector.shape_cast %150 : vector<64xf32> to vector<1x64xf32>
      %152 = vector.extract_strided_slice %58 {offsets = [5, 0], sizes = [1, 64], strides = [1, 1]} : vector<8x64xf32> to vector<1x64xf32>
      %153 = vector.broadcast %152 : vector<1x64xf32> to vector<16x64xf32>
      %154 = arith.mulf %3, %153 : vector<16x64xf32>
      %155 = math.exp %154 : vector<16x64xf32>
      %156 = vector.extract_strided_slice %67 {offsets = [0, 5], sizes = [16, 1], strides = [1, 1]} : vector<16x8xf32> to vector<16x1xf32>
      %157 = vector.extract_strided_slice %63 {offsets = [5, 0], sizes = [1, 64], strides = [1, 1]} : vector<8x64xf32> to vector<1x64xf32>
      %158 = vector.broadcast %156 : vector<16x1xf32> to vector<16x64xf32>
      %159 = vector.broadcast %157 : vector<1x64xf32> to vector<16x64xf32>
      %160 = arith.mulf %158, %159 : vector<16x64xf32>
      %161 = arith.mulf %155, %146 : vector<16x64xf32>
      %162 = arith.addf %161, %160 : vector<16x64xf32>
      %163 = vector.extract_strided_slice %71 {offsets = [0, 5], sizes = [16, 1], strides = [1, 1]} : vector<16x8xf32> to vector<16x1xf32>
      %164 = vector.broadcast %163 : vector<16x1xf32> to vector<16x64xf32>
      %165 = arith.mulf %164, %162 : vector<16x64xf32>
      %cst_46 = arith.constant dense<0.000000e+00> : vector<64xf32>
      %166 = vector.multi_reduction <add>, %165, %cst_46 [0] : vector<16x64xf32> to vector<64xf32>
      %167 = vector.shape_cast %166 : vector<64xf32> to vector<1x64xf32>
      %168 = vector.extract_strided_slice %58 {offsets = [6, 0], sizes = [1, 64], strides = [1, 1]} : vector<8x64xf32> to vector<1x64xf32>
      %169 = vector.broadcast %168 : vector<1x64xf32> to vector<16x64xf32>
      %170 = arith.mulf %3, %169 : vector<16x64xf32>
      %171 = math.exp %170 : vector<16x64xf32>
      %172 = vector.extract_strided_slice %67 {offsets = [0, 6], sizes = [16, 1], strides = [1, 1]} : vector<16x8xf32> to vector<16x1xf32>
      %173 = vector.extract_strided_slice %63 {offsets = [6, 0], sizes = [1, 64], strides = [1, 1]} : vector<8x64xf32> to vector<1x64xf32>
      %174 = vector.broadcast %172 : vector<16x1xf32> to vector<16x64xf32>
      %175 = vector.broadcast %173 : vector<1x64xf32> to vector<16x64xf32>
      %176 = arith.mulf %174, %175 : vector<16x64xf32>
      %177 = arith.mulf %171, %162 : vector<16x64xf32>
      %178 = arith.addf %177, %176 : vector<16x64xf32>
      %179 = vector.extract_strided_slice %71 {offsets = [0, 6], sizes = [16, 1], strides = [1, 1]} : vector<16x8xf32> to vector<16x1xf32>
      %180 = vector.broadcast %179 : vector<16x1xf32> to vector<16x64xf32>
      %181 = arith.mulf %180, %178 : vector<16x64xf32>
      %cst_47 = arith.constant dense<0.000000e+00> : vector<64xf32>
      %182 = vector.multi_reduction <add>, %181, %cst_47 [0] : vector<16x64xf32> to vector<64xf32>
      %183 = vector.shape_cast %182 : vector<64xf32> to vector<1x64xf32>
      %184 = vector.extract_strided_slice %58 {offsets = [7, 0], sizes = [1, 64], strides = [1, 1]} : vector<8x64xf32> to vector<1x64xf32>
      %185 = vector.broadcast %184 : vector<1x64xf32> to vector<16x64xf32>
      %186 = arith.mulf %3, %185 : vector<16x64xf32>
      %187 = math.exp %186 : vector<16x64xf32>
      %188 = vector.extract_strided_slice %67 {offsets = [0, 7], sizes = [16, 1], strides = [1, 1]} : vector<16x8xf32> to vector<16x1xf32>
      %189 = vector.extract_strided_slice %63 {offsets = [7, 0], sizes = [1, 64], strides = [1, 1]} : vector<8x64xf32> to vector<1x64xf32>
      %190 = vector.broadcast %188 : vector<16x1xf32> to vector<16x64xf32>
      %191 = vector.broadcast %189 : vector<1x64xf32> to vector<16x64xf32>
      %192 = arith.mulf %190, %191 : vector<16x64xf32>
      %193 = arith.mulf %187, %178 : vector<16x64xf32>
      %194 = arith.addf %193, %192 : vector<16x64xf32>
      %195 = vector.extract_strided_slice %71 {offsets = [0, 7], sizes = [16, 1], strides = [1, 1]} : vector<16x8xf32> to vector<16x1xf32>
      %196 = vector.broadcast %195 : vector<16x1xf32> to vector<16x64xf32>
      %197 = arith.mulf %196, %194 : vector<16x64xf32>
      %cst_48 = arith.constant dense<0.000000e+00> : vector<64xf32>
      %198 = vector.multi_reduction <add>, %197, %cst_48 [0] : vector<16x64xf32> to vector<64xf32>
      %199 = vector.shape_cast %198 : vector<64xf32> to vector<1x64xf32>
      %200 = tpu.concatenate %87, %103, %119, %135, %151, %167, %183, %199 in 0 : vector<1x64xf32>, vector<1x64xf32>, vector<1x64xf32>, vector<1x64xf32>, vector<1x64xf32>, vector<1x64xf32>, vector<1x64xf32>, vector<1x64xf32> -> vector<8x64xf32>
      %201 = arith.index_cast %54 : i32 to index
      %c0_49 = arith.constant 0 : index
      %202 = vector.load %arg14[%201, %c0_49] : memref<16x64xf32, #tpu.memory_space<vmem>>, vector<8x64xf32>
      tpu.vector_store %arg14[%201, %c0_49], %200 {strides = array<i32>} : memref<16x64xf32, #tpu.memory_space<vmem>>, vector<8x64xf32>,
      scf.yield %194 : vector<16x64xf32>
    }
    %c2_i32_19 = arith.constant 2 : i32
    %c0_20 = arith.constant 0 : index
    %c0_21 = arith.constant 0 : index
    %27 = vector.load %arg12[%c0_20, %c0_21] : memref<16x64xf32, #tpu.memory_space<vmem>>, vector<16x64xf32>
    tpu.vector_store %arg12[%c0_20, %c0_21], %26 {strides = array<i32>} : memref<16x64xf32, #tpu.memory_space<vmem>>, vector<16x64xf32>,
    %c0_22 = arith.constant 0 : index
    %c0_23 = arith.constant 0 : index
    %28 = vector.load %arg14[%c0_22, %c0_23] : memref<16x64xf32, #tpu.memory_space<vmem>>, vector<16x64xf32>
    %c0_24 = arith.constant 0 : index
    %c0_25 = arith.constant 0 : index
    %29 = vector.load %arg9[%c0_24, %c0_25] : memref<1x64xf32, #tpu.memory_space<vmem>>, vector<1x64xf32>
    %30 = vector.broadcast %29 : vector<1x64xf32> to vector<16x64xf32>
    %31 = arith.mulf %6, %30 : vector<16x64xf32>
    %32 = arith.addf %28, %31 : vector<16x64xf32>
    %33 = math.absf %9 : vector<16x64xf32>
    %cst_26 = arith.constant 0.000000e+00 : f32
    %34 = vector.broadcast %cst_26 : f32 to vector<16x64xf32>
    %35 = arith.subf %34, %33 : vector<16x64xf32>
    %36 = math.exp %35 : vector<16x64xf32>
    %cst_27 = arith.constant 0.000000e+00 : f32
    %37 = vector.broadcast %cst_27 : f32 to vector<16x64xf32>
    %38 = arith.cmpf oge, %9, %37 : vector<16x64xf32>
    %cst_28 = arith.constant 1.000000e+00 : f32
    %39 = vector.broadcast %cst_28 : f32 to vector<16x64xf32>
    %40 = arith.addf %39, %36 : vector<16x64xf32>
    %cst_29 = arith.constant 1.000000e+00 : f32
    %41 = vector.broadcast %cst_29 : f32 to vector<16x64xf32>
    %42 = arith.divf %41, %40 : vector<16x64xf32>
    %cst_30 = arith.constant 1.000000e+00 : f32
    %43 = vector.broadcast %cst_30 : f32 to vector<16x64xf32>
    %44 = arith.addf %43, %36 : vector<16x64xf32>
    %45 = arith.divf %36, %44 : vector<16x64xf32>
    %46 = arith.select %38, %42, %45 : vector<16x64xi1>, vector<16x64xf32>
    %47 = arith.mulf %9, %46 : vector<16x64xf32>
    %48 = arith.mulf %32, %47 : vector<16x64xf32>
    %49 = arith.truncf %48 : vector<16x64xf32> to vector<16x64xbf16>
    %c0_31 = arith.constant 0 : index
    %c0_32 = arith.constant 0 : index
    %c0_33 = arith.constant 0 : index
    %50 = vector.load %arg11[%c0_31, %c0_32, %c0_33] : memref<1x16x64xbf16, #tpu.memory_space<vmem>>, vector<1x16x64xbf16>
    %51 = vector.shape_cast %50 : vector<1x16x64xbf16> to vector<16x64xbf16>
    %52 = vector.shape_cast %49 : vector<16x64xbf16> to vector<1x16x64xbf16>
    tpu.vector_store %arg11[%c0_31, %c0_32, %c0_33], %52 {strides = array<i32>} : memref<1x16x64xbf16, #tpu.memory_space<vmem>>, vector<1x16x64xbf16>,
    return
  }
  func.func @transform_0(%arg0: i32, %arg1: i32, %arg2: i32) -> (i32, i32, i32) {
    %c0_i32 = arith.constant 0 : i32
    return %arg0, %arg2, %arg1 : i32, i32, i32
  }
  func.func @transform_1(%arg0: i32, %arg1: i32, %arg2: i32) -> (i32, i32, i32) {
    %c0_i32 = arith.constant 0 : i32
    return %arg0, %arg2, %arg1 : i32, i32, i32
  }
  func.func @transform_2(%arg0: i32, %arg1: i32, %arg2: i32) -> (i32, i32, i32) {
    %c0_i32 = arith.constant 0 : i32
    return %arg0, %arg2, %arg1 : i32, i32, i32
  }
  func.func @transform_3(%arg0: i32, %arg1: i32, %arg2: i32) -> (i32, i32, i32) {
    %c0_i32 = arith.constant 0 : i32
    %c0_i32_0 = arith.constant 0 : i32
    return %arg0, %arg2, %c0_i32 : i32, i32, i32
  }
  func.func @transform_4(%arg0: i32, %arg1: i32, %arg2: i32) -> (i32, i32, i32) {
    %c0_i32 = arith.constant 0 : i32
    %c0_i32_0 = arith.constant 0 : i32
    return %arg0, %arg2, %c0_i32 : i32, i32, i32
  }
  func.func @transform_5(%arg0: i32, %arg1: i32, %arg2: i32) -> (i32, i32) {
    %c0_i32 = arith.constant 0 : i32
    %c0_i32_0 = arith.constant 0 : i32
    return %c0_i32, %arg1 : i32, i32
  }
  func.func @transform_6(%arg0: i32, %arg1: i32, %arg2: i32) -> (i32, i32) {
    %c0_i32 = arith.constant 0 : i32
    %c0_i32_0 = arith.constant 0 : i32
    return %c0_i32, %arg1 : i32, i32
  }
  func.func @transform_7(%arg0: i32, %arg1: i32, %arg2: i32) -> (i32, i32) {
    %c0_i32 = arith.constant 0 : i32
    %c0_i32_0 = arith.constant 0 : i32
    return %c0_i32, %arg1 : i32, i32
  }
  func.func @transform_8(%arg0: i32, %arg1: i32, %arg2: i32) -> (i32, i32, i32) {
    %c0_i32 = arith.constant 0 : i32
    return %arg0, %arg2, %arg1 : i32, i32, i32
  }
}

module attributes {stable_mosaic.version = 11 : i64} {
  func.func @_add_rmsnorm_kernel(%arg0: i32, %arg1: memref<20x32xf32, #tpu.memory_space<vmem>>, %arg2: memref<20x32xf32, #tpu.memory_space<vmem>>, %arg3: memref<1x32xf32, #tpu.memory_space<vmem>>, %arg4: memref<20x32xbf16, #tpu.memory_space<vmem>>, %arg5: memref<20x32xf32, #tpu.memory_space<vmem>>) attributes {dimension_semantics = [#tpu.dimension_semantics<parallel>], iteration_bounds = array<i64: 1>, scalar_prefetch = 0 : i64, scratch_operands = 0 : i64, tpu.core_type = #tpu.core_type<tc>, window_params = [{transform_indices = @transform_0, window_bounds = array<i64: 20, 32>}, {transform_indices = @transform_1, window_bounds = array<i64: 20, 32>}, {pipeline_mode = #tpu.pipeline_mode<synchronous>, transform_indices = @transform_2, window_bounds = array<i64: 1, 32>}, {transform_indices = @transform_3, window_bounds = array<i64: 20, 32>}, {transform_indices = @transform_4, window_bounds = array<i64: 20, 32>}]} {
    %c0 = arith.constant 0 : index
    %c0_0 = arith.constant 0 : index
    %0 = vector.load %arg1[%c0, %c0_0] : memref<20x32xf32, #tpu.memory_space<vmem>>, vector<20x32xf32>
    %c0_1 = arith.constant 0 : index
    %c0_2 = arith.constant 0 : index
    %1 = vector.load %arg2[%c0_1, %c0_2] : memref<20x32xf32, #tpu.memory_space<vmem>>, vector<20x32xf32>
    %2 = arith.addf %0, %1 : vector<20x32xf32>
    %3 = arith.mulf %2, %2 : vector<20x32xf32>
    %cst = arith.constant dense<0.000000e+00> : vector<20xf32>
    %4 = vector.multi_reduction <add>, %3, %cst [1] : vector<20x32xf32> to vector<20xf32>
    %5 = vector.shape_cast %4 : vector<20xf32> to vector<20x1xf32>
    %cst_3 = arith.constant 3.200000e+01 : f32
    %6 = vector.broadcast %cst_3 : f32 to vector<20x1xf32>
    %7 = arith.divf %5, %6 : vector<20x1xf32>
    %cst_4 = arith.constant 9.99999974E-6 : f32
    %8 = vector.broadcast %cst_4 : f32 to vector<20x1xf32>
    %9 = arith.addf %7, %8 : vector<20x1xf32>
    %10 = math.rsqrt %9 : vector<20x1xf32>
    %11 = vector.broadcast %10 : vector<20x1xf32> to vector<20x32xf32>
    %12 = arith.mulf %2, %11 : vector<20x32xf32>
    %c0_5 = arith.constant 0 : index
    %c0_6 = arith.constant 0 : index
    %13 = vector.load %arg3[%c0_5, %c0_6] : memref<1x32xf32, #tpu.memory_space<vmem>>, vector<1x32xf32>
    %14 = vector.broadcast %13 : vector<1x32xf32> to vector<20x32xf32>
    %15 = arith.mulf %12, %14 : vector<20x32xf32>
    %16 = arith.truncf %15 : vector<20x32xf32> to vector<20x32xbf16>
    %c0_7 = arith.constant 0 : index
    %c0_8 = arith.constant 0 : index
    %17 = vector.load %arg4[%c0_7, %c0_8] : memref<20x32xbf16, #tpu.memory_space<vmem>>, vector<20x32xbf16>
    tpu.vector_store %arg4[%c0_7, %c0_8], %16 {strides = array<i32>} : memref<20x32xbf16, #tpu.memory_space<vmem>>, vector<20x32xbf16>,
    %c0_9 = arith.constant 0 : index
    %c0_10 = arith.constant 0 : index
    %18 = vector.load %arg5[%c0_9, %c0_10] : memref<20x32xf32, #tpu.memory_space<vmem>>, vector<20x32xf32>
    tpu.vector_store %arg5[%c0_9, %c0_10], %2 {strides = array<i32>} : memref<20x32xf32, #tpu.memory_space<vmem>>, vector<20x32xf32>,
    return
  }
  func.func @transform_0(%arg0: i32) -> (i32, i32) {
    %c0_i32 = arith.constant 0 : i32
    %c0_i32_0 = arith.constant 0 : i32
    return %arg0, %c0_i32 : i32, i32
  }
  func.func @transform_1(%arg0: i32) -> (i32, i32) {
    %c0_i32 = arith.constant 0 : i32
    %c0_i32_0 = arith.constant 0 : i32
    return %arg0, %c0_i32 : i32, i32
  }
  func.func @transform_2(%arg0: i32) -> (i32, i32) {
    %c0_i32 = arith.constant 0 : i32
    %c0_i32_0 = arith.constant 0 : i32
    %c0_i32_1 = arith.constant 0 : i32
    return %c0_i32, %c0_i32_0 : i32, i32
  }
  func.func @transform_3(%arg0: i32) -> (i32, i32) {
    %c0_i32 = arith.constant 0 : i32
    %c0_i32_0 = arith.constant 0 : i32
    return %arg0, %c0_i32 : i32, i32
  }
  func.func @transform_4(%arg0: i32) -> (i32, i32) {
    %c0_i32 = arith.constant 0 : i32
    %c0_i32_0 = arith.constant 0 : i32
    return %arg0, %c0_i32 : i32, i32
  }
}

module attributes {stable_mosaic.version = 11 : i64} {
  func.func @_token_mean_kernel(%arg0: i32, %arg1: memref<4x5x32xbf16, #tpu.memory_space<vmem>>, %arg2: memref<4x32xbf16, #tpu.memory_space<vmem>>) attributes {dimension_semantics = [#tpu.dimension_semantics<parallel>], iteration_bounds = array<i64: 1>, scalar_prefetch = 0 : i64, scratch_operands = 0 : i64, tpu.core_type = #tpu.core_type<tc>, window_params = [{transform_indices = @transform_0, window_bounds = array<i64: 4, 5, 32>}, {transform_indices = @transform_1, window_bounds = array<i64: 4, 32>}]} {
    %c0 = arith.constant 0 : index
    %c0_0 = arith.constant 0 : index
    %c0_1 = arith.constant 0 : index
    %0 = vector.load %arg1[%c0, %c0_0, %c0_1] : memref<4x5x32xbf16, #tpu.memory_space<vmem>>, vector<4x5x32xbf16>
    %1 = arith.extf %0 : vector<4x5x32xbf16> to vector<4x5x32xf32>
    %cst = arith.constant dense<0.000000e+00> : vector<4x32xf32>
    %2 = vector.multi_reduction <add>, %1, %cst [1] : vector<4x5x32xf32> to vector<4x32xf32>
    %cst_2 = arith.constant 5.000000e+00 : f32
    %3 = vector.broadcast %cst_2 : f32 to vector<4x32xf32>
    %4 = arith.divf %2, %3 : vector<4x32xf32>
    %5 = arith.truncf %4 : vector<4x32xf32> to vector<4x32xbf16>
    %c0_3 = arith.constant 0 : index
    %c0_4 = arith.constant 0 : index
    %6 = vector.load %arg2[%c0_3, %c0_4] : memref<4x32xbf16, #tpu.memory_space<vmem>>, vector<4x32xbf16>
    tpu.vector_store %arg2[%c0_3, %c0_4], %5 {strides = array<i32>} : memref<4x32xbf16, #tpu.memory_space<vmem>>, vector<4x32xbf16>,
    return
  }
  func.func @transform_0(%arg0: i32) -> (i32, i32, i32) {
    %c0_i32 = arith.constant 0 : i32
    %c0_i32_0 = arith.constant 0 : i32
    %c0_i32_1 = arith.constant 0 : i32
    return %arg0, %c0_i32, %c0_i32_0 : i32, i32, i32
  }
  func.func @transform_1(%arg0: i32) -> (i32, i32) {
    %c0_i32 = arith.constant 0 : i32
    %c0_i32_0 = arith.constant 0 : i32
    return %arg0, %c0_i32 : i32, i32
  }
}

module attributes {stable_mosaic.version = 11 : i64} {
  func.func @_causal_conv_silu_kernel(%arg0: i32, %arg1: i32, %arg2: i32, %arg3: memref<1x16x64xbf16, #tpu.memory_space<vmem>>, %arg4: memref<4x64xf32, #tpu.memory_space<vmem>>, %arg5: memref<1x64xf32, #tpu.memory_space<vmem>>, %arg6: memref<1x16x64xbf16, #tpu.memory_space<vmem>>, %arg7: memref<24x64xf32, #tpu.memory_space<vmem>>, %arg8: memref<8x64xf32, #tpu.memory_space<vmem>>) attributes {dimension_semantics = [#tpu.dimension_semantics<parallel>, #tpu.dimension_semantics<parallel>, #tpu.dimension_semantics<arbitrary>], iteration_bounds = array<i64: 2, 1, 1>, scalar_prefetch = 0 : i64, scratch_operands = 2 : i64, tpu.core_type = #tpu.core_type<tc>, window_params = [{transform_indices = @transform_0, window_bounds = array<i64: 1, 16, 64>}, {transform_indices = @transform_1, window_bounds = array<i64: 4, 64>}, {transform_indices = @transform_2, window_bounds = array<i64: 1, 64>}, {transform_indices = @transform_3, window_bounds = array<i64: 1, 16, 64>}]} {
    %c0_i32 = arith.constant 0 : i32
    %0 = arith.cmpi eq, %arg2, %c0_i32 : i32
    %1 = arith.extui %0 : i1 to i32
    %c0_i32_0 = arith.constant 0 : i32
    %2 = arith.cmpi ne, %1, %c0_i32_0 : i32
    scf.if %2 {
      %cst_30 = arith.constant 0.000000e+00 : f32
      %62 = vector.broadcast %cst_30 : f32 to vector<8x64xf32>
      %c0_31 = arith.constant 0 : index
      %c0_32 = arith.constant 0 : index
      %63 = vector.load %arg8[%c0_31, %c0_32] : memref<8x64xf32, #tpu.memory_space<vmem>>, vector<8x64xf32>
      tpu.vector_store %arg8[%c0_31, %c0_32], %62 {strides = array<i32>} : memref<8x64xf32, #tpu.memory_space<vmem>>, vector<8x64xf32>,
    } else {
    }
    %c0 = arith.constant 0 : index
    %c0_1 = arith.constant 0 : index
    %c0_2 = arith.constant 0 : index
    %3 = vector.load %arg3[%c0, %c0_1, %c0_2] : memref<1x16x64xbf16, #tpu.memory_space<vmem>>, vector<1x16x64xbf16>
    %4 = vector.shape_cast %3 : vector<1x16x64xbf16> to vector<16x64xbf16>
    %5 = arith.extf %4 : vector<16x64xbf16> to vector<16x64xf32>
    %c0_3 = arith.constant 0 : index
    %c0_4 = arith.constant 0 : index
    %6 = vector.load %arg8[%c0_3, %c0_4] : memref<8x64xf32, #tpu.memory_space<vmem>>, vector<8x64xf32>
    %c0_5 = arith.constant 0 : index
    %c0_6 = arith.constant 0 : index
    %7 = vector.load %arg7[%c0_5, %c0_6] : memref<24x64xf32, #tpu.memory_space<vmem>>, vector<8x64xf32>
    tpu.vector_store %arg7[%c0_5, %c0_6], %6 {strides = array<i32>} : memref<24x64xf32, #tpu.memory_space<vmem>>, vector<8x64xf32>,
    %c8 = arith.constant 8 : index
    %c0_7 = arith.constant 0 : index
    %8 = vector.load %arg7[%c8, %c0_7] : memref<24x64xf32, #tpu.memory_space<vmem>>, vector<16x64xf32>
    tpu.vector_store %arg7[%c8, %c0_7], %5 {strides = array<i32>} : memref<24x64xf32, #tpu.memory_space<vmem>>, vector<16x64xf32>,
    %c0_8 = arith.constant 0 : index
    %c0_9 = arith.constant 0 : index
    %9 = vector.load %arg5[%c0_8, %c0_9] : memref<1x64xf32, #tpu.memory_space<vmem>>, vector<1x64xf32>
    %c5 = arith.constant 5 : index
    %c0_10 = arith.constant 0 : index
    %10 = vector.load %arg7[%c5, %c0_10] : memref<24x64xf32, #tpu.memory_space<vmem>>, vector<16x64xf32>
    %c0_11 = arith.constant 0 : index
    %c0_12 = arith.constant 0 : index
    %11 = vector.load %arg4[%c0_11, %c0_12] : memref<4x64xf32, #tpu.memory_space<vmem>>, vector<1x64xf32>
    %12 = vector.broadcast %11 : vector<1x64xf32> to vector<16x64xf32>
    %13 = arith.mulf %10, %12 : vector<16x64xf32>
    %14 = vector.broadcast %9 : vector<1x64xf32> to vector<16x64xf32>
    %15 = arith.addf %14, %13 : vector<16x64xf32>
    %c6 = arith.constant 6 : index
    %c0_13 = arith.constant 0 : index
    %16 = vector.load %arg7[%c6, %c0_13] : memref<24x64xf32, #tpu.memory_space<vmem>>, vector<16x64xf32>
    %c1 = arith.constant 1 : index
    %c0_14 = arith.constant 0 : index
    %17 = vector.load %arg4[%c1, %c0_14] : memref<4x64xf32, #tpu.memory_space<vmem>>, vector<1x64xf32>
    %18 = vector.broadcast %17 : vector<1x64xf32> to vector<16x64xf32>
    %19 = arith.mulf %16, %18 : vector<16x64xf32>
    %20 = arith.addf %15, %19 : vector<16x64xf32>
    %c7 = arith.constant 7 : index
    %c0_15 = arith.constant 0 : index
    %21 = vector.load %arg7[%c7, %c0_15] : memref<24x64xf32, #tpu.memory_space<vmem>>, vector<16x64xf32>
    %c2 = arith.constant 2 : index
    %c0_16 = arith.constant 0 : index
    %22 = vector.load %arg4[%c2, %c0_16] : memref<4x64xf32, #tpu.memory_space<vmem>>, vector<1x64xf32>
    %23 = vector.broadcast %22 : vector<1x64xf32> to vector<16x64xf32>
    %24 = arith.mulf %21, %23 : vector<16x64xf32>
    %25 = arith.addf %20, %24 : vector<16x64xf32>
    %c8_17 = arith.constant 8 : index
    %c0_18 = arith.constant 0 : index
    %26 = vector.load %arg7[%c8_17, %c0_18] : memref<24x64xf32, #tpu.memory_space<vmem>>, vector<16x64xf32>
    %c3 = arith.constant 3 : index
    %c0_19 = arith.constant 0 : index
    %27 = vector.load %arg4[%c3, %c0_19] : memref<4x64xf32, #tpu.memory_space<vmem>>, vector<1x64xf32>
    %28 = vector.broadcast %27 : vector<1x64xf32> to vector<16x64xf32>
    %29 = arith.mulf %26, %28 : vector<16x64xf32>
    %30 = arith.addf %25, %29 : vector<16x64xf32>
    %31 = tpu.iota {dimensions = array<i32: 0>} : vector<16x1xi32>
    %c16_i32 = arith.constant 16 : i32
    %32 = arith.muli %arg2, %c16_i32 : i32
    %33 = vector.broadcast %32 : i32 to vector<16x1xi32>
    %34 = arith.addi %33, %31 : vector<16x1xi32>
    %c10_i32 = arith.constant 10 : i32
    %35 = vector.broadcast %c10_i32 : i32 to vector<16x1xi32>
    %36 = arith.cmpi slt, %34, %35 : vector<16x1xi32>
    %37 = math.absf %30 : vector<16x64xf32>
    %cst = arith.constant 0.000000e+00 : f32
    %38 = vector.broadcast %cst : f32 to vector<16x64xf32>
    %39 = arith.subf %38, %37 : vector<16x64xf32>
    %40 = math.exp %39 : vector<16x64xf32>
    %cst_20 = arith.constant 0.000000e+00 : f32
    %41 = vector.broadcast %cst_20 : f32 to vector<16x64xf32>
    %42 = arith.cmpf oge, %30, %41 : vector<16x64xf32>
    %cst_21 = arith.constant 1.000000e+00 : f32
    %43 = vector.broadcast %cst_21 : f32 to vector<16x64xf32>
    %44 = arith.addf %43, %40 : vector<16x64xf32>
    %cst_22 = arith.constant 1.000000e+00 : f32
    %45 = vector.broadcast %cst_22 : f32 to vector<16x64xf32>
    %46 = arith.divf %45, %44 : vector<16x64xf32>
    %cst_23 = arith.constant 1.000000e+00 : f32
    %47 = vector.broadcast %cst_23 : f32 to vector<16x64xf32>
    %48 = arith.addf %47, %40 : vector<16x64xf32>
    %49 = arith.divf %40, %48 : vector<16x64xf32>
    %50 = arith.select %42, %46, %49 : vector<16x64xi1>, vector<16x64xf32>
    %51 = arith.mulf %30, %50 : vector<16x64xf32>
    %cst_24 = arith.constant 0.000000e+00 : f32
    %52 = vector.shape_cast %36 : vector<16x1xi1> to vector<16x1xi1>
    %53 = vector.broadcast %52 : vector<16x1xi1> to vector<16x64xi1>
    %54 = vector.broadcast %cst_24 : f32 to vector<16x64xf32>
    %55 = arith.select %53, %51, %54 : vector<16x64xi1>, vector<16x64xf32>
    %56 = arith.truncf %55 : vector<16x64xf32> to vector<16x64xbf16>
    %c0_25 = arith.constant 0 : index
    %c0_26 = arith.constant 0 : index
    %c0_27 = arith.constant 0 : index
    %57 = vector.load %arg6[%c0_25, %c0_26, %c0_27] : memref<1x16x64xbf16, #tpu.memory_space<vmem>>, vector<1x16x64xbf16>
    %58 = vector.shape_cast %57 : vector<1x16x64xbf16> to vector<16x64xbf16>
    %59 = vector.shape_cast %56 : vector<16x64xbf16> to vector<1x16x64xbf16>
    tpu.vector_store %arg6[%c0_25, %c0_26, %c0_27], %59 {strides = array<i32>} : memref<1x16x64xbf16, #tpu.memory_space<vmem>>, vector<1x16x64xbf16>,
    %60 = vector.extract_strided_slice %5 {offsets = [8, 0], sizes = [8, 64], strides = [1, 1]} : vector<16x64xf32> to vector<8x64xf32>
    %c0_28 = arith.constant 0 : index
    %c0_29 = arith.constant 0 : index
    %61 = vector.load %arg8[%c0_28, %c0_29] : memref<8x64xf32, #tpu.memory_space<vmem>>, vector<8x64xf32>
    tpu.vector_store %arg8[%c0_28, %c0_29], %60 {strides = array<i32>} : memref<8x64xf32, #tpu.memory_space<vmem>>, vector<8x64xf32>,
    return
  }
  func.func @transform_0(%arg0: i32, %arg1: i32, %arg2: i32) -> (i32, i32, i32) {
    %c0_i32 = arith.constant 0 : i32
    return %arg0, %arg2, %arg1 : i32, i32, i32
  }
  func.func @transform_1(%arg0: i32, %arg1: i32, %arg2: i32) -> (i32, i32) {
    %c0_i32 = arith.constant 0 : i32
    %c0_i32_0 = arith.constant 0 : i32
    return %c0_i32, %arg1 : i32, i32
  }
  func.func @transform_2(%arg0: i32, %arg1: i32, %arg2: i32) -> (i32, i32) {
    %c0_i32 = arith.constant 0 : i32
    %c0_i32_0 = arith.constant 0 : i32
    return %c0_i32, %arg1 : i32, i32
  }
  func.func @transform_3(%arg0: i32, %arg1: i32, %arg2: i32) -> (i32, i32, i32) {
    %c0_i32 = arith.constant 0 : i32
    return %arg0, %arg2, %arg1 : i32, i32, i32
  }
}

module attributes {stable_mosaic.version = 11 : i64} {
  func.func @_matmul_bias_kernel(%arg0: i32, %arg1: i32, %arg2: i32, %arg3: memref<4x32xbf16, #tpu.memory_space<vmem>>, %arg4: memref<32x10xbf16, #tpu.memory_space<vmem>>, %arg5: memref<1x10xf32, #tpu.memory_space<vmem>>, %arg6: memref<4x10xf32, #tpu.memory_space<vmem>>, %arg7: memref<4x10xf32, #tpu.memory_space<vmem>>) attributes {dimension_semantics = [#tpu.dimension_semantics<parallel>, #tpu.dimension_semantics<parallel>, #tpu.dimension_semantics<arbitrary>], iteration_bounds = array<i64: 1, 1, 1>, scalar_prefetch = 0 : i64, scratch_operands = 1 : i64, tpu.core_type = #tpu.core_type<tc>, window_params = [{transform_indices = @transform_0, window_bounds = array<i64: 4, 32>}, {transform_indices = @transform_1, window_bounds = array<i64: 32, 10>}, {transform_indices = @transform_2, window_bounds = array<i64: 1, 10>}, {transform_indices = @transform_3, window_bounds = array<i64: 4, 10>}]} {
    %c0_i32 = arith.constant 0 : i32
    %0 = arith.cmpi eq, %arg2, %c0_i32 : i32
    %1 = arith.extui %0 : i1 to i32
    %c0_i32_0 = arith.constant 0 : i32
    %2 = arith.cmpi ne, %1, %c0_i32_0 : i32
    scf.if %2 {
      %cst_10 = arith.constant 0.000000e+00 : f32
      %12 = vector.broadcast %cst_10 : f32 to vector<4x10xf32>
      %c0_11 = arith.constant 0 : index
      %c0_12 = arith.constant 0 : index
      %13 = vector.load %arg7[%c0_11, %c0_12] : memref<4x10xf32, #tpu.memory_space<vmem>>, vector<4x10xf32>
      tpu.vector_store %arg7[%c0_11, %c0_12], %12 {strides = array<i32>} : memref<4x10xf32, #tpu.memory_space<vmem>>, vector<4x10xf32>,
    } else {
    }
    %c0 = arith.constant 0 : index
    %c0_1 = arith.constant 0 : index
    %3 = vector.load %arg7[%c0, %c0_1] : memref<4x10xf32, #tpu.memory_space<vmem>>, vector<4x10xf32>
    %c0_2 = arith.constant 0 : index
    %c0_3 = arith.constant 0 : index
    %4 = vector.load %arg3[%c0_2, %c0_3] : memref<4x32xbf16, #tpu.memory_space<vmem>>, vector<4x32xbf16>
    %c0_4 = arith.constant 0 : index
    %c0_5 = arith.constant 0 : index
    %5 = vector.load %arg4[%c0_4, %c0_5] : memref<32x10xbf16, #tpu.memory_space<vmem>>, vector<32x10xbf16>
    %cst = arith.constant dense<0.000000e+00> : vector<4x10xf32>
    %6 = tpu.matmul %4, %5, %cst {dimension_numbers = #tpu.dot_dimension_numbers<[1], [0], [0], [1], [0, 0, 1, 1], [], []>} : vector<4x32xbf16>, vector<32x10xbf16>, vector<4x10xf32> -> vector<4x10xf32>
    %7 = arith.addf %3, %6 : vector<4x10xf32>
    %c0_6 = arith.constant 0 : index
    %c0_7 = arith.constant 0 : index
    %8 = vector.load %arg7[%c0_6, %c0_7] : memref<4x10xf32, #tpu.memory_space<vmem>>, vector<4x10xf32>
    tpu.vector_store %arg7[%c0_6, %c0_7], %7 {strides = array<i32>} : memref<4x10xf32, #tpu.memory_space<vmem>>, vector<4x10xf32>,
    %c0_i32_8 = arith.constant 0 : i32
    %9 = arith.cmpi eq, %arg2, %c0_i32_8 : i32
    %10 = arith.extui %9 : i1 to i32
    %c0_i32_9 = arith.constant 0 : i32
    %11 = arith.cmpi ne, %10, %c0_i32_9 : i32
    scf.if %11 {
      %c0_10 = arith.constant 0 : index
      %c0_11 = arith.constant 0 : index
      %12 = vector.load %arg7[%c0_10, %c0_11] : memref<4x10xf32, #tpu.memory_space<vmem>>, vector<4x10xf32>
      %c0_12 = arith.constant 0 : index
      %c0_13 = arith.constant 0 : index
      %13 = vector.load %arg5[%c0_12, %c0_13] : memref<1x10xf32, #tpu.memory_space<vmem>>, vector<1x10xf32>
      %14 = vector.broadcast %13 : vector<1x10xf32> to vector<4x10xf32>
      %15 = arith.addf %12, %14 : vector<4x10xf32>
      %c0_14 = arith.constant 0 : index
      %c0_15 = arith.constant 0 : index
      %16 = vector.load %arg6[%c0_14, %c0_15] : memref<4x10xf32, #tpu.memory_space<vmem>>, vector<4x10xf32>
      tpu.vector_store %arg6[%c0_14, %c0_15], %15 {strides = array<i32>} : memref<4x10xf32, #tpu.memory_space<vmem>>, vector<4x10xf32>,
    } else {
    }
    return
  }
  func.func @transform_0(%arg0: i32, %arg1: i32, %arg2: i32) -> (i32, i32) {
    %c0_i32 = arith.constant 0 : i32
    return %arg0, %arg2 : i32, i32
  }
  func.func @transform_1(%arg0: i32, %arg1: i32, %arg2: i32) -> (i32, i32) {
    %c0_i32 = arith.constant 0 : i32
    return %arg2, %arg1 : i32, i32
  }
  func.func @transform_2(%arg0: i32, %arg1: i32, %arg2: i32) -> (i32, i32) {
    %c0_i32 = arith.constant 0 : i32
    %c0_i32_0 = arith.constant 0 : i32
    return %c0_i32, %arg1 : i32, i32
  }
  func.func @transform_3(%arg0: i32, %arg1: i32, %arg2: i32) -> (i32, i32) {
    %c0_i32 = arith.constant 0 : i32
    return %arg0, %arg1 : i32, i32
  }
}

</mosaic_0001>

<bundles_post_ra>
// kernel: endomamba_forward.41
= control target key start
LH: loop header
LB: loop body
LE: loop exit
PB: predicated region body
PF: predicated region fallthrough
CT: control target
= control target key end

     0   :  { %vm19_vm0 = vcmask 261120   ;;  %vm26_vm1 = vcmask 257024   ;;  %vm68_vm2 = vcmask 254976   ;;  %s148_s0 = inlined_call_operand.vmem [shape: f32[20,32], index: 0, kind: input, shape index: {}]   ;;  %s149_s3 = inlined_call_operand.vmem [shape: f32[20,32], index: 3, kind: output, shape index: {1}]   ;;  %s150_s1 = inlined_call_operand.vmem [shape: f32[1,32], index: 1, kind: input, shape index: {}]   ;;  %s151_s2 = inlined_call_operand.vmem [shape: bf16[20,32], index: 2, kind: output, shape index: {0}]  }
   0x1   :  { %v13_v0 = vld [vmem:[%s148_s0] sm:$0xff]  ;;  %v15_v1 = vld [vmem:[%s148_s0 + $0x10] sm:$0xf]  ;;  %v14_v2 = vld [vmem:[%s148_s0 + $0x8] sm:$0xff] }
   0x2   :  { %v16_v3 = vmul.f32 %v13_v0, %v13_v0  ;;  %70 = vst.msk [vmem:[%s149_s3] sm:$0xff] %vm19_vm0, %v13_v0  ;;  %v18_v4 = vmul.f32 %v15_v1, %v15_v1  ;;  %v17_v5 = vmul.f32 %v14_v2, %v14_v2  ;;  %71 = vst.msk [vmem:[%s149_s3 + $0x8] sm:$0xff] %vm19_vm0, %v14_v2  ;;  %v81_v19 = vld [vmem:[%s150_s1] ss:$0 sm:$0xff] }
   0x3   :  { %72 = vst.msk [vmem:[%s149_s3 + $0x10] sm:$0xf] %vm26_vm1, %v15_v1 }
   0x4   :  { %v20_v6 = vsel %vm19_vm0, %v16_v3, 0.0  ;;  %v27_v7 = vsel %vm26_vm1, %v18_v4, 0.0  ;;  %v23_v8 = vsel %vm19_vm0, %v17_v5, 0.0 }
   0x5   :  { %21 = vadd.xlane.f32.xlu0 %v20_v6  ;;  %28 = vadd.xlane.f32.xlu1 %v27_v7 }
   0x9   :  { %24 = vadd.xlane.f32.xlu0 %v23_v8 }
  0x92   :  { %v22_v9 = vpop.xlane.xlu0 %21  ;;  %v29_v10 = vpop.xlane.xlu1 %28 }
  0x93   :  { %v31_v11 = vmul.f32 0.03125, %v22_v9  ;;  %v33_v12 = vmul.f32 0.03125, %v29_v10 }
  0x95   :  { %v34_v13 = vadd.f32 1e-05, %v31_v11  ;;  %v36_v14 = vadd.f32 1e-05, %v33_v12 }
  0x96   :  { %v25_v15 = vpop.xlane.xlu0 %24 }
  0x97   :  { %88 = vrsqrt.f32 %v34_v13  ;;  %v32_v16 = vmul.f32 0.03125, %v25_v15 }
  0x98   :  { %90 = vrsqrt.f32 %v36_v14 }
  0x99   :  { %v35_v17 = vadd.f32 1e-05, %v32_v16 }
  0x9b   :  { %92 = vrsqrt.f32 %v35_v17 }
  0xa1   :  { %v89_v18 = vpop.eup %88 }
  0xa2   :  { %v91_v20 = vpop.eup %90  ;;  %v40_v21 = vmul.f32 %v89_v18, %v13_v0 }
  0xa3   :  { %v42_v22 = vmul.f32 %v91_v20, %v15_v1 }
  0xa4   :  { %v50_v23 = vmul.f32 %v81_v19, %v40_v21 }
  0xa5   :  { %v93_v24 = vpop.eup %92  ;;  %v52_v25 = vmul.f32 %v81_v19, %v42_v22 }
  0xa6   :  { %v85_v26 = vpack.c.bf16 %v50_v23, %v50_v23  ;;  %v41_v27 = vmul.f32 %v93_v24, %v14_v2 }
  0xa7   :  { %v87_v28 = vpack.c.bf16 %v52_v25, %v52_v25 }
  0xa8   :  { %66 = vst.msk [vmem:[%s151_s2] sm:$0xf] %vm26_vm1, %v85_v26  ;;  %v51_v29 = vmul.f32 %v81_v19, %v41_v27 }
  0xa9   :  { %69 = vst.msk [vmem:[%s151_s2 + $0x8] sm:$0x3] %vm68_vm2, %v87_v28 }
  0xaa   :  { %v86_v30 = vpack.c.bf16 %v51_v29, %v51_v29 }
  0xac   :  { %67 = vst.msk [vmem:[%s151_s2 + $0x4] sm:$0xf] %vm26_vm1, %v86_v30 }

// kernel: endomamba_forward.40
= control target key start
LH: loop header
LB: loop body
LE: loop exit
PB: predicated region body
PF: predicated region fallthrough
CT: control target
= control target key end

     0   :  { %vm19_vm0 = vcmask 261120   ;;  %v234_v0 = vmov 0   ;;  %v235_v2 = vmov 0.0   ;;  %vm131_vm1 = vcmask 523264   ;;  %s313_s1 = inlined_call_operand.vmem [shape: bf16[192,32], index: 1, kind: input, shape index: {}]   ;;  %s314_s0 = inlined_call_operand.vmem [shape: bf16[16,192], index: 0, kind: input, shape index: {}]   ;;  %s315_s2 = inlined_call_operand.vmem [shape: f32[1,32], index: 2, kind: input, shape index: {}]   ;;  %s316_s3 = inlined_call_operand.vmem [shape: f32[16,32], index: 3, kind: output, shape index: {}]  }
   0x1   :  { %135 = vmatprep.subr.bf16.mxu0 %v234_v0  ;;  %v219_v1 = vld [vmem:[%s313_s1] sm:$0xff]   ;;  %20 = vst.msk [vmem:[#allocation2] sm:$0xff] %vm19_vm0, %v235_v2  ;;  %21 = vst.msk [vmem:[#allocation2 + $0x8] sm:$0xff] %vm19_vm0, %v235_v2  ;;  %v220_v3 = vld [vmem:[%s313_s1 + $0x8] sm:$0xff]  }
   0x2   :  { %136 = vmatpush1.bf16.msra.mxu0 %v219_v1  ;;  %v221_v4 = vld [vmem:[%s313_s1 + $0x10] sm:$0xff]   ;;  %v222_v5 = vld [vmem:[%s313_s1 + $0x18] sm:$0xff]   ;;  %v233_v6 = vld [vmem:[%s314_s0 + $0x4] ss:$8 sps:$4 sm:$0xff]  }
   0x3   :  { %137 = vmatprep.subr.bf16.mxu0 %v234_v0  ;;  %v223_v7 = vld [vmem:[%s313_s1 + $0x20] sm:$0xff]   ;;  %215 = vmatprep.mubr.msk.bf16.mxu0 %vm131_vm1, %v233_v6  ;;  %v224_v8 = vld [vmem:[%s313_s1 + $0x28] sm:$0xff]   ;;  %v225_v9 = vld [vmem:[%s313_s1 + $0x30] sm:$0xff]  }
   0x4   :  { %v226_v10 = vld [vmem:[%s313_s1 + $0x38] sm:$0xff]   ;;  %v227_v11 = vld [vmem:[%s313_s1 + $0x40] sm:$0xff]   ;;  %v228_v12 = vld [vmem:[%s313_s1 + $0x48] sm:$0xff]  }
   0x5   :  { %v229_v13 = vld [vmem:[%s313_s1 + $0x50] sm:$0xff]   ;;  %v230_v14 = vld [vmem:[%s313_s1 + $0x58] sm:$0xff]   ;;  %v231_v15 = vld [vmem:[%s314_s0] ss:$8 sps:$4 sm:$0xff]  }
   0x6   :  { %138 = vmatpush1.bf16.msra.mxu0 %v220_v3  ;;  %v216_v24 = vld [vmem:[%s315_s2] ss:$0 sm:$0xff] }
   0x7   :  { %139 = vmatprep.subr.bf16.mxu0 %v234_v0 }
   0x8   :  { %v22_v16 = vld [vmem:[#allocation2] sm:$0xff]  ;;  %v23_v18 = vld [vmem:[#allocation2 + $0x8] sm:$0xff] }
   0xa   :  { %140 = vmatpush1.bf16.msra.mxu0 %v221_v4 }
   0xb   :  { %141 = vmatprep.subr.bf16.mxu0 %v234_v0 }
   0xe   :  { %142 = vmatpush1.bf16.msra.mxu0 %v222_v5 }
   0xf   :  { %143 = vmatprep.subr.bf16.mxu0 %v234_v0 }
  0x12   :  { %144 = vmatpush1.bf16.msra.mxu0 %v223_v7 }
  0x13   :  { %145 = vmatprep.subr.bf16.mxu0 %v234_v0 }
  0x16   :  { %146 = vmatpush1.bf16.msra.mxu0 %v224_v8 }
  0x17   :  { %147 = vmatprep.subr.bf16.mxu0 %v234_v0 }
  0x1a   :  { %148 = vmatpush1.bf16.msra.mxu0 %v225_v9 }
  0x1b   :  { %149 = vmatprep.subr.bf16.mxu0 %v234_v0 }
  0x1e   :  { %150 = vmatpush1.bf16.msra.mxu0 %v226_v10 }
  0x1f   :  { %151 = vmatprep.subr.bf16.mxu0 %v234_v0 }
  0x22   :  { %152 = vmatpush1.bf16.msra.mxu0 %v227_v11 }
  0x23   :  { %153 = vmatprep.subr.bf16.mxu0 %v234_v0 }
  0x26   :  { %154 = vmatpush1.bf16.msra.mxu0 %v228_v12 }
  0x27   :  { %155 = vmatprep.subr.bf16.mxu0 %v234_v0 }
  0x2a   :  { %156 = vmatpush1.bf16.msra.mxu0 %v229_v13 }
  0x2b   :  { %157 = vmatprep.subr.bf16.mxu0 %v234_v0 }
  0x2e   :  { %158 = vmatpush1.bf16.msra.mxu0 %v230_v14 }
  0x31   :  { %168 = vmatmul.mubr.bf16.vlgmr.msra.gmra.mrb[0].mxu0 %v231_v15 }
 0x104   :  { %v169_v17 = vpop.f32.mrb[0].mxu0 }
 0x105   :  { %v176_v19 = vadd.f32 %v169_v17, %v22_v16  ;;  %v171_v20 = vpop.f32.mrb[1].mxu0 }
 0x106   :  { %v172_v21 = vpop.f32.mrb[2].mxu0 }
 0x107   :  { %179 = vst.msk [vmem:[#allocation2] sm:$0xff] %vm19_vm0, %v176_v19  ;;  %v177_v22 = vadd.f32 %v172_v21, %v23_v18  ;;  %v174_v23 = vpop.f32.mrb[3].mxu0 }
 0x109   :  { %180 = vst.msk [vmem:[#allocation2 + $0x8] sm:$0xff] %vm19_vm0, %v177_v22 }
 0x10e   :  { %v184_v25 = vld [vmem:[#allocation2] sm:$0xff] }
 0x10f   :  { %v193_v26 = vadd.f32 %v216_v24, %v184_v25 }
 0x110   :  { %v185_v27 = vld [vmem:[#allocation2 + $0x8] sm:$0xff] }
 0x111   :  { %195 = vst.msk [vmem:[%s316_s3] sm:$0xff] %vm19_vm0, %v193_v26  ;;  %v194_v28 = vadd.f32 %v216_v24, %v185_v27 }
 0x113   :  { %196 = vst.msk [vmem:[%s316_s3 + $0x8] sm:$0xff] %vm19_vm0, %v194_v28 }

// kernel: endomamba_forward.42
= control target key start
LH: loop header
LB: loop body
LE: loop exit
PB: predicated region body
PF: predicated region fallthrough
CT: control target
= control target key end

     0   :  { %v184_v1 = vmov 0.0   ;;  %vm52_vm0 = vcmask 261120   ;;  %s226_s1 = inlined_call_operand.vmem [shape: bf16[32,128], index: 1, kind: input, shape index: {}]   ;;  %s227_s0 = inlined_call_operand.vmem [shape: bf16[20,32], index: 0, kind: input, shape index: {}]   ;;  %s228_s2 = inlined_call_operand.vmem [shape: f32[1,128], index: 2, kind: input, shape index: {}]   ;;  %s229_s3 = inlined_call_operand.vmem [shape: bf16[20,128], index: 3, kind: output, shape index: {}]  }
   0x1   :  { %v180_v0 = vld [vmem:[%s226_s1] sm:$0xff]   ;;  %21 = vst [vmem:[#allocation2 + $0x10] sm:$0xf] %v184_v1  ;;  %v181_v2 = vld [vmem:[%s226_s1 + $0x8] sm:$0xff]  }
   0x2   :  { %171 = vmatprep.subr.bf16.mxu0 %v180_v0  ;;  %v182_v3 = vld [vmem:[%s227_s0] sm:$0xff]   ;;  %v183_v4 = vld [vmem:[%s227_s0 + $0x8] ss:$0 sps:$4 sm:$0x33]  }
   0x3   :  { %172 = vmatpush3.bf16.msra.mxu0 %v180_v0  ;;  %175 = vmatprep.mubr.msk.bf16.mxu0 %vm52_vm0, %v182_v3  ;;  %v155_v10 = vld [vmem:[%s228_s2] ss:$0 sm:$0xff] }
   0x4   :  { %173 = vmatprep.subr.bf16.mxu0 %v181_v2 }
   0x7   :  { %174 = vmatpush3.bf16.msra.mxu0 %v181_v2 }
   0x8   :  { %v24_v5 = vld [vmem:[#allocation2 + $0x10] sm:$0xf] }
   0xa   :  { %176 = vmatmul.mubr.msk.bf16.vlgmr.msra.gmra.mrb[0].mxu0 %vm52_vm0, %v183_v4 }
  0xdd   :  { %v177_v6 = vpop.f32.mrb[0].mxu0 }
  0xde   :  { %v109_v7 = vadd.f32 %v177_v6, %v24_v5  ;;  %v93_v8 = vpop.f32.mrb[1].mxu0 }
  0xdf   :  { %v178_v9 = vpop.f32.mrb[2].mxu0  ;;  %v126_v12 = vadd.f32 %v155_v10, %v93_v8 }
  0xe0   :  { %112 = vst [vmem:[#allocation2 + $0x10] sm:$0xf] %v109_v7  ;;  %v96_v11 = vpop.f32.mrb[3].mxu0 }
  0xe1   :  { %v127_v13 = vadd.f32 %v155_v10, %v96_v11 }
  0xe3   :  { %v165_v14 = vpack.c.bf16 %v127_v13, %v126_v12 }
  0xe5   :  { %166 = vst [vmem:[%s229_s3] sm:$0xff] %v165_v14  }
  0xe7   :  { %v118_v15 = vld [vmem:[#allocation2 + $0x10] sm:$0xf] }
  0xe8   :  { %v128_v16 = vadd.f32 %v155_v10, %v118_v15 }
  0xea   :  { %v161_v17 = vpack.c.bf16 %v128_v16, %v128_v16 }
  0xec   :  { %144 = vst [vmem:[%s229_s3 + $0x8] sm:$0x3] %v161_v17 }

// kernel: endomamba_forward.47
= control target key start
LH: loop header
LB: loop body
LE: loop exit
PB: predicated region body
PF: predicated region fallthrough
CT: control target
= control target key end

     0   :  { %s553_s12 = smov 0   ;;  %s555_s13 = smov 0   ;;  %s608_s0 = inlined_call_operand.vmem [shape: bf16[4,8,64], index: 0, kind: input, shape index: {}]   ;;  %s609_s1 = inlined_call_operand.vmem [shape: f32[4,64], index: 1, kind: input, shape index: {}]   ;;  %s610_s2 = inlined_call_operand.vmem [shape: f32[1,64], index: 2, kind: input, shape index: {}]   ;;  %s611_s3 = inlined_call_operand.vmem [shape: bf16[4,8,64], index: 3, kind: output, shape index: {}]  }
   0x1   :  { %s557_s14 = smov 0  }
   0x2 LB: > { %s32_s15 = sadd.s32 1, %s526_s13  ;;  %p469_p0 = scmp.ge.s32.totalorder %s530_s14, 1  ;;  %s530_s14 = sphi %s557_s14, %s13_s14   ;;  %s526_s13 = sphi %s555_s13, %s613_s13   ;;  %s522_s12 = sphi %s553_s12, %s612_s12  }
   0x3   : > { %p34_p1 = scmp.ge.s32.totalorder %s32_s15, 4  ;;  %p192_p2 = scmp.lt.s32.totalorder %s530_s14, 5 }
   0x5   : > { %s615_s15 = smov (%p34_p1, %s32_s15), 0  ;;  %p193_p3 = pnand %p469_p0, %p192_p2 }
   0x6   : > { %vm270_vm0 = vcmask (!%p193_p3), 523264   ;;  %p236_p4 = scmp.lt.s32.totalorder (!%p193_p3), %s522_s12, 3  ;;  %v532_v0 = vmov (!%p193_p3), 0.0   ;;  %v472_v4 = vld [vmem:[%s609_s1 + $0x3] ss:$0 sm:$0xff] (!%p193_p3)  ;;  %v318_v26 = vlaneseq (!%p193_p3)  ;;  %vm339_vm3 = vcmask (!%p193_p3), 519168  }
   0x7   : > { %196 = sbr.rel (%p193_p3) target bundleno = 77 (0x4d), region = 32  ;;  %271 = vst.msk [vmem:[#allocation3] sm:$0xff] (!%p193_p3), %vm270_vm0, %v532_v0  ;;  %v473_v5 = vld [vmem:[%s610_s2] ss:$0 sm:$0xff] (!%p193_p3)  ;;  %v474_v8 = vld [vmem:[%s609_s1 + $0x2] ss:$0 sm:$0xff] (!%p193_p3) }
   0x8   : > { %v475_v11 = vld [vmem:[%s609_s1 + $0x1] ss:$0 sm:$0xff] (!%p193_p3)  ;;  %v476_v15 = vld [vmem:[%s609_s1] ss:$0 sm:$0xff] (!%p193_p3)  ;;  %v319_v27 = vshrl.u32 (!%p193_p3), %v318_v26, 7 }
   0xa   : > { %vm323_vm2 = vcmp.lt.s32.totalorder (!%p193_p3), %v319_v27, 5 }
   0xe   : > { %s617_s12 = smov (!%p236_p4, %s522_s12), 3  ;;  %v276_v3 = vld [vmem:[#allocation3] sm:$0xff] }
   0xf   : > { %s470_s16 = sshll.u32 %s617_s12, 2  ;;  %277 = vst.msk [vmem:[#allocation2 + $0x8] sm:$0xff] %vm270_vm0, %v276_v3 }
  0x10   : > { %s245_s19 = scalar_lea.vmem %s608_s0, %s470_s16  ;;  %s264_s5 = scalar_lea.vmem %s611_s3, %s470_s16 }
  0x11   : > { %v272_v1 = vld [vmem:[%s245_s19] sm:$0xf] }
  0x12   : > { %v273_v2 = vunpack.c.l.bf16 %v272_v1 }
  0x14   : > { %275 = vst.msk [vmem:[#allocation2] sm:$0xff] %vm270_vm0, %v273_v2  ;;  %341 = vst.msk [vmem:[#allocation3] sm:$0xff] %vm270_vm0, %v273_v2 }
  0x1b   : > { %v279_v6 = vld [vmem:[#allocation2] sm:$0xff] }
  0x1c   : > { %v293_v7 = vld [vmem:[#allocation2 + $0x1] sm:$0xff]  ;;  %v285_v9 = vmul.f32 %v472_v4, %v279_v6 }
  0x1d   : > { %v301_v10 = vld [vmem:[#allocation2 + $0x2] sm:$0xff]  ;;  %v299_v13 = vmul.f32 %v474_v8, %v293_v7 }
  0x1e   : > { %v292_v12 = vadd.f32 %v473_v5, %v285_v9  ;;  %v309_v14 = vld [vmem:[#allocation2 + $0x3] sm:$0xff]  ;;  %v307_v17 = vmul.f32 %v475_v11, %v301_v10 }
  0x1f   : > { %v315_v19 = vmul.f32 %v476_v15, %v309_v14 }
  0x20   : > { %v300_v16 = vadd.f32 %v299_v13, %v292_v12 }
  0x22   : > { %v308_v18 = vadd.f32 %v307_v17, %v300_v16 }
  0x24   : > { %v316_v20 = vadd.f32 %v315_v19, %v308_v18 }
  0x26   : > { %v324_v21 = vand.u32 2147483647, %v316_v20  ;;  %vm328_vm1 = vcmp.ge.f32.partialorder %v316_v20, 0.0 }
  0x28   : > { %v325_v22 = vsub.f32 0.0, %v324_v21 }
  0x2a   : > { %v326_v23 = vmul.f32 1.442695, %v325_v22 }
  0x2c   : > { %504 = vpow2.f32 %v326_v23 }
  0x36   : > { %v505_v24 = vpop.eup %504 }
  0x37   : > { %v329_v25 = vadd.f32 1.0, %v505_v24 }
  0x39   : > { %506 = vrcp.f32 %v329_v25 }
  0x43   : > { %v507_v28 = vpop.eup %506 }
  0x44   : > { %v332_v29 = vmul.f32 %v507_v28, %v505_v24 }
  0x46   : > { %v333_v30 = vsel %vm328_vm1, %v507_v28, %v332_v29 }
  0x47   : > { %v334_v31 = vmul.f32 %v333_v30, %v316_v20 }
  0x49   : > { %v337_v32 = vsel %vm323_vm2, %v334_v31, 0.0 }
  0x4a   : > { %v338_v33 = vpack.c.bf16 %v337_v32, %v337_v32 }
  0x4c   : > { %340 = vst.msk [vmem:[%s264_s5] sm:$0xf] %vm339_vm3, %v338_v33 }
  0x4d PF: > { %s13_s14 = sadd.s32 1, %s530_s14   ;;  %s612_s12 = smov %s526_s13 }
  0x4e   : > { %p10_p5 = scmp.ge.s32.totalorder %s13_s14, 6   ;;  %s613_s13 = smov %s615_s15 }
  0x50   :  { %12 = sbr.rel (!%p10_p5) target bundleno = 2 (0x2), region = 72 }

// kernel: endomamba_forward.49
= control target key start
LH: loop header
LB: loop body
LE: loop exit
PB: predicated region body
PF: predicated region fallthrough
CT: control target
= control target key end

     0   :  { %vm50_vm0 = vcmask 1040384   ;;  %vm43_vm1 = vcmask 15360   ;;  %vm19_vm2 = vcmask 523264   ;;  %v181_v1 = vmov 0.0   ;;  %s234_s1 = inlined_call_operand.vmem [shape: bf16[2,64], index: 1, kind: input, shape index: {}]   ;;  %s235_s0 = inlined_call_operand.vmem [shape: bf16[32,2], index: 0, kind: input, shape index: {}]   ;;  %s236_s2 = inlined_call_operand.vmem [shape: f32[1,64], index: 2, kind: input, shape index: {}]   ;;  %s237_s3 = inlined_call_operand.vmem [shape: bf16[32,64], index: 3, kind: output, shape index: {}]  }
   0x1   :  { %v32_v0 = vld [vmem:[%s234_s1] sm:$0x1]  ;;  %22 = vst.msk [vmem:[#allocation2 + $0x10] sm:$0xff] %vm19_vm2, %v181_v1  ;;  %20 = vst.msk [vmem:[#allocation2] sm:$0xff] %vm19_vm2, %v181_v1  ;;  %v180_v4 = vld [vmem:[%s235_s0 + $0x8] sm:$0xff]   ;;  %vm146_vm3 = vcmask 519168  }
   0x2   :  { %21 = vst.msk [vmem:[#allocation2 + $0x8] sm:$0xff] %vm19_vm2, %v181_v1  ;;  %23 = vst.msk [vmem:[#allocation2 + $0x18] sm:$0xff] %vm19_vm2, %v181_v1  ;;  %177 = vmatprep.subr.msk.bf16.mxu0 %vm50_vm0, %v32_v0  ;;  %v52_v2 = vsel %vm50_vm0, %v32_v0, 0  ;;  %v179_v3 = vld [vmem:[%s235_s0] sm:$0xff]  }
   0x3   :  { %172 = vmatpush3.bf16.msra.mxu0 %v52_v2  ;;  %173 = vmatprep.mubr.msk.bf16.mxu0 %vm43_vm1, %v179_v3  ;;  %v159_v17 = vld [vmem:[%s236_s2] ss:$0 sm:$0xff] }
   0x6   :  { %174 = vmatmul.mubr.msk.bf16.vlgmr.msra.gmra.mrb[0].mxu0 %vm43_vm1, %v180_v4 }
   0x8   :  { %v26_v5 = vld [vmem:[#allocation2 + $0x10] sm:$0xff]  ;;  %v24_v6 = vld [vmem:[#allocation2] sm:$0xff] }
   0x9   :  { %v27_v8 = vld [vmem:[#allocation2 + $0x18] sm:$0xff]  ;;  %v25_v11 = vld [vmem:[#allocation2 + $0x8] sm:$0xff] }
  0xd9   :  { %v175_v7 = vpop.f32.mrb[0].mxu0 }
  0xda   :  { %v105_v9 = vadd.f32 %v175_v7, %v26_v5  ;;  %v88_v10 = vpop.f32.mrb[1].mxu0 }
  0xdb   :  { %v103_v12 = vadd.f32 %v88_v10, %v24_v6  ;;  %v176_v13 = vpop.f32.mrb[2].mxu0 }
  0xdc   :  { %110 = vst.msk [vmem:[#allocation2 + $0x10] sm:$0xff] %vm19_vm2, %v105_v9  ;;  %v106_v14 = vadd.f32 %v176_v13, %v27_v8  ;;  %v91_v15 = vpop.f32.mrb[3].mxu0 }
  0xdd   :  { %108 = vst.msk [vmem:[#allocation2] sm:$0xff] %vm19_vm2, %v103_v12  ;;  %v104_v16 = vadd.f32 %v91_v15, %v25_v11 }
  0xde   :  { %111 = vst.msk [vmem:[#allocation2 + $0x18] sm:$0xff] %vm19_vm2, %v106_v14 }
  0xdf   :  { %109 = vst.msk [vmem:[#allocation2 + $0x8] sm:$0xff] %vm19_vm2, %v104_v16 }
  0xe3   :  { %v117_v18 = vld [vmem:[#allocation2 + $0x10] sm:$0xff] }
  0xe4   :  { %v128_v19 = vadd.f32 %v159_v17, %v117_v18  ;;  %v115_v20 = vld [vmem:[#allocation2] sm:$0xff] }
  0xe5   :  { %v126_v21 = vadd.f32 %v159_v17, %v115_v20  ;;  %v118_v22 = vld [vmem:[#allocation2 + $0x18] sm:$0xff] }
  0xe6   :  { %v166_v23 = vpack.c.bf16 %v128_v19, %v128_v19  ;;  %v129_v24 = vadd.f32 %v159_v17, %v118_v22  ;;  %v116_v25 = vld [vmem:[#allocation2 + $0x8] sm:$0xff] }
  0xe7   :  { %v164_v26 = vpack.c.bf16 %v126_v21, %v126_v21  ;;  %v127_v27 = vadd.f32 %v159_v17, %v116_v25 }
  0xe8   :  { %149 = vst.msk [vmem:[%s237_s3 + $0x8] sm:$0xf] %vm146_vm3, %v166_v23  ;;  %v167_v28 = vpack.c.bf16 %v129_v24, %v129_v24 }
  0xe9   :  { %147 = vst.msk [vmem:[%s237_s3] sm:$0xf] %vm146_vm3, %v164_v26  ;;  %v165_v29 = vpack.c.bf16 %v127_v27, %v127_v27 }
  0xea   :  { %150 = vst.msk [vmem:[%s237_s3 + $0xc] sm:$0xf] %vm146_vm3, %v167_v28 }
  0xeb   :  { %148 = vst.msk [vmem:[%s237_s3 + $0x4] sm:$0xf] %vm146_vm3, %v165_v29 }

// kernel: endomamba_forward.48
= control target key start
LH: loop header
LB: loop body
LE: loop exit
PB: predicated region body
PF: predicated region fallthrough
CT: control target
= control target key end

     0   :  { %vm19_vm0 = vcmask 277504   ;;  %v224_v1 = vmov 0.0   ;;  %vm74_vm1 = vcmask 523264   ;;  %vm173_vm2 = vcmask 273408   ;;  %s286_s1 = inlined_call_operand.vmem [shape: bf16[64,34], index: 1, kind: input, shape index: {}]   ;;  %s287_s0 = inlined_call_operand.vmem [shape: bf16[32,64], index: 0, kind: input, shape index: {}]   ;;  %s288_s2 = inlined_call_operand.vmem [shape: f32[1,34], index: 2, kind: input, shape index: {}]   ;;  %s289_s3 = inlined_call_operand.vmem [shape: bf16[32,34], index: 3, kind: output, shape index: {}]  }
   0x1   :  { %v218_v0 = vld [vmem:[%s286_s1] sm:$0xff]   ;;  %22 = vst.msk [vmem:[#allocation2 + $0x10] sm:$0xff] %vm19_vm0, %v224_v1  ;;  %20 = vst.msk [vmem:[#allocation2] sm:$0xff] %vm19_vm0, %v224_v1  ;;  %v219_v2 = vld [vmem:[%s286_s1 + $0x8] sm:$0xff]  }
   0x2   :  { %21 = vst.msk [vmem:[#allocation2 + $0x8] sm:$0xff] %vm19_vm0, %v224_v1  ;;  %23 = vst.msk [vmem:[#allocation2 + $0x18] sm:$0xff] %vm19_vm0, %v224_v1  ;;  %205 = vmatprep.subr.bf16.mxu0 %v218_v0  ;;  %v220_v3 = vld [vmem:[%s286_s1 + $0x10] sm:$0xff]   ;;  %v222_v4 = vld [vmem:[%s287_s0] sm:$0xff]  }
   0x3   :  { %206 = vmatpush3.bf16.msra.mxu0 %v218_v0  ;;  %213 = vmatprep.mubr.msk.bf16.mxu0 %vm74_vm1, %v222_v4  ;;  %v221_v5 = vld [vmem:[%s286_s1 + $0x18] sm:$0xff]   ;;  %v223_v6 = vld [vmem:[%s287_s0 + $0x8] sm:$0xff]   ;;  %v190_v19 = vld [vmem:[%s288_s2] ss:$0 sm:$0xff] }
   0x4   :  { %207 = vmatprep.subr.bf16.mxu0 %v219_v2 }
   0x7   :  { %208 = vmatpush3.bf16.msra.mxu0 %v219_v2 }
   0x8   :  { %209 = vmatprep.subr.bf16.mxu0 %v220_v3  ;;  %v26_v7 = vld [vmem:[#allocation2 + $0x10] sm:$0xff]  ;;  %v24_v8 = vld [vmem:[#allocation2] sm:$0xff] }
   0x9   :  { %v27_v10 = vld [vmem:[#allocation2 + $0x18] sm:$0xff]  ;;  %v25_v13 = vld [vmem:[#allocation2 + $0x8] sm:$0xff] }
   0xb   :  { %210 = vmatpush3.bf16.msra.mxu0 %v220_v3 }
   0xc   :  { %211 = vmatprep.subr.bf16.mxu0 %v221_v5 }
   0xf   :  { %212 = vmatpush3.bf16.msra.mxu0 %v221_v5 }
  0x12   :  { %214 = vmatmul.mubr.msk.bf16.vlgmr.msra.gmra.mrb[0].mxu0 %vm74_vm1, %v223_v6 }
  0xe5   :  { %v215_v9 = vpop.f32.mrb[0].mxu0 }
  0xe6   :  { %v132_v11 = vadd.f32 %v215_v9, %v26_v7  ;;  %v115_v12 = vpop.f32.mrb[1].mxu0 }
  0xe7   :  { %v130_v14 = vadd.f32 %v115_v12, %v24_v8  ;;  %v216_v15 = vpop.f32.mrb[2].mxu0 }
  0xe8   :  { %137 = vst.msk [vmem:[#allocation2 + $0x10] sm:$0xff] %vm19_vm0, %v132_v11  ;;  %v133_v16 = vadd.f32 %v216_v15, %v27_v10  ;;  %v118_v17 = vpop.f32.mrb[3].mxu0 }
  0xe9   :  { %135 = vst.msk [vmem:[#allocation2] sm:$0xff] %vm19_vm0, %v130_v14  ;;  %v131_v18 = vadd.f32 %v118_v17, %v25_v13 }
  0xea   :  { %138 = vst.msk [vmem:[#allocation2 + $0x18] sm:$0xff] %vm19_vm0, %v133_v16 }
  0xeb   :  { %136 = vst.msk [vmem:[#allocation2 + $0x8] sm:$0xff] %vm19_vm0, %v131_v18 }
  0xef   :  { %v144_v20 = vld [vmem:[#allocation2 + $0x10] sm:$0xff] }
  0xf0   :  { %v155_v21 = vadd.f32 %v190_v19, %v144_v20  ;;  %v142_v22 = vld [vmem:[#allocation2] sm:$0xff] }
  0xf1   :  { %v153_v23 = vadd.f32 %v190_v19, %v142_v22  ;;  %v145_v24 = vld [vmem:[#allocation2 + $0x18] sm:$0xff] }
  0xf2   :  { %v197_v25 = vpack.c.bf16 %v155_v21, %v155_v21  ;;  %v156_v26 = vadd.f32 %v190_v19, %v145_v24  ;;  %v143_v27 = vld [vmem:[#allocation2 + $0x8] sm:$0xff] }
  0xf3   :  { %v195_v28 = vpack.c.bf16 %v153_v23, %v153_v23  ;;  %v154_v29 = vadd.f32 %v190_v19, %v143_v27 }
  0xf4   :  { %176 = vst.msk [vmem:[%s289_s3 + $0x8] sm:$0xf] %vm173_vm2, %v197_v25  ;;  %v198_v30 = vpack.c.bf16 %v156_v26, %v156_v26 }
  0xf5   :  { %174 = vst.msk [vmem:[%s289_s3] sm:$0xf] %vm173_vm2, %v195_v28  ;;  %v196_v31 = vpack.c.bf16 %v154_v29, %v154_v29 }
  0xf6   :  { %177 = vst.msk [vmem:[%s289_s3 + $0xc] sm:$0xf] %vm173_vm2, %v198_v30 }
  0xf7   :  { %175 = vst.msk [vmem:[%s289_s3 + $0x4] sm:$0xf] %vm173_vm2, %v196_v31 }

// kernel: endomamba_forward.43
= control target key start
LH: loop header
LB: loop body
LE: loop exit
PB: predicated region body
PF: predicated region fallthrough
CT: control target
= control target key end

     0   :  { %s537_s12 = smov 0   ;;  %s539_s13 = smov 0   ;;  %s592_s0 = inlined_call_operand.vmem [shape: bf16[4,8,64], index: 0, kind: input, shape index: {}]   ;;  %s593_s1 = inlined_call_operand.vmem [shape: f32[4,64], index: 1, kind: input, shape index: {}]   ;;  %s594_s2 = inlined_call_operand.vmem [shape: f32[1,64], index: 2, kind: input, shape index: {}]   ;;  %s595_s3 = inlined_call_operand.vmem [shape: bf16[4,8,64], index: 3, kind: output, shape index: {}]  }
   0x1   :  { %s541_s14 = smov 0  }
   0x2 LB: > { %s32_s15 = sadd.s32 1, %s510_s13  ;;  %p453_p0 = scmp.ge.s32.totalorder %s514_s14, 1  ;;  %s514_s14 = sphi %s541_s14, %s13_s14   ;;  %s510_s13 = sphi %s539_s13, %s597_s13   ;;  %s506_s12 = sphi %s537_s12, %s596_s12  }
   0x3   : > { %p34_p1 = scmp.ge.s32.totalorder %s32_s15, 4  ;;  %p186_p2 = scmp.lt.s32.totalorder %s514_s14, 5 }
   0x5   : > { %s599_s15 = smov (%p34_p1, %s32_s15), 0  ;;  %p187_p3 = pnand %p453_p0, %p186_p2 }
   0x6   : > { %vm258_vm0 = vcmask (!%p187_p3), 523264   ;;  %p227_p4 = scmp.lt.s32.totalorder (!%p187_p3), %s506_s12, 3  ;;  %v516_v0 = vmov (!%p187_p3), 0.0   ;;  %v456_v4 = vld [vmem:[%s593_s1] ss:$0 sm:$0xff] (!%p187_p3)  ;;  %v305_v26 = vlaneseq (!%p187_p3)  ;;  %vm326_vm3 = vcmask (!%p187_p3), 519168  }
   0x7   : > { %190 = sbr.rel (%p187_p3) target bundleno = 77 (0x4d), region = 32  ;;  %259 = vst.msk [vmem:[#allocation3] sm:$0xff] (!%p187_p3), %vm258_vm0, %v516_v0  ;;  %v457_v5 = vld [vmem:[%s594_s2] ss:$0 sm:$0xff] (!%p187_p3)  ;;  %v458_v8 = vld [vmem:[%s593_s1 + $0x1] ss:$0 sm:$0xff] (!%p187_p3) }
   0x8   : > { %v459_v11 = vld [vmem:[%s593_s1 + $0x2] ss:$0 sm:$0xff] (!%p187_p3)  ;;  %v460_v15 = vld [vmem:[%s593_s1 + $0x3] ss:$0 sm:$0xff] (!%p187_p3)  ;;  %v306_v27 = vshrl.u32 (!%p187_p3), %v305_v26, 7 }
   0xa   : > { %vm310_vm2 = vcmp.lt.s32.totalorder (!%p187_p3), %v306_v27, 5 }
   0xe   : > { %s601_s12 = smov (!%p227_p4, %s506_s12), 3  ;;  %v262_v3 = vld [vmem:[#allocation3] sm:$0xff] }
   0xf   : > { %s454_s16 = sshll.u32 %s601_s12, 2  ;;  %264 = vst.msk [vmem:[#allocation2] sm:$0xff] %vm258_vm0, %v262_v3 }
  0x10   : > { %s236_s19 = scalar_lea.vmem %s592_s0, %s454_s16  ;;  %s253_s5 = scalar_lea.vmem %s595_s3, %s454_s16 }
  0x11   : > { %v260_v1 = vld [vmem:[%s236_s19] sm:$0xf] }
  0x12   : > { %v261_v2 = vunpack.c.l.bf16 %v260_v1 }
  0x14   : > { %265 = vst.msk [vmem:[#allocation2 + $0x8] sm:$0xff] %vm258_vm0, %v261_v2  ;;  %328 = vst.msk [vmem:[#allocation3] sm:$0xff] %vm258_vm0, %v261_v2 }
  0x1b   : > { %v267_v6 = vld [vmem:[#allocation2 + $0x5] sm:$0xff] }
  0x1c   : > { %v281_v7 = vld [vmem:[#allocation2 + $0x6] sm:$0xff]  ;;  %v273_v9 = vmul.f32 %v456_v4, %v267_v6 }
  0x1d   : > { %v289_v10 = vld [vmem:[#allocation2 + $0x7] sm:$0xff]  ;;  %v287_v13 = vmul.f32 %v458_v8, %v281_v7 }
  0x1e   : > { %v280_v12 = vadd.f32 %v457_v5, %v273_v9  ;;  %v297_v14 = vld [vmem:[#allocation2 + $0x8] sm:$0xff]  ;;  %v295_v17 = vmul.f32 %v459_v11, %v289_v10 }
  0x1f   : > { %v303_v19 = vmul.f32 %v460_v15, %v297_v14 }
  0x20   : > { %v288_v16 = vadd.f32 %v287_v13, %v280_v12 }
  0x22   : > { %v296_v18 = vadd.f32 %v295_v17, %v288_v16 }
  0x24   : > { %v304_v20 = vadd.f32 %v303_v19, %v296_v18 }
  0x26   : > { %v311_v21 = vand.u32 2147483647, %v304_v20  ;;  %vm315_vm1 = vcmp.ge.f32.partialorder %v304_v20, 0.0 }
  0x28   : > { %v312_v22 = vsub.f32 0.0, %v311_v21 }
  0x2a   : > { %v313_v23 = vmul.f32 1.442695, %v312_v22 }
  0x2c   : > { %488 = vpow2.f32 %v313_v23 }
  0x36   : > { %v489_v24 = vpop.eup %488 }
  0x37   : > { %v316_v25 = vadd.f32 1.0, %v489_v24 }
  0x39   : > { %490 = vrcp.f32 %v316_v25 }
  0x43   : > { %v491_v28 = vpop.eup %490 }
  0x44   : > { %v319_v29 = vmul.f32 %v491_v28, %v489_v24 }
  0x46   : > { %v320_v30 = vsel %vm315_vm1, %v491_v28, %v319_v29 }
  0x47   : > { %v321_v31 = vmul.f32 %v320_v30, %v304_v20 }
  0x49   : > { %v324_v32 = vsel %vm310_vm2, %v321_v31, 0.0 }
  0x4a   : > { %v325_v33 = vpack.c.bf16 %v324_v32, %v324_v32 }
  0x4c   : > { %327 = vst.msk [vmem:[%s253_s5] sm:$0xf] %vm326_vm3, %v325_v33 }
  0x4d PF: > { %s13_s14 = sadd.s32 1, %s514_s14   ;;  %s596_s12 = smov %s510_s13 }
  0x4e   : > { %p10_p5 = scmp.ge.s32.totalorder %s13_s14, 6   ;;  %s597_s13 = smov %s599_s15 }
  0x50   :  { %12 = sbr.rel (!%p10_p5) target bundleno = 2 (0x2), region = 72 }

// kernel: endomamba_forward.50
= control target key start
LH: loop header
LB: loop body
LE: loop exit
PB: predicated region body
PF: predicated region fallthrough
CT: control target
= control target key end

     0   :  { %s1550_s27 = smov 0   ;;  %s1552_s28 = smov 0   ;;  %s1765_s0 = inlined_call_operand.vmem [shape: bf16[4,8,64], index: 0, kind: input, shape index: {}]   ;;  %s1766_s1 = inlined_call_operand.vmem [shape: bf16[4,8,64], index: 1, kind: input, shape index: {}]   ;;  %s1767_s2 = inlined_call_operand.vmem [shape: bf16[4,8,64], index: 2, kind: input, shape index: {}]   ;;  %s1768_s3 = inlined_call_operand.vmem [shape: bf16[4,16,8], index: 3, kind: input, shape index: {}]   ;;  %s1769_s4 = inlined_call_operand.vmem [shape: bf16[4,16,8], index: 4, kind: input, shape index: {}]   ;;  %s1770_s5 = inlined_call_operand.vmem [shape: f32[16,64], index: 5, kind: input, shape index: {}]   ;;  %s1771_s6 = inlined_call_operand.vmem [shape: f32[1,64], index: 6, kind: input, shape index: {}]   ;;  %s1772_s7 = inlined_call_operand.vmem [shape: f32[1,64], index: 7, kind: input, shape index: {}]   ;;  %s1773_s8 = inlined_call_operand.vmem [shape: bf16[4,8,64], index: 8, kind: output, shape index: {}]  }
   0x1   :  { %s1554_s29 = smov 0  }
   0x2 LB: > { %s37_s30 = sadd.s32 1, %s1490_s28  ;;  %p1280_p0 = scmp.ge.s32.totalorder %s1494_s29, 1  ;;  %s1494_s29 = sphi %s1554_s29, %s18_s29   ;;  %s1490_s28 = sphi %s1552_s28, %s1775_s28   ;;  %s1486_s27 = sphi %s1550_s27, %s1774_s27  }
   0x3   : > { %p39_p1 = scmp.ge.s32.totalorder %s37_s30, 4  ;;  %p413_p2 = scmp.lt.s32.totalorder %s1494_s29, 5 }
   0x5   : > { %s1777_s30 = smov (%p39_p1, %s37_s30), 0  ;;  %p414_p3 = pnand %p1280_p0, %p413_p2 }
   0x6   : > { %p512_p4 = scmp.lt.s32.totalorder (!%p414_p3), %s1486_s27, 3  ;;  %v1496_v0 = vmov (!%p414_p3), 5   ;;  %v1497_v1 = vmov (!%p414_p3), 7   ;;  %vm597_vm0 = vcmask (!%p414_p3), 523264   ;;  %v1498_v3 = vmov (!%p414_p3), 0.0   ;;  %v1599_v38 = vld [vmem:[%s1770_s5] sm:$0xff] (!%p414_p3) }
   0x7   : > { %417 = sbr.rel (%p414_p3) target bundleno = 229 (0xe5), region = 52  ;;  %1348 = vset.pattern.permute.xlu1 (!%p414_p3), %v1496_v0  ;;  %1336 = vset.pattern.permute.xlu0 (!%p414_p3), %v1497_v1  ;;  %598 = vst.msk [vmem:[#allocation2] sm:$0xff] (!%p414_p3), %vm597_vm0, %v1498_v3  ;;  %599 = vst.msk [vmem:[#allocation2 + $0x8] sm:$0xff] (!%p414_p3), %vm597_vm0, %v1498_v3  ;;  %v1289_v4 = vld [vmem:[%s1772_s7] ss:$0 sm:$0xff] (!%p414_p3)  ;;  %v1499_v13 = vmov (!%p414_p3), 4   ;;  %v646_v33 = vlaneseq (!%p414_p3) }
   0x8   : > { %v1500_v14 = vmov (!%p414_p3), 6   ;;  %v1501_v18 = vmov (!%p414_p3), 3   ;;  %v1502_v19 = vmov (!%p414_p3), 2   ;;  %v1503_v21 = vmov (!%p414_p3), 1   ;;  %v1604_v39 = vld [vmem:[%s1770_s5 + $0x8] sm:$0xff] (!%p414_p3) }
   0x9   : > { %v1504_v25 = vmov (!%p414_p3), 0   ;;  %v1590_v34 = vshrl.u32 (!%p414_p3), %v646_v33, 7  ;;  %vm1026_vm3 = vcmask (!%p414_p3), 1040384   ;;  %vm1028_vm4 = vcmask (!%p414_p3), 1041408  }
   0xa   : > { %vm1030_vm5 = vcmask (!%p414_p3), 1042432   ;;  %vm1032_vm6 = vcmask (!%p414_p3), 1043456   ;;  %vm1034_vm7 = vcmask (!%p414_p3), 1044480   ;;  %vm1036_vm8 = vcmask (!%p414_p3), 1045504  }
   0xb   : > { %v648_v35 = vsub.s32 (!%p414_p3), 7, %v1590_v34  ;;  %v699_v40 = vsub.s32 (!%p414_p3), 6, %v1590_v34  ;;  %v746_v44 = vsub.s32 (!%p414_p3), 5, %v1590_v34  ;;  %v793_v49 = vsub.s32 (!%p414_p3), 4, %v1590_v34 }
   0xc   : > { %v840_v56 = vsub.s32 (!%p414_p3), 3, %v1590_v34  ;;  %v887_v59 = vsub.s32 (!%p414_p3), 2, %v1590_v34  ;;  %v934_v3 = vsub.s32 (!%p414_p3), 1, %v1590_v34  ;;  %vm1038_vm9 = vcmask (!%p414_p3), 1046528  }
   0xd   : > { %vm1066_vm11 = vcmask (!%p414_p3), 519168  }
   0xe   : > { %s1779_s27 = smov (!%p512_p4, %s1486_s27), 3 }
   0xf   : > { %s1293_s9 = sshll.u32 %s1779_s27, 3  ;;  %s1570_s10 = sshll.u32 %s1779_s27, 2 }
  0x10   : > { %s556_s13 = scalar_lea.vmem %s1768_s3, %s1293_s9  ;;  %s533_s16 = scalar_lea.vmem %s1766_s1, %s1570_s10 }
  0x11   : > { %v1296_v2 = vld [vmem:[%s556_s13] sm:$0xff]   ;;  %s568_s21 = scalar_lea.vmem %s1769_s4, %s1293_s9  ;;  %s1617_s9 = scalar_lea.vmem %s1765_s0, %s1570_s10 }
  0x12   : > { %v1297_v5 = vunpack.c.l.bf16 %v1296_v2  ;;  %v1298_v6 = vunpack.c.h.bf16 %v1296_v2  ;;  %v606_v7 = vld [vmem:[%s533_s16] sm:$0xf]  ;;  %s545_s13 = scalar_lea.vmem %s1767_s2, %s1570_s10  ;;  %s591_s18 = scalar_lea.vmem %s1773_s8, %s1570_s10 }
  0x13   : > { %v607_v8 = vunpack.c.l.bf16 %v606_v7  ;;  %v1300_v15 = vld [vmem:[%s568_s21] sm:$0xff]   ;;  %v633_v7 = vld [vmem:[#allocation2 + $0x8] sm:$0xff] }
  0x14   : > { %v1349_v9 = vpack.i.bf16 %v1298_v6, %v1297_v5  ;;  %v1301_v16 = vunpack.c.l.bf16 %v1300_v15  ;;  %v1302_v17 = vunpack.c.h.bf16 %v1300_v15  ;;  %v635_v51 = vld [vmem:[%s1617_s9] sm:$0xf] }
  0x15   : > { %v615_v10 = vadd.f32 %v1289_v4, %v607_v8  ;;  %v636_v57 = vunpack.c.l.bf16 %v635_v51  ;;  %v632_v6 = vld [vmem:[#allocation2] sm:$0xff] }
  0x16   : > { %1350 = vperm.xlu1 %1348, %v1349_v9   ;;  %1338 = vperm.xlu0 %1336, %v1349_v9   ;;  %v1385_v20 = vpack.i.bf16 %v1302_v17, %v1301_v16  ;;  %v981_v17 = vsub.s32 0, %v1590_v34 }
  0x17   : > { %v617_v11 = vmin.f32 %v615_v10, 20.0  ;;  %vm616_vm2 = vcmp.gt.f32.partialorder %v615_v10, 20.0 }
  0x19   : > { %v618_v12 = vmul.f32 1.442695, %v617_v11 }
  0x1a   : > { %1354 = vset.pattern.permute.xlu1 %v1499_v13  ;;  %1342 = vset.pattern.permute.xlu0 %v1500_v14 }
  0x1b   : > { %1432 = vpow2.f32 %v618_v12  ;;  %1356 = vperm.xlu1 %1354, %v1349_v9   ;;  %1344 = vperm.xlu0 %1342, %v1349_v9  }
  0x1f   : > { %1360 = vset.pattern.permute.xlu1 %v1501_v18  ;;  %1366 = vset.pattern.permute.xlu0 %v1502_v19 }
  0x20   : > { %1362 = vperm.xlu1 %1360, %v1349_v9   ;;  %1368 = vperm.xlu0 %1366, %v1349_v9  }
  0x24   : > { %1372 = vset.pattern.permute.xlu1 %v1503_v21  ;;  %1384 = vset.pattern.permute.xlu0 %v1503_v21 }
  0x25   : > { %v1433_v22 = vpop.eup %1432  ;;  %1374 = vperm.xlu1 %1372, %v1349_v9   ;;  %1386 = vperm.xlu0 %1384, %v1385_v20  }
  0x26   : > { %v620_v23 = vadd.f32 1.0, %v1433_v22  ;;  %v623_v24 = vmul.f32 -0.5, %v1433_v22  ;;  %v626_v27 = vand.u32 2147483647, %v1433_v22 }
  0x28   : > { %1434 = vlog2.f32 %v620_v23  ;;  %v624_v26 = vadd.f32 1.0, %v623_v24  ;;  %vm627_vm1 = vcmp.lt.f32.partialorder %v626_v27, 0.0004427343 }
  0x29   : > { %1378 = vset.pattern.permute.xlu1 %v1504_v25  ;;  %1401 = vset.pattern.permute.xlu0 %v1501_v18 }
  0x2a   : > { %1380 = vperm.xlu1 %1378, %v1349_v9   ;;  %1403 = vperm.xlu0 %1401, %v1385_v20   ;;  %v625_v28 = vmul.f32 %v1433_v22, %v624_v26 }
  0x2e   : > { %1391 = vperm.xlu1 %1378, %v1385_v20   ;;  %1419 = vset.pattern.permute.xlu0 %v1500_v14 }
  0x2f   : > { %1421 = vperm.xlu0 %1419, %v1385_v20  }
  0x32   : > { %v1435_v29 = vpop.eup %1434  ;;  %1395 = vset.pattern.permute.xlu1 %v1502_v19 }
  0x33   : > { %v622_v30 = vmul.f32 0.6931472, %v1435_v29  ;;  %1397 = vperm.xlu1 %1395, %v1385_v20   ;;  %1431 = vset.pattern.permute.xlu0 %v1504_v25 }
  0x35   : > { %v628_v31 = vsel %vm627_vm1, %v625_v28, %v622_v30 }
  0x36   : > { %v629_v32 = vsel %vm616_vm2, %v615_v10, %v628_v31 }
  0x37   : > { %631 = vst.msk [vmem:[#allocation3] sm:$0xff] %vm597_vm0, %v629_v32  ;;  %1407 = vset.pattern.permute.xlu1 %v1499_v13 }
  0x38   : > { %1409 = vperm.xlu1 %1407, %v1385_v20  }
  0x3c   : > { %1413 = vset.pattern.permute.xlu1 %v1496_v0 }
  0x3d   : > { %1415 = vperm.xlu1 %1413, %v1385_v20  }
  0x3e   : > { %v1593_v36 = vld [vmem:[#allocation3] sm:$0xff] }
  0x3f   : > { %v649_v37 = vrot.slane %v1593_v36, %v648_v35  ;;  %v700_v43 = vrot.slane %v1593_v36, %v699_v40  ;;  %v747_v48 = vrot.slane %v1593_v36, %v746_v44  ;;  %v794_v54 = vrot.slane %v1593_v36, %v793_v49 }
  0x40   : > { %v841_v62 = vrot.slane %v1593_v36, %v840_v56  ;;  %v1636_v63 = vmul.f32 %v636_v57, %v1593_v36  ;;  %v888_v2 = vrot.slane %v1593_v36, %v887_v59  ;;  %v935_v16 = vrot.slane %v1593_v36, %v934_v3 }
  0x41   : > { %1425 = vset.pattern.permute.xlu1 %v1497_v1  ;;  %v650_v41 = vmul.f32 %v649_v37, %v1599_v38  ;;  %v651_v42 = vmul.f32 %v649_v37, %v1604_v39  ;;  %v701_v47 = vmul.f32 %v700_v43, %v1599_v38  ;;  %v702_v50 = vmul.f32 %v700_v43, %v1604_v39  ;;  %v604_v43 = vld [vmem:[%s545_s13] sm:$0xf] }
  0x42   : > { %1427 = vperm.xlu1 %1425, %v1385_v20   ;;  %v748_v53 = vmul.f32 %v747_v48, %v1599_v38  ;;  %v749_v58 = vmul.f32 %v747_v48, %v1604_v39  ;;  %v795_v61 = vmul.f32 %v794_v54, %v1599_v38  ;;  %v796_v1 = vmul.f32 %v794_v54, %v1604_v39 }
  0x43   : > { %v652_v45 = vmul.f32 1.442695, %v650_v41  ;;  %v654_v46 = vmul.f32 1.442695, %v651_v42  ;;  %v703_v52 = vmul.f32 1.442695, %v701_v47  ;;  %v842_v9 = vmul.f32 %v841_v62, %v1599_v38 }
  0x44   : > { %v705_v55 = vmul.f32 1.442695, %v702_v50  ;;  %v750_v60 = vmul.f32 1.442695, %v748_v53  ;;  %v752_v0 = vmul.f32 1.442695, %v749_v58  ;;  %v843_v10 = vmul.f32 %v841_v62, %v1604_v39 }
  0x45   : > { %1436 = vpow2.f32 %v652_v45  ;;  %v797_v8 = vmul.f32 1.442695, %v795_v61  ;;  %v669_v11 = vrot.slane %v1636_v63, %v648_v35  ;;  %v799_v12 = vmul.f32 1.442695, %v796_v1 }
  0x46   : > { %1438 = vpow2.f32 %v654_v46  ;;  %v889_v15 = vmul.f32 %v888_v2, %v1599_v38  ;;  %v844_v22 = vmul.f32 1.442695, %v842_v9  ;;  %v846_v23 = vmul.f32 1.442695, %v843_v10 }
  0x47   : > { %1440 = vpow2.f32 %v703_v52  ;;  %v890_v27 = vmul.f32 %v888_v2, %v1604_v39  ;;  %v765_v29 = vrot.slane %v1636_v63, %v746_v44  ;;  %v718_v30 = vrot.slane %v1636_v63, %v699_v40 }
  0x48   : > { %1442 = vpow2.f32 %v705_v55  ;;  %v891_v31 = vmul.f32 1.442695, %v889_v15  ;;  %v936_v41 = vmul.f32 %v935_v16, %v1599_v38  ;;  %v982_v42 = vrot.slane %v1593_v36, %v981_v17 }
  0x49   : > { %1444 = vpow2.f32 %v750_v60  ;;  %v937_v46 = vmul.f32 %v935_v16, %v1604_v39  ;;  %v893_v48 = vmul.f32 1.442695, %v890_v27  ;;  %v1671_v57 = vunpack.c.l.bf16 %v604_v43 }
  0x4a   : > { %1446 = vpow2.f32 %v752_v0  ;;  %v812_v36 = vrot.slane %v1636_v63, %v793_v49  ;;  %v938_v58 = vmul.f32 1.442695, %v936_v41  ;;  %v983_v60 = vmul.f32 %v982_v42, %v1599_v38 }
  0x4b   : > { %1448 = vpow2.f32 %v797_v8  ;;  %v940_v2 = vmul.f32 1.442695, %v937_v46  ;;  %v859_v15 = vrot.slane %v1636_v63, %v840_v56  ;;  %v906_v56 = vrot.slane %v1636_v63, %v887_v59 }
  0x4c   : > { %1450 = vpow2.f32 %v799_v12  ;;  %v985_v12 = vmul.f32 1.442695, %v983_v60  ;;  %vm1057_vm10 = vcmp.ge.f32.partialorder %v1671_v57, 0.0 }
  0x4d   : > { %1452 = vpow2.f32 %v844_v22 }
  0x4e   : > { %1454 = vpow2.f32 %v846_v23 }
  0x4f   : > { %v1437_v4 = vpop.eup %1436  ;;  %1456 = vpow2.f32 %v891_v31 }
  0x50   : > { %v1439_v5 = vpop.eup %1438  ;;  %v672_v20 = vmul.f32 %v1437_v4, %v632_v6  ;;  %1458 = vpow2.f32 %v893_v48  ;;  %v984_v6 = vmul.f32 %v982_v42, %v1604_v39 }
  0x51   : > { %v673_v21 = vmul.f32 %v1439_v5, %v633_v7  ;;  %v1441_v24 = vpop.eup %1440  ;;  %1460 = vpow2.f32 %v938_v58 }
  0x52   : > { %v1443_v28 = vpop.eup %1442  ;;  %1462 = vpow2.f32 %v940_v2 }
  0x53   : > { %v1445_v50 = vpop.eup %1444  ;;  %1464 = vpow2.f32 %v985_v12 }
  0x54   : > { %v1447_v55 = vpop.eup %1446 }
  0x55   : > { %v1449_v7 = vpop.eup %1448 }
  0x56   : > { %v1451_v10 = vpop.eup %1450 }
  0x95   : > { %v1351_v13 = vpop.permute.xlu1 %1350  ;;  %v1339_v14 = vpop.permute.xlu0 %1338 }
  0x96   : > { %v1341_v18 = vunpack.i.h.bf16 %v1339_v14  ;;  %v1340_v19 = vunpack.i.l.bf16 %v1339_v14  ;;  %v1353_v51 = vunpack.i.h.bf16 %v1351_v13  ;;  %v1352_v52 = vunpack.i.l.bf16 %v1351_v13 }
  0x98   : > { %v670_v25 = vmul.f32 %v1340_v19, %v669_v11  ;;  %v671_v26 = vmul.f32 %v1341_v18, %v669_v11  ;;  %v766_v8 = vmul.f32 %v1352_v52, %v765_v29  ;;  %v767_v9 = vmul.f32 %v1353_v51, %v765_v29 }
  0x99   : > { %v1053_v11 = vand.u32 2147483647, %v1671_v57 }
  0x9a   : > { %v1660_v32 = vadd.f32 %v672_v20, %v670_v25  ;;  %v1662_v33 = vadd.f32 %v673_v21, %v671_v26  ;;  %v1357_v35 = vpop.permute.xlu1 %1356  ;;  %v1345_v37 = vpop.permute.xlu0 %1344  ;;  %v987_v20 = vmul.f32 1.442695, %v984_v6 }
  0x9b   : > { %v1347_v45 = vunpack.i.h.bf16 %v1345_v37  ;;  %v1346_v44 = vunpack.i.l.bf16 %v1345_v37  ;;  %v1359_v4 = vunpack.i.h.bf16 %v1357_v35  ;;  %v1358_v5 = vunpack.i.l.bf16 %v1357_v35  ;;  %v1453_v21 = vpop.eup %1452 }
  0x9c   : > { %v721_v40 = vmul.f32 %v1441_v24, %v1660_v32  ;;  %v722_v47 = vmul.f32 %v1443_v28, %v1662_v33  ;;  %v1455_v26 = vpop.eup %1454  ;;  %v1054_v31 = vsub.f32 0.0, %v1053_v11  ;;  %1466 = vpow2.f32 %v987_v20 }
  0x9d   : > { %v719_v53 = vmul.f32 %v1346_v44, %v718_v30  ;;  %v720_v54 = vmul.f32 %v1347_v45, %v718_v30  ;;  %v813_v39 = vmul.f32 %v1358_v5, %v812_v36  ;;  %v814_v16 = vmul.f32 %v1359_v4, %v812_v36  ;;  %v1457_v35 = vpop.eup %1456 }
  0x9e   : > { %v1459_v46 = vpop.eup %1458  ;;  %v1055_v52 = vmul.f32 1.442695, %v1054_v31 }
  0x9f   : > { %v1677_v61 = vadd.f32 %v721_v40, %v719_v53  ;;  %v1679_v62 = vadd.f32 %v722_v47, %v720_v54  ;;  %v1363_v0 = vpop.permute.xlu1 %1362  ;;  %v1369_v1 = vpop.permute.xlu0 %1368 }
  0xa0   : > { %v1365_v22 = vunpack.i.h.bf16 %v1363_v0  ;;  %v1364_v23 = vunpack.i.l.bf16 %v1363_v0  ;;  %v1371_v29 = vunpack.i.h.bf16 %v1369_v1  ;;  %v1370_v30 = vunpack.i.l.bf16 %v1369_v1  ;;  %v1461_v36 = vpop.eup %1460 }
  0xa1   : > { %v768_v49 = vmul.f32 %v1445_v50, %v1677_v61  ;;  %v769_v38 = vmul.f32 %v1447_v55, %v1679_v62  ;;  %v953_v55 = vrot.slane %v1636_v63, %v934_v3  ;;  %v1463_v4 = vpop.eup %1462  ;;  %1468 = vpow2.f32 %v1055_v52 }
  0xa2   : > { %v860_v37 = vmul.f32 %v1364_v23, %v859_v15  ;;  %v861_v41 = vmul.f32 %v1365_v22, %v859_v15  ;;  %v907_v50 = vmul.f32 %v1370_v30, %v906_v56  ;;  %v908_v51 = vmul.f32 %v1371_v29, %v906_v56  ;;  %v1465_v11 = vpop.eup %1464 }
  0xa3   : > { %v1685_v13 = vadd.f32 %v768_v49, %v766_v8  ;;  %v1687_v14 = vadd.f32 %v769_v38, %v767_v9  ;;  %v1000_v8 = vrot.slane %v1636_v63, %v981_v17 }
  0xa4   : > { %v1375_v18 = vpop.permute.xlu1 %1374  ;;  %v1692_v19 = vpop.permute.xlu0 %1386 }
  0xa5   : > { %v815_v24 = vmul.f32 %v1449_v7, %v1685_v13  ;;  %v816_v25 = vmul.f32 %v1451_v10, %v1687_v14  ;;  %v1377_v53 = vunpack.i.h.bf16 %v1375_v18  ;;  %v1376_v54 = vunpack.i.l.bf16 %v1375_v18 }
  0xa6   : > { %v1389_v5 = vunpack.i.h.bf16 %v1692_v19  ;;  %v1388_v6 = vunpack.i.l.bf16 %v1692_v19  ;;  %v1467_v22 = vpop.eup %1466 }
  0xa7   : > { %v1699_v27 = vadd.f32 %v815_v24, %v813_v39  ;;  %v1701_v28 = vadd.f32 %v816_v25, %v814_v16  ;;  %v954_v18 = vmul.f32 %v1376_v54, %v953_v55  ;;  %v955_v20 = vmul.f32 %v1377_v53, %v953_v55 }
  0xa9   : > { %v862_v42 = vmul.f32 %v1453_v21, %v1699_v27  ;;  %v863_v43 = vmul.f32 %v1455_v26, %v1701_v28  ;;  %v1381_v45 = vpop.permute.xlu1 %1380  ;;  %v1404_v44 = vpop.permute.xlu0 %1403 }
  0xaa   : > { %v1406_v59 = vunpack.i.h.bf16 %v1404_v44  ;;  %v1405_v40 = vunpack.i.l.bf16 %v1404_v44  ;;  %v1382_v7 = vunpack.i.l.bf16 %v1381_v45  ;;  %v1383_v12 = vunpack.i.h.bf16 %v1381_v45 }
  0xab   : > { %v864_v47 = vadd.f32 %v862_v42, %v860_v37  ;;  %v865_v48 = vadd.f32 %v863_v43, %v861_v41 }
  0xac   : > { %v1001_v34 = vmul.f32 %v1382_v7, %v1000_v8  ;;  %v1002_v29 = vmul.f32 %v1383_v12, %v1000_v8 }
  0xad   : > { %v909_v58 = vmul.f32 %v1457_v35, %v864_v47  ;;  %v910_v60 = vmul.f32 %v1459_v46, %v865_v48  ;;  %v874_v0 = vmul.f32 %v1405_v40, %v864_v47  ;;  %v875_v1 = vmul.f32 %v1406_v59, %v865_v48  ;;  %v1392_v2 = vpop.permute.xlu1 %1391 }
  0xae   : > { %v1422_v9 = vpop.permute.xlu0 %1421  ;;  %v1394_v31 = vunpack.i.h.bf16 %v1392_v2  ;;  %v1393_v35 = vunpack.i.l.bf16 %v1392_v2 }
  0xaf   : > { %v911_v49 = vadd.f32 %v909_v58, %v907_v50  ;;  %v912_v38 = vadd.f32 %v910_v60, %v908_v51  ;;  %v876_v3 = vsel %vm597_vm0, %v874_v0, 0.0  ;;  %v877_v10 = vsel %vm597_vm0, %v875_v1, 0.0 }
  0xb0   : > { %v878_v15 = vadd.f32 %v877_v10, %v876_v3  ;;  %v1424_v39 = vunpack.i.h.bf16 %v1422_v9  ;;  %v1423_v16 = vunpack.i.l.bf16 %v1422_v9 }
  0xb1   : > { %v956_v19 = vmul.f32 %v1461_v36, %v911_v49  ;;  %v957_v21 = vmul.f32 %v1463_v4, %v912_v38 }
  0xb2   : > { %v733_v63 = vmul.f32 %v1423_v16, %v1677_v61  ;;  %v734_v17 = vmul.f32 %v1424_v39, %v1679_v62  ;;  %v1398_v23 = vpop.permute.xlu1 %1397  ;;  %v879_v30 = vrot.slane %v878_v15, 4 }
  0xb3   : > { %v958_v24 = vadd.f32 %v956_v19, %v954_v18  ;;  %v959_v25 = vadd.f32 %v957_v21, %v955_v20  ;;  %v1400_v26 = vunpack.i.h.bf16 %v1398_v23  ;;  %v1399_v56 = vunpack.i.l.bf16 %v1398_v23 }
  0xb4   : > { %v735_v45 = vsel %vm597_vm0, %v733_v63, 0.0  ;;  %v736_v44 = vsel %vm597_vm0, %v734_v17, 0.0  ;;  %v880_v51 = vadd.f32 %v879_v30, %v878_v15 }
  0xb5   : > { %v968_v37 = vmul.f32 %v1388_v6, %v958_v24  ;;  %v969_v41 = vmul.f32 %v1389_v5, %v959_v25  ;;  %v1003_v42 = vmul.f32 %v1465_v11, %v958_v24  ;;  %v1004_v43 = vmul.f32 %v1467_v22, %v959_v25  ;;  %v1728_v6 = vpop.eup %1468 }
  0xb6   : > { %v921_v61 = vmul.f32 %v1399_v56, %v911_v49  ;;  %v922_v46 = vmul.f32 %v1400_v26, %v912_v38  ;;  %v737_v60 = vadd.f32 %v736_v44, %v735_v45  ;;  %v881_v8 = vrot.slane %v880_v51, 2 }
  0xb7   : > { %v970_v62 = vsel %vm597_vm0, %v968_v37, 0.0  ;;  %v971_v59 = vsel %vm597_vm0, %v969_v41, 0.0  ;;  %v1005_v40 = vadd.f32 %v1003_v42, %v1001_v34  ;;  %v1006_v47 = vadd.f32 %v1004_v43, %v1002_v29  ;;  %v1410_v48 = vpop.permute.xlu1 %1409 }
  0xb8   : > { %v972_v50 = vadd.f32 %v971_v59, %v970_v62  ;;  %v923_v52 = vsel %vm597_vm0, %v921_v61, 0.0  ;;  %v924_v55 = vsel %vm597_vm0, %v922_v46, 0.0  ;;  %v1412_v36 = vunpack.i.h.bf16 %v1410_v48 }
  0xb9   : > { %v1015_v53 = vmul.f32 %v1393_v35, %v1005_v40  ;;  %v1016_v54 = vmul.f32 %v1394_v31, %v1006_v47  ;;  %1041 = vst.msk [vmem:[#allocation2] sm:$0xff] %vm597_vm0, %v1005_v40  ;;  %1042 = vst.msk [vmem:[#allocation2 + $0x8] sm:$0xff] %vm597_vm0, %v1006_v47  ;;  %v925_v0 = vadd.f32 %v924_v55, %v923_v52  ;;  %v1411_v4 = vunpack.i.l.bf16 %v1410_v48 }
  0xba   : > { %v973_v58 = vrot.slane %v972_v50, 4  ;;  %v828_v5 = vmul.f32 %v1412_v36, %v1701_v28  ;;  %v738_v39 = vrot.slane %v737_v60, 4  ;;  %v1058_v19 = vadd.f32 1.0, %v1728_v6 }
  0xbb   : > { %v1017_v1 = vsel %vm597_vm0, %v1015_v53, 0.0  ;;  %v1018_v2 = vsel %vm597_vm0, %v1016_v54, 0.0  ;;  %v926_v38 = vrot.slane %v925_v0, 4  ;;  %v827_v3 = vmul.f32 %v1411_v4, %v1699_v27 }
  0xbc   : > { %v974_v7 = vadd.f32 %v973_v58, %v972_v50  ;;  %v1019_v9 = vadd.f32 %v1018_v2, %v1017_v1  ;;  %v1416_v49 = vpop.permute.xlu1 %1415  ;;  %v830_v10 = vsel %vm597_vm0, %v828_v5, 0.0  ;;  %v882_v63 = vadd.f32 %v881_v8, %v880_v51 }
  0xbd   : > { %v1418_v11 = vunpack.i.h.bf16 %v1416_v49  ;;  %v1417_v16 = vunpack.i.l.bf16 %v1416_v49  ;;  %v927_v18 = vadd.f32 %v926_v38, %v925_v0  ;;  %v829_v20 = vsel %vm597_vm0, %v827_v3, 0.0 }
  0xbe   : > { %v975_v12 = vrot.slane %v974_v7, 2  ;;  %v1020_v15 = vrot.slane %v1019_v9, 4  ;;  %v831_v34 = vadd.f32 %v830_v10, %v829_v20  ;;  %v739_v56 = vadd.f32 %v738_v39, %v737_v60  ;;  %v602_v39 = vld [vmem:[%s1617_s9] sm:$0xf] }
  0xbf   : > { %v781_v28 = vmul.f32 %v1418_v11, %v1687_v14  ;;  %v928_v17 = vrot.slane %v927_v18, 2  ;;  %v780_v27 = vmul.f32 %v1417_v16, %v1685_v13  ;;  %v883_v44 = vrot.slane %v882_v63, 1 }
  0xc0   : > { %v976_v21 = vadd.f32 %v975_v12, %v974_v7  ;;  %v1021_v22 = vadd.f32 %v1020_v15, %v1019_v9  ;;  %v832_v29 = vrot.slane %v831_v34, 4  ;;  %v740_v40 = vrot.slane %v739_v56, 2 }
  0xc1   : > { %v783_v23 = vsel %vm597_vm0, %v781_v28, 0.0  ;;  %v1428_v24 = vpop.permute.xlu1 %1427  ;;  %v929_v30 = vadd.f32 %v928_v17, %v927_v18  ;;  %v782_v31 = vsel %vm597_vm0, %v780_v27, 0.0  ;;  %1470 = vrcp.f32 %v1058_v19 }
  0xc2   : > { %v977_v25 = vrot.slane %v976_v21, 1  ;;  %v1022_v26 = vrot.slane %v1021_v22, 2  ;;  %v1430_v14 = vunpack.i.h.bf16 %v1428_v24  ;;  %v1429_v35 = vunpack.i.l.bf16 %v1428_v24 }
  0xc3   : > { %v833_v41 = vadd.f32 %v832_v29, %v831_v34  ;;  %v784_v42 = vadd.f32 %v783_v23, %v782_v31  ;;  %v930_v43 = vrot.slane %v929_v30, 1  ;;  %v741_v36 = vadd.f32 %v740_v40, %v739_v56 }
  0xc4   : > { %v1023_v37 = vadd.f32 %v1022_v26, %v1021_v22  ;;  %v686_v13 = vmul.f32 %v1429_v35, %v1660_v32  ;;  %v687_v45 = vmul.f32 %v1430_v14, %v1662_v33  ;;  %v978_v59 = vadd.f32 %v977_v25, %v976_v21  ;;  %v1290_v21 = vld [vmem:[%s1771_s6] ss:$0 sm:$0xff] }
  0xc5   : > { %v834_v46 = vrot.slane %v833_v41, 2  ;;  %v785_v62 = vrot.slane %v784_v42, 4  ;;  %v931_v54 = vadd.f32 %v930_v43, %v929_v30  ;;  %v884_v0 = vadd.f32 %v883_v44, %v882_v63 }
  0xc6   : > { %v1024_v61 = vrot.slane %v1023_v37, 1  ;;  %v688_v47 = vsel %vm597_vm0, %v686_v13, 0.0  ;;  %v689_v48 = vsel %vm597_vm0, %v687_v45, 0.0  ;;  %v742_v8 = vrot.slane %v741_v36, 1 }
  0xc7   : > { %v835_v51 = vadd.f32 %v834_v46, %v833_v41  ;;  %v786_v52 = vadd.f32 %v785_v62, %v784_v42  ;;  %v690_v53 = vadd.f32 %v689_v48, %v688_v47  ;;  %v603_v19 = vunpack.c.l.bf16 %v602_v39 }
  0xc8   : > { %v1025_v50 = vadd.f32 %v1024_v61, %v1023_v37  ;;  %v743_v15 = vadd.f32 %v742_v8, %v741_v36 }
  0xc9   : > { %v787_v55 = vrot.slane %v786_v52, 2  ;;  %v691_v33 = vrot.slane %v690_v53, 4  ;;  %v836_v60 = vrot.slane %v835_v51, 1  ;;  %v1051_v34 = vmul.f32 %v1290_v21, %v603_v19 }
  0xca   : > { %v1027_v32 = vsel %vm1026_vm3, %v1025_v50, %v978_v59 }
  0xcb   : > { %v1029_v58 = vsel %vm1028_vm4, %v1027_v32, %v931_v54  ;;  %v788_v1 = vadd.f32 %v787_v55, %v786_v52  ;;  %v692_v2 = vadd.f32 %v691_v33, %v690_v53  ;;  %v837_v9 = vadd.f32 %v836_v60, %v835_v51  ;;  %v1471_v12 = vpop.eup %1470 }
  0xcc   : > { %v1031_v4 = vsel %vm1030_vm5, %v1029_v58, %v884_v0  ;;  %v1061_v20 = vmul.f32 %v1471_v12, %v1728_v6 }
  0xcd   : > { %v789_v5 = vrot.slane %v788_v1, 1  ;;  %v693_v7 = vrot.slane %v692_v2, 2  ;;  %v1033_v3 = vsel %vm1032_vm6, %v1031_v4, %v837_v9 }
  0xce   : > { %v1062_v22 = vsel %vm1057_vm10, %v1471_v12, %v1061_v20 }
  0xcf   : > { %v790_v49 = vadd.f32 %v789_v5, %v788_v1  ;;  %v694_v38 = vadd.f32 %v693_v7, %v692_v2  ;;  %v1063_v63 = vmul.f32 %v1062_v22, %v1671_v57 }
  0xd1   : > { %v1035_v10 = vsel %vm1034_vm7, %v1033_v3, %v790_v49  ;;  %v695_v11 = vrot.slane %v694_v38, 1 }
  0xd2   : > { %v1037_v18 = vsel %vm1036_vm8, %v1035_v10, %v743_v15 }
  0xd3   : > { %v696_v16 = vadd.f32 %v695_v11, %v694_v38 }
  0xd5   : > { %v1039_v28 = vsel %vm1038_vm9, %v1037_v18, %v696_v16 }
  0xd6   : > { %1040 = vst.msk [vmem:[#allocation4] sm:$0xff] %vm597_vm0, %v1039_v28 }
  0xdd   : > { %v1043_v17 = vld [vmem:[#allocation4] sm:$0xff] }
  0xde   : > { %v1052_v27 = vadd.f32 %v1051_v34, %v1043_v17 }
  0xe0   : > { %v1064_v23 = vmul.f32 %v1063_v63, %v1052_v27 }
  0xe2   : > { %v1065_v6 = vpack.c.bf16 %v1064_v23, %v1064_v23 }
  0xe4   : > { %1067 = vst.msk [vmem:[%s591_s18] sm:$0xf] %vm1066_vm11, %v1065_v6 }
  0xe5 PF: > { %s18_s29 = sadd.s32 1, %s1494_s29   ;;  %s1774_s27 = smov %s1490_s28 }
  0xe6   : > { %p15_p5 = scmp.ge.s32.totalorder %s18_s29, 6   ;;  %s1775_s28 = smov %s1777_s30 }
  0xe8   :  { %17 = sbr.rel (!%p15_p5) target bundleno = 2 (0x2), region = 107 }

// kernel: endomamba_forward.51
= control target key start
LH: loop header
LB: loop body
LE: loop exit
PB: predicated region body
PF: predicated region fallthrough
CT: control target
= control target key end

     0   :  { %vm22_vm0 = vcmask 257024   ;;  %v190_v1 = vmov 0.0   ;;  %vm70_vm1 = vcmask 523264   ;;  %vm19_vm2 = vcmask 261120   ;;  %s250_s1 = inlined_call_operand.vmem [shape: bf16[64,32], index: 1, kind: input, shape index: {}]   ;;  %s251_s0 = inlined_call_operand.vmem [shape: bf16[20,64], index: 0, kind: input, shape index: {}]   ;;  %s252_s2 = inlined_call_operand.vmem [shape: f32[1,32], index: 2, kind: input, shape index: {}]   ;;  %s253_s3 = inlined_call_operand.vmem [shape: f32[20,32], index: 3, kind: output, shape index: {}]  }
   0x1   :  { %v184_v0 = vld [vmem:[%s250_s1] sm:$0xff]   ;;  %23 = vst.msk [vmem:[#allocation2 + $0x10] sm:$0xf] %vm22_vm0, %v190_v1  ;;  %v185_v2 = vld [vmem:[%s250_s1 + $0x8] sm:$0xff]   ;;  %v186_v3 = vld [vmem:[%s250_s1 + $0x10] sm:$0xff]  }
   0x2   :  { %171 = vmatprep.subr.bf16.mxu0 %v184_v0  ;;  %v188_v4 = vld [vmem:[%s251_s0] sm:$0xff]   ;;  %v187_v5 = vld [vmem:[%s250_s1 + $0x18] sm:$0xff]   ;;  %v189_v6 = vld [vmem:[%s251_s0 + $0x8] ss:$0 sps:$4 sm:$0x33]   ;;  %20 = vst.msk [vmem:[#allocation2] sm:$0xff] %vm19_vm2, %v190_v1 }
   0x3   :  { %172 = vmatpush3.bf16.msra.mxu0 %v184_v0  ;;  %179 = vmatprep.mubr.msk.bf16.mxu0 %vm70_vm1, %v188_v4  ;;  %21 = vst.msk [vmem:[#allocation2 + $0x8] sm:$0xff] %vm19_vm2, %v190_v1  ;;  %v164_v17 = vld [vmem:[%s252_s2] ss:$0 sm:$0xff] }
   0x4   :  { %173 = vmatprep.subr.bf16.mxu0 %v185_v2 }
   0x7   :  { %174 = vmatpush3.bf16.msra.mxu0 %v185_v2 }
   0x8   :  { %175 = vmatprep.subr.bf16.mxu0 %v186_v3  ;;  %v26_v7 = vld [vmem:[#allocation2 + $0x10] sm:$0xf] }
   0x9   :  { %v24_v8 = vld [vmem:[#allocation2] sm:$0xff] }
   0xa   :  { %v25_v12 = vld [vmem:[#allocation2 + $0x8] sm:$0xff] }
   0xb   :  { %176 = vmatpush3.bf16.msra.mxu0 %v186_v3 }
   0xc   :  { %177 = vmatprep.subr.bf16.mxu0 %v187_v5 }
   0xf   :  { %178 = vmatpush3.bf16.msra.mxu0 %v187_v5 }
  0x12   :  { %180 = vmatmul.mubr.msk.bf16.vlgmr.msra.gmra.mrb[0].mxu0 %vm70_vm1, %v189_v6 }
  0xe5   :  { %v181_v9 = vpop.f32.mrb[0].mxu0 }
  0xe6   :  { %v127_v10 = vadd.f32 %v181_v9, %v26_v7  ;;  %v111_v11 = vpop.f32.mrb[1].mxu0 }
  0xe7   :  { %v125_v13 = vadd.f32 %v111_v11, %v24_v8  ;;  %v182_v14 = vpop.f32.mrb[2].mxu0 }
  0xe8   :  { %132 = vst.msk [vmem:[#allocation2 + $0x10] sm:$0xf] %vm22_vm0, %v127_v10  ;;  %v114_v15 = vpop.f32.mrb[3].mxu0 }
  0xe9   :  { %129 = vst.msk [vmem:[#allocation2] sm:$0xff] %vm19_vm2, %v125_v13  ;;  %v126_v16 = vadd.f32 %v114_v15, %v25_v12 }
  0xeb   :  { %130 = vst.msk [vmem:[#allocation2 + $0x8] sm:$0xff] %vm19_vm2, %v126_v16 }
  0xef   :  { %v138_v18 = vld [vmem:[#allocation2 + $0x10] sm:$0xf] }
  0xf0   :  { %v148_v19 = vadd.f32 %v164_v17, %v138_v18  ;;  %v136_v20 = vld [vmem:[#allocation2] sm:$0xff] }
  0xf1   :  { %v146_v21 = vadd.f32 %v164_v17, %v136_v20 }
  0xf2   :  { %151 = vst.msk [vmem:[%s253_s3 + $0x10] sm:$0xf] %vm22_vm0, %v148_v19  ;;  %v137_v22 = vld [vmem:[#allocation2 + $0x8] sm:$0xff] }
  0xf3   :  { %149 = vst.msk [vmem:[%s253_s3] sm:$0xff] %vm19_vm2, %v146_v21  ;;  %v147_v23 = vadd.f32 %v164_v17, %v137_v22 }
  0xf5   :  { %150 = vst.msk [vmem:[%s253_s3 + $0x8] sm:$0xff] %vm19_vm2, %v147_v23 }

// kernel: endomamba_forward.46
= control target key start
LH: loop header
LB: loop body
LE: loop exit
PB: predicated region body
PF: predicated region fallthrough
CT: control target
= control target key end

     0   :  { %s1508_s27 = smov 0   ;;  %s1510_s28 = smov 0   ;;  %s1721_s0 = inlined_call_operand.vmem [shape: bf16[4,8,64], index: 0, kind: input, shape index: {}]   ;;  %s1722_s1 = inlined_call_operand.vmem [shape: bf16[4,8,64], index: 1, kind: input, shape index: {}]   ;;  %s1723_s2 = inlined_call_operand.vmem [shape: bf16[4,8,64], index: 2, kind: input, shape index: {}]   ;;  %s1724_s3 = inlined_call_operand.vmem [shape: bf16[4,16,8], index: 3, kind: input, shape index: {}]   ;;  %s1725_s4 = inlined_call_operand.vmem [shape: bf16[4,16,8], index: 4, kind: input, shape index: {}]   ;;  %s1726_s5 = inlined_call_operand.vmem [shape: f32[16,64], index: 5, kind: input, shape index: {}]   ;;  %s1727_s6 = inlined_call_operand.vmem [shape: f32[1,64], index: 6, kind: input, shape index: {}]   ;;  %s1728_s7 = inlined_call_operand.vmem [shape: f32[1,64], index: 7, kind: input, shape index: {}]   ;;  %s1729_s8 = inlined_call_operand.vmem [shape: bf16[4,8,64], index: 8, kind: output, shape index: {}]  }
   0x1   :  { %s1512_s29 = smov 0  }
   0x2 LB: > { %s37_s30 = sadd.s32 1, %s1448_s28  ;;  %p1237_p0 = scmp.ge.s32.totalorder %s1452_s29, 1  ;;  %s1452_s29 = sphi %s1512_s29, %s18_s29   ;;  %s1448_s28 = sphi %s1510_s28, %s1731_s28   ;;  %s1444_s27 = sphi %s1508_s27, %s1730_s27  }
   0x3   : > { %p39_p1 = scmp.ge.s32.totalorder %s37_s30, 4  ;;  %p391_p2 = scmp.lt.s32.totalorder %s1452_s29, 5 }
   0x5   : > { %s1733_s30 = smov (%p39_p1, %s37_s30), 0  ;;  %p392_p3 = pnand %p1237_p0, %p391_p2 }
   0x6   : > { %p483_p4 = scmp.lt.s32.totalorder (!%p392_p3), %s1444_s27, 3  ;;  %v1454_v0 = vmov (!%p392_p3), 2   ;;  %v1455_v1 = vmov (!%p392_p3), 0   ;;  %vm557_vm0 = vcmask (!%p392_p3), 523264   ;;  %v1456_v3 = vmov (!%p392_p3), 0.0   ;;  %v1553_v38 = vld [vmem:[%s1726_s5] sm:$0xff] (!%p392_p3) }
   0x7   : > { %395 = sbr.rel (%p392_p3) target bundleno = 230 (0xe6), region = 52  ;;  %1305 = vset.pattern.permute.xlu1 (!%p392_p3), %v1454_v0  ;;  %1293 = vset.pattern.permute.xlu0 (!%p392_p3), %v1455_v1  ;;  %558 = vst.msk [vmem:[#allocation2] sm:$0xff] (!%p392_p3), %vm557_vm0, %v1456_v3  ;;  %559 = vst.msk [vmem:[#allocation2 + $0x8] sm:$0xff] (!%p392_p3), %vm557_vm0, %v1456_v3  ;;  %v1246_v4 = vld [vmem:[%s1728_s7] ss:$0 sm:$0xff] (!%p392_p3)  ;;  %v1457_v13 = vmov (!%p392_p3), 3   ;;  %v606_v33 = vlaneseq (!%p392_p3) }
   0x8   : > { %v1458_v14 = vmov (!%p392_p3), 1   ;;  %v1459_v18 = vmov (!%p392_p3), 4   ;;  %v1460_v19 = vmov (!%p392_p3), 5   ;;  %v1461_v21 = vmov (!%p392_p3), 6   ;;  %v1558_v39 = vld [vmem:[%s1726_s5 + $0x8] sm:$0xff] (!%p392_p3) }
   0x9   : > { %v1462_v25 = vmov (!%p392_p3), 7   ;;  %v1544_v34 = vshrl.u32 (!%p392_p3), %v606_v33, 7  ;;  %vm986_vm3 = vcmask (!%p392_p3), 1040384   ;;  %vm988_vm4 = vcmask (!%p392_p3), 1041408  }
   0xa   : > { %vm990_vm5 = vcmask (!%p392_p3), 1042432   ;;  %vm992_vm6 = vcmask (!%p392_p3), 1043456   ;;  %vm994_vm7 = vcmask (!%p392_p3), 1044480   ;;  %vm996_vm8 = vcmask (!%p392_p3), 1045504  }
   0xb   : > { %v608_v35 = vsub.s32 (!%p392_p3), 0, %v1544_v34  ;;  %v659_v40 = vsub.s32 (!%p392_p3), 1, %v1544_v34  ;;  %v706_v44 = vsub.s32 (!%p392_p3), 2, %v1544_v34  ;;  %v753_v49 = vsub.s32 (!%p392_p3), 3, %v1544_v34 }
   0xc   : > { %v800_v56 = vsub.s32 (!%p392_p3), 4, %v1544_v34  ;;  %v847_v59 = vsub.s32 (!%p392_p3), 5, %v1544_v34  ;;  %v894_v3 = vsub.s32 (!%p392_p3), 6, %v1544_v34  ;;  %vm998_vm9 = vcmask (!%p392_p3), 1046528  }
   0xd   : > { %vm1026_vm11 = vcmask (!%p392_p3), 519168  }
   0xe   : > { %s1735_s27 = smov (!%p483_p4, %s1444_s27), 3 }
   0xf   : > { %s1250_s9 = sshll.u32 %s1735_s27, 3  ;;  %s1526_s10 = sshll.u32 %s1735_s27, 2 }
  0x10   : > { %s521_s13 = scalar_lea.vmem %s1724_s3, %s1250_s9  ;;  %s502_s16 = scalar_lea.vmem %s1722_s1, %s1526_s10 }
  0x11   : > { %v1253_v2 = vld [vmem:[%s521_s13] sm:$0xff]   ;;  %s531_s21 = scalar_lea.vmem %s1725_s4, %s1250_s9  ;;  %s1571_s9 = scalar_lea.vmem %s1721_s0, %s1526_s10 }
  0x12   : > { %v1254_v5 = vunpack.c.l.bf16 %v1253_v2  ;;  %v1255_v6 = vunpack.c.h.bf16 %v1253_v2  ;;  %v566_v7 = vld [vmem:[%s502_s16] sm:$0xf]  ;;  %s512_s13 = scalar_lea.vmem %s1723_s2, %s1526_s10  ;;  %s552_s18 = scalar_lea.vmem %s1729_s8, %s1526_s10 }
  0x13   : > { %v567_v8 = vunpack.c.l.bf16 %v566_v7  ;;  %v1257_v15 = vld [vmem:[%s531_s21] sm:$0xff]   ;;  %v593_v7 = vld [vmem:[#allocation2 + $0x8] sm:$0xff] }
  0x14   : > { %v1306_v9 = vpack.i.bf16 %v1255_v6, %v1254_v5  ;;  %v1258_v16 = vunpack.c.l.bf16 %v1257_v15  ;;  %v1259_v17 = vunpack.c.h.bf16 %v1257_v15  ;;  %v595_v51 = vld [vmem:[%s1571_s9] sm:$0xf] }
  0x15   : > { %v575_v10 = vadd.f32 %v1246_v4, %v567_v8  ;;  %v596_v57 = vunpack.c.l.bf16 %v595_v51  ;;  %v592_v6 = vld [vmem:[#allocation2] sm:$0xff] }
  0x16   : > { %1307 = vperm.xlu1 %1305, %v1306_v9   ;;  %1295 = vperm.xlu0 %1293, %v1306_v9   ;;  %v1342_v20 = vpack.i.bf16 %v1259_v17, %v1258_v16  ;;  %v941_v17 = vsub.s32 7, %v1544_v34 }
  0x17   : > { %v577_v11 = vmin.f32 %v575_v10, 20.0  ;;  %vm576_vm2 = vcmp.gt.f32.partialorder %v575_v10, 20.0 }
  0x19   : > { %v578_v12 = vmul.f32 1.442695, %v577_v11 }
  0x1a   : > { %1311 = vset.pattern.permute.xlu1 %v1457_v13  ;;  %1299 = vset.pattern.permute.xlu0 %v1458_v14 }
  0x1b   : > { %1390 = vpow2.f32 %v578_v12  ;;  %1313 = vperm.xlu1 %1311, %v1306_v9   ;;  %1301 = vperm.xlu0 %1299, %v1306_v9  }
  0x1f   : > { %1317 = vset.pattern.permute.xlu1 %v1459_v18  ;;  %1323 = vset.pattern.permute.xlu0 %v1460_v19 }
  0x20   : > { %1319 = vperm.xlu1 %1317, %v1306_v9   ;;  %1325 = vperm.xlu0 %1323, %v1306_v9  }
  0x24   : > { %1329 = vset.pattern.permute.xlu1 %v1461_v21  ;;  %1341 = vset.pattern.permute.xlu0 %v1458_v14 }
  0x25   : > { %v1391_v22 = vpop.eup %1390  ;;  %1331 = vperm.xlu1 %1329, %v1306_v9   ;;  %1343 = vperm.xlu0 %1341, %v1342_v20  }
  0x26   : > { %v580_v23 = vadd.f32 1.0, %v1391_v22  ;;  %v583_v24 = vmul.f32 -0.5, %v1391_v22  ;;  %v586_v27 = vand.u32 2147483647, %v1391_v22 }
  0x28   : > { %1392 = vlog2.f32 %v580_v23  ;;  %v584_v26 = vadd.f32 1.0, %v583_v24  ;;  %vm587_vm1 = vcmp.lt.f32.partialorder %v586_v27, 0.0004427343 }
  0x29   : > { %1335 = vset.pattern.permute.xlu1 %v1455_v1  ;;  %1359 = vset.pattern.permute.xlu0 %v1462_v25 }
  0x2a   : > { %1337 = vperm.xlu1 %1335, %v1342_v20   ;;  %1361 = vperm.xlu0 %1359, %v1306_v9   ;;  %v585_v28 = vmul.f32 %v1391_v22, %v584_v26 }
  0x2e   : > { %1347 = vset.pattern.permute.xlu1 %v1454_v0  ;;  %1377 = vset.pattern.permute.xlu0 %v1461_v21 }
  0x2f   : > { %1349 = vperm.xlu1 %1347, %v1342_v20   ;;  %1379 = vperm.xlu0 %1377, %v1342_v20  }
  0x32   : > { %v1393_v29 = vpop.eup %1392 }
  0x33   : > { %v582_v30 = vmul.f32 0.6931472, %v1393_v29  ;;  %1353 = vset.pattern.permute.xlu1 %v1457_v13  ;;  %1389 = vset.pattern.permute.xlu0 %v1462_v25 }
  0x34   : > { %1355 = vperm.xlu1 %1353, %v1342_v20  }
  0x35   : > { %v588_v31 = vsel %vm587_vm1, %v585_v28, %v582_v30 }
  0x36   : > { %v589_v32 = vsel %vm576_vm2, %v575_v10, %v588_v31 }
  0x37   : > { %591 = vst.msk [vmem:[#allocation3] sm:$0xff] %vm557_vm0, %v589_v32 }
  0x38   : > { %1365 = vset.pattern.permute.xlu1 %v1459_v18 }
  0x39   : > { %1367 = vperm.xlu1 %1365, %v1342_v20  }
  0x3d   : > { %1371 = vset.pattern.permute.xlu1 %v1460_v19 }
  0x3e   : > { %1373 = vperm.xlu1 %1371, %v1342_v20   ;;  %v1547_v36 = vld [vmem:[#allocation3] sm:$0xff] }
  0x3f   : > { %v609_v37 = vrot.slane %v1547_v36, %v608_v35  ;;  %v660_v43 = vrot.slane %v1547_v36, %v659_v40  ;;  %v707_v48 = vrot.slane %v1547_v36, %v706_v44  ;;  %v754_v54 = vrot.slane %v1547_v36, %v753_v49 }
  0x40   : > { %v801_v62 = vrot.slane %v1547_v36, %v800_v56  ;;  %v1590_v63 = vmul.f32 %v596_v57, %v1547_v36  ;;  %v848_v2 = vrot.slane %v1547_v36, %v847_v59  ;;  %v895_v16 = vrot.slane %v1547_v36, %v894_v3 }
  0x41   : > { %v610_v41 = vmul.f32 %v609_v37, %v1553_v38  ;;  %v611_v42 = vmul.f32 %v609_v37, %v1558_v39  ;;  %v661_v47 = vmul.f32 %v660_v43, %v1553_v38  ;;  %v662_v50 = vmul.f32 %v660_v43, %v1558_v39 }
  0x42   : > { %1383 = vset.pattern.permute.xlu1 %v1462_v25  ;;  %v708_v53 = vmul.f32 %v707_v48, %v1553_v38  ;;  %v709_v58 = vmul.f32 %v707_v48, %v1558_v39  ;;  %v755_v61 = vmul.f32 %v754_v54, %v1553_v38  ;;  %v756_v1 = vmul.f32 %v754_v54, %v1558_v39 }
  0x43   : > { %1385 = vperm.xlu1 %1383, %v1342_v20   ;;  %v612_v45 = vmul.f32 1.442695, %v610_v41  ;;  %v614_v46 = vmul.f32 1.442695, %v611_v42  ;;  %v663_v52 = vmul.f32 1.442695, %v661_v47  ;;  %v802_v9 = vmul.f32 %v801_v62, %v1553_v38 }
  0x44   : > { %v665_v55 = vmul.f32 1.442695, %v662_v50  ;;  %v710_v60 = vmul.f32 1.442695, %v708_v53  ;;  %v712_v0 = vmul.f32 1.442695, %v709_v58  ;;  %v629_v10 = vrot.slane %v1590_v63, %v608_v35 }
  0x45   : > { %1394 = vpow2.f32 %v612_v45  ;;  %v757_v8 = vmul.f32 1.442695, %v755_v61  ;;  %v759_v11 = vmul.f32 1.442695, %v756_v1  ;;  %v803_v12 = vmul.f32 %v801_v62, %v1558_v39  ;;  %v564_v58 = vld [vmem:[%s512_s13] sm:$0xf] }
  0x46   : > { %1396 = vpow2.f32 %v614_v46  ;;  %v849_v15 = vmul.f32 %v848_v2, %v1553_v38  ;;  %v804_v22 = vmul.f32 1.442695, %v802_v9  ;;  %v850_v23 = vmul.f32 %v848_v2, %v1558_v39 }
  0x47   : > { %1398 = vpow2.f32 %v663_v52  ;;  %v806_v27 = vmul.f32 1.442695, %v803_v12  ;;  %v725_v29 = vrot.slane %v1590_v63, %v706_v44  ;;  %v678_v30 = vrot.slane %v1590_v63, %v659_v40 }
  0x48   : > { %1400 = vpow2.f32 %v665_v55  ;;  %v851_v31 = vmul.f32 1.442695, %v849_v15  ;;  %v896_v32 = vmul.f32 %v895_v16, %v1553_v38  ;;  %v897_v42 = vmul.f32 %v895_v16, %v1558_v39 }
  0x49   : > { %1402 = vpow2.f32 %v710_v60  ;;  %v942_v43 = vrot.slane %v1547_v36, %v941_v17  ;;  %v853_v46 = vmul.f32 1.442695, %v850_v23  ;;  %v772_v36 = vrot.slane %v1590_v63, %v753_v49 }
  0x4a   : > { %1404 = vpow2.f32 %v712_v0  ;;  %v898_v55 = vmul.f32 1.442695, %v896_v32 }
  0x4b   : > { %1406 = vpow2.f32 %v757_v8  ;;  %v943_v57 = vmul.f32 %v942_v43, %v1553_v38  ;;  %v944_v1 = vmul.f32 %v942_v43, %v1558_v39  ;;  %v819_v38 = vrot.slane %v1590_v63, %v800_v56 }
  0x4c   : > { %1408 = vpow2.f32 %v759_v11  ;;  %v1630_v11 = vunpack.c.l.bf16 %v564_v58  ;;  %v866_v39 = vrot.slane %v1590_v63, %v847_v59 }
  0x4d   : > { %1410 = vpow2.f32 %v804_v22  ;;  %v945_v12 = vmul.f32 1.442695, %v943_v57  ;;  %v947_v15 = vmul.f32 1.442695, %v944_v1 }
  0x4e   : > { %1412 = vpow2.f32 %v806_v27  ;;  %vm1017_vm10 = vcmp.ge.f32.partialorder %v1630_v11, 0.0 }
  0x4f   : > { %v1395_v4 = vpop.eup %1394  ;;  %1414 = vpow2.f32 %v851_v31 }
  0x50   : > { %v1397_v5 = vpop.eup %1396  ;;  %v632_v20 = vmul.f32 %v1395_v4, %v592_v6  ;;  %1416 = vpow2.f32 %v853_v46 }
  0x51   : > { %v633_v21 = vmul.f32 %v1397_v5, %v593_v7  ;;  %v1399_v24 = vpop.eup %1398  ;;  %v900_v5 = vmul.f32 1.442695, %v897_v42  ;;  %1418 = vpow2.f32 %v898_v55 }
  0x52   : > { %v1401_v28 = vpop.eup %1400 }
  0x53   : > { %v1403_v50 = vpop.eup %1402  ;;  %1420 = vpow2.f32 %v900_v5 }
  0x54   : > { %v1405_v54 = vpop.eup %1404  ;;  %1422 = vpow2.f32 %v945_v12 }
  0x55   : > { %v1407_v6 = vpop.eup %1406  ;;  %1424 = vpow2.f32 %v947_v15 }
  0x95   : > { %v1308_v13 = vpop.permute.xlu1 %1307  ;;  %v1296_v14 = vpop.permute.xlu0 %1295 }
  0x96   : > { %v1298_v18 = vunpack.i.h.bf16 %v1296_v14  ;;  %v1297_v19 = vunpack.i.l.bf16 %v1296_v14  ;;  %v1309_v40 = vunpack.i.l.bf16 %v1308_v13  ;;  %v1310_v51 = vunpack.i.h.bf16 %v1308_v13 }
  0x98   : > { %v630_v25 = vmul.f32 %v1297_v19, %v629_v10  ;;  %v631_v26 = vmul.f32 %v1298_v18, %v629_v10  ;;  %v726_v2 = vmul.f32 %v1309_v40, %v725_v29  ;;  %v727_v7 = vmul.f32 %v1310_v51, %v725_v29  ;;  %v1409_v10 = vpop.eup %1408 }
  0x99   : > { %v1411_v22 = vpop.eup %1410 }
  0x9a   : > { %v1611_v33 = vadd.f32 %v632_v20, %v630_v25  ;;  %v1613_v35 = vadd.f32 %v633_v21, %v631_v26  ;;  %v1314_v37 = vpop.permute.xlu1 %1313  ;;  %v1302_v41 = vpop.permute.xlu0 %1301  ;;  %v1013_v26 = vand.u32 2147483647, %v1630_v11 }
  0x9b   : > { %v1304_v44 = vunpack.i.h.bf16 %v1302_v41  ;;  %v1303_v45 = vunpack.i.l.bf16 %v1302_v41  ;;  %v1315_v4 = vunpack.i.l.bf16 %v1314_v37  ;;  %v1316_v8 = vunpack.i.h.bf16 %v1314_v37  ;;  %v1413_v25 = vpop.eup %1412 }
  0x9c   : > { %v681_v47 = vmul.f32 %v1399_v24, %v1611_v33  ;;  %v682_v48 = vmul.f32 %v1401_v28, %v1613_v35  ;;  %v913_v41 = vrot.slane %v1590_v63, %v894_v3  ;;  %v1415_v42 = vpop.eup %1414 }
  0x9d   : > { %v679_v52 = vmul.f32 %v1303_v45, %v678_v30  ;;  %v680_v53 = vmul.f32 %v1304_v44, %v678_v30  ;;  %v773_v16 = vmul.f32 %v1315_v4, %v772_v36  ;;  %v774_v23 = vmul.f32 %v1316_v8, %v772_v36 }
  0x9f   : > { %v683_v60 = vadd.f32 %v681_v47, %v679_v52  ;;  %v684_v61 = vadd.f32 %v682_v48, %v680_v53  ;;  %v1320_v62 = vpop.permute.xlu1 %1319  ;;  %v1326_v0 = vpop.permute.xlu0 %1325 }
  0xa0   : > { %v1322_v18 = vunpack.i.h.bf16 %v1320_v62  ;;  %v1321_v19 = vunpack.i.l.bf16 %v1320_v62  ;;  %v1327_v59 = vunpack.i.l.bf16 %v1326_v0  ;;  %v1328_v30 = vunpack.i.h.bf16 %v1326_v0  ;;  %v1417_v48 = vpop.eup %1416 }
  0xa1   : > { %v728_v9 = vmul.f32 %v1403_v50, %v683_v60  ;;  %v729_v49 = vmul.f32 %v1405_v54, %v684_v61  ;;  %v1419_v62 = vpop.eup %1418  ;;  %v1014_v0 = vsub.f32 0.0, %v1013_v26 }
  0xa2   : > { %v820_v32 = vmul.f32 %v1321_v19, %v819_v38  ;;  %v821_v37 = vmul.f32 %v1322_v18, %v819_v38  ;;  %v867_v45 = vmul.f32 %v1327_v59, %v866_v39  ;;  %v868_v3 = vmul.f32 %v1328_v30, %v866_v39  ;;  %v1421_v4 = vpop.eup %1420 }
  0xa3   : > { %v1638_v13 = vadd.f32 %v728_v9, %v726_v2  ;;  %v1640_v14 = vadd.f32 %v729_v49, %v727_v7  ;;  %v1015_v19 = vmul.f32 1.442695, %v1014_v0 }
  0xa4   : > { %v1332_v20 = vpop.permute.xlu1 %1331  ;;  %v1344_v21 = vpop.permute.xlu0 %1343 }
  0xa5   : > { %v775_v56 = vmul.f32 %v1407_v6, %v1638_v13  ;;  %v776_v24 = vmul.f32 %v1409_v10, %v1640_v14  ;;  %v1345_v27 = vunpack.i.l.bf16 %v1344_v21  ;;  %v1346_v31 = vunpack.i.h.bf16 %v1344_v21  ;;  %v1423_v10 = vpop.eup %1422 }
  0xa6   : > { %v1334_v46 = vunpack.i.h.bf16 %v1332_v20  ;;  %v1333_v50 = vunpack.i.l.bf16 %v1332_v20  ;;  %1426 = vpow2.f32 %v1015_v19 }
  0xa7   : > { %v1645_v28 = vadd.f32 %v775_v56, %v773_v16  ;;  %v1647_v29 = vadd.f32 %v776_v24, %v774_v23  ;;  %v693_v51 = vmul.f32 %v1345_v27, %v683_v60  ;;  %v694_v55 = vmul.f32 %v1346_v31, %v684_v61 }
  0xa8   : > { %v914_v60 = vmul.f32 %v1333_v50, %v913_v41  ;;  %v915_v5 = vmul.f32 %v1334_v46, %v913_v41  ;;  %v960_v61 = vrot.slane %v1590_v63, %v941_v17  ;;  %v1425_v17 = vpop.eup %1424 }
  0xa9   : > { %v822_v43 = vmul.f32 %v1411_v22, %v1645_v28  ;;  %v823_v44 = vmul.f32 %v1413_v25, %v1647_v29  ;;  %v1338_v40 = vpop.permute.xlu1 %1337  ;;  %v1362_v47 = vpop.permute.xlu0 %1361  ;;  %v695_v6 = vsel %vm557_vm0, %v693_v51, 0.0  ;;  %v696_v9 = vsel %vm557_vm0, %v694_v55, 0.0 }
  0xaa   : > { %v1340_v52 = vunpack.i.h.bf16 %v1338_v40  ;;  %v1339_v53 = vunpack.i.l.bf16 %v1338_v40  ;;  %v1364_v49 = vunpack.i.h.bf16 %v1362_v47  ;;  %v1363_v16 = vunpack.i.l.bf16 %v1362_v47 }
  0xab   : > { %v1654_v54 = vadd.f32 %v822_v43, %v820_v32  ;;  %v1656_v36 = vadd.f32 %v823_v44, %v821_v37  ;;  %v697_v23 = vadd.f32 %v696_v9, %v695_v6 }
  0xac   : > { %v646_v57 = vmul.f32 %v1339_v53, %v1611_v33  ;;  %v647_v58 = vmul.f32 %v1340_v52, %v1613_v35  ;;  %v961_v37 = vmul.f32 %v1363_v16, %v960_v61  ;;  %v962_v41 = vmul.f32 %v1364_v49, %v960_v61 }
  0xad   : > { %v869_v1 = vmul.f32 %v1415_v42, %v1654_v54  ;;  %v870_v2 = vmul.f32 %v1417_v48, %v1656_v36  ;;  %v698_v51 = vrot.slane %v697_v23, 4 }
  0xae   : > { %v1350_v7 = vpop.permute.xlu1 %1349  ;;  %v1380_v8 = vpop.permute.xlu0 %1379  ;;  %v648_v38 = vsel %vm557_vm0, %v646_v57, 0.0  ;;  %v649_v39 = vsel %vm557_vm0, %v647_v58, 0.0 }
  0xaf   : > { %v1666_v33 = vadd.f32 %v869_v1, %v867_v45  ;;  %v1668_v35 = vadd.f32 %v870_v2, %v868_v3  ;;  %v1352_v12 = vunpack.i.h.bf16 %v1350_v7  ;;  %v1351_v15 = vunpack.i.l.bf16 %v1350_v7 }
  0xb0   : > { %v1381_v18 = vunpack.i.l.bf16 %v1380_v8  ;;  %v1382_v22 = vunpack.i.h.bf16 %v1380_v8  ;;  %v650_v56 = vadd.f32 %v649_v39, %v648_v38 }
  0xb1   : > { %v916_v34 = vmul.f32 %v1419_v62, %v1666_v33  ;;  %v917_v63 = vmul.f32 %v1421_v4, %v1668_v35  ;;  %v740_v20 = vmul.f32 %v1351_v15, %v1638_v13  ;;  %v741_v21 = vmul.f32 %v1352_v12, %v1640_v14 }
  0xb2   : > { %v651_v45 = vrot.slane %v650_v56, 4 }
  0xb3   : > { %v918_v24 = vadd.f32 %v916_v34, %v914_v60  ;;  %v919_v59 = vadd.f32 %v917_v63, %v915_v5  ;;  %v1356_v25 = vpop.permute.xlu1 %1355  ;;  %v742_v26 = vsel %vm557_vm0, %v740_v20, 0.0  ;;  %v743_v27 = vsel %vm557_vm0, %v741_v21, 0.0 }
  0xb4   : > { %v1358_v30 = vunpack.i.h.bf16 %v1356_v25  ;;  %v1357_v31 = vunpack.i.l.bf16 %v1356_v25  ;;  %v744_v32 = vadd.f32 %v743_v27, %v742_v26  ;;  %v652_v58 = vadd.f32 %v651_v45, %v650_v56 }
  0xb5   : > { %v928_v42 = vmul.f32 %v1381_v18, %v918_v24  ;;  %v929_v43 = vmul.f32 %v1382_v22, %v919_v59  ;;  %v963_v44 = vmul.f32 %v1423_v10, %v918_v24  ;;  %v964_v50 = vmul.f32 %v1425_v17, %v919_v59  ;;  %v1693_v18 = vpop.eup %1426 }
  0xb6   : > { %v787_v13 = vmul.f32 %v1357_v31, %v1645_v28  ;;  %v788_v14 = vmul.f32 %v1358_v30, %v1647_v29  ;;  %v745_v46 = vrot.slane %v744_v32, 4  ;;  %v699_v60 = vadd.f32 %v698_v51, %v697_v23 }
  0xb7   : > { %v930_v52 = vsel %vm557_vm0, %v928_v42, 0.0  ;;  %v931_v53 = vsel %vm557_vm0, %v929_v43, 0.0  ;;  %v965_v57 = vadd.f32 %v963_v44, %v961_v37  ;;  %v966_v29 = vadd.f32 %v964_v50, %v962_v41 }
  0xb8   : > { %v789_v40 = vsel %vm557_vm0, %v787_v13, 0.0  ;;  %v790_v47 = vsel %vm557_vm0, %v788_v14, 0.0  ;;  %v1368_v48 = vpop.permute.xlu1 %1367  ;;  %v746_v62 = vadd.f32 %v745_v46, %v744_v32  ;;  %v932_v1 = vadd.f32 %v931_v53, %v930_v52 }
  0xb9   : > { %v791_v3 = vadd.f32 %v790_v47, %v789_v40  ;;  %v1370_v55 = vunpack.i.h.bf16 %v1368_v48  ;;  %v1369_v28 = vunpack.i.l.bf16 %v1368_v48  ;;  %1001 = vst.msk [vmem:[#allocation2] sm:$0xff] %vm557_vm0, %v965_v57  ;;  %1002 = vst.msk [vmem:[#allocation2 + $0x8] sm:$0xff] %vm557_vm0, %v966_v29  ;;  %v653_v49 = vrot.slane %v652_v58, 2 }
  0xba   : > { %v747_v10 = vrot.slane %v746_v62, 2  ;;  %v933_v39 = vrot.slane %v932_v1, 4  ;;  %v700_v12 = vrot.slane %v699_v60, 2  ;;  %v1018_v25 = vadd.f32 1.0, %v1693_v18 }
  0xbb   : > { %v792_v0 = vrot.slane %v791_v3, 4  ;;  %v834_v2 = vmul.f32 %v1369_v28, %v1654_v54  ;;  %v835_v4 = vmul.f32 %v1370_v55, %v1656_v36  ;;  %v654_v19 = vadd.f32 %v653_v49, %v652_v58 }
  0xbc   : > { %v748_v20 = vadd.f32 %v747_v10, %v746_v62  ;;  %v934_v22 = vadd.f32 %v933_v39, %v932_v1  ;;  %1428 = vrcp.f32 %v1018_v25 }
  0xbd   : > { %v793_v5 = vadd.f32 %v792_v0, %v791_v3  ;;  %v1374_v6 = vpop.permute.xlu1 %1373  ;;  %v836_v7 = vsel %vm557_vm0, %v834_v2, 0.0  ;;  %v837_v61 = vsel %vm557_vm0, %v835_v4, 0.0  ;;  %v655_v31 = vrot.slane %v654_v19, 1 }
  0xbe   : > { %v1376_v8 = vunpack.i.h.bf16 %v1374_v6  ;;  %v1375_v9 = vunpack.i.l.bf16 %v1374_v6  ;;  %v838_v38 = vadd.f32 %v837_v61, %v836_v7  ;;  %v749_v32 = vrot.slane %v748_v20, 1 }
  0xbf   : > { %v794_v15 = vrot.slane %v793_v5, 2  ;;  %v935_v41 = vrot.slane %v934_v22, 2  ;;  %v656_v47 = vadd.f32 %v655_v31, %v654_v19 }
  0xc0   : > { %v881_v54 = vmul.f32 %v1375_v9, %v1666_v33  ;;  %v882_v36 = vmul.f32 %v1376_v8, %v1668_v35  ;;  %v839_v16 = vrot.slane %v838_v38, 4  ;;  %v701_v33 = vadd.f32 %v700_v12, %v699_v60  ;;  %v562_v8 = vld [vmem:[%s1571_s9] sm:$0xf] }
  0xc1   : > { %v795_v59 = vadd.f32 %v794_v15, %v793_v5  ;;  %v750_v50 = vadd.f32 %v749_v32, %v748_v20  ;;  %v936_v51 = vadd.f32 %v935_v41, %v934_v22  ;;  %v563_v39 = vunpack.c.l.bf16 %v562_v8 }
  0xc2   : > { %v883_v34 = vsel %vm557_vm0, %v881_v54, 0.0  ;;  %v884_v63 = vsel %vm557_vm0, %v882_v36, 0.0  ;;  %v1386_v17 = vpop.permute.xlu1 %1385  ;;  %v840_v21 = vadd.f32 %v839_v16, %v838_v38  ;;  %v702_v14 = vrot.slane %v701_v33, 1  ;;  %v1247_v54 = vld [vmem:[%s1727_s6] ss:$0 sm:$0xff] }
  0xc3   : > { %v885_v23 = vadd.f32 %v884_v63, %v883_v34  ;;  %v1388_v56 = vunpack.i.h.bf16 %v1386_v17  ;;  %v1387_v24 = vunpack.i.l.bf16 %v1386_v17  ;;  %v796_v44 = vrot.slane %v795_v59, 1 }
  0xc4   : > { %v841_v35 = vrot.slane %v840_v21, 2  ;;  %v703_v53 = vadd.f32 %v702_v14, %v701_v33  ;;  %v937_v0 = vrot.slane %v936_v51, 1  ;;  %v1011_v12 = vmul.f32 %v1247_v54, %v563_v39 }
  0xc5   : > { %v886_v26 = vrot.slane %v885_v23, 4  ;;  %v975_v27 = vmul.f32 %v1387_v24, %v965_v57  ;;  %v976_v30 = vmul.f32 %v1388_v56, %v966_v29  ;;  %v797_v3 = vadd.f32 %v796_v44, %v795_v59 }
  0xc6   : > { %v842_v37 = vadd.f32 %v841_v35, %v840_v21  ;;  %v987_v29 = vsel %vm986_vm3, %v656_v47, %v703_v53  ;;  %v1429_v7 = vpop.eup %1428  ;;  %v938_v61 = vadd.f32 %v937_v0, %v936_v51 }
  0xc7   : > { %v887_v42 = vadd.f32 %v886_v26, %v885_v23  ;;  %v977_v43 = vsel %vm557_vm0, %v975_v27, 0.0  ;;  %v978_v13 = vsel %vm557_vm0, %v976_v30, 0.0  ;;  %v989_v62 = vsel %vm988_vm4, %v987_v29, %v750_v50 }
  0xc8   : > { %v979_v45 = vadd.f32 %v978_v13, %v977_v43  ;;  %v843_v46 = vrot.slane %v842_v37, 1  ;;  %v991_v2 = vsel %vm990_vm5, %v989_v62, %v797_v3  ;;  %v1021_v10 = vmul.f32 %v1429_v7, %v1693_v18 }
  0xc9   : > { %v888_v40 = vrot.slane %v887_v42, 2 }
  0xca   : > { %v980_v48 = vrot.slane %v979_v45, 4  ;;  %v844_v28 = vadd.f32 %v843_v46, %v842_v37  ;;  %v1022_v36 = vsel %vm1017_vm10, %v1429_v7, %v1021_v10 }
  0xcb   : > { %v889_v52 = vadd.f32 %v888_v40, %v887_v42  ;;  %v1023_v15 = vmul.f32 %v1022_v36, %v1630_v11 }
  0xcc   : > { %v981_v55 = vadd.f32 %v980_v48, %v979_v45  ;;  %v993_v60 = vsel %vm992_vm6, %v991_v2, %v844_v28 }
  0xcd   : > { %v890_v57 = vrot.slane %v889_v52, 1 }
  0xce   : > { %v982_v58 = vrot.slane %v981_v55, 2 }
  0xcf   : > { %v891_v1 = vadd.f32 %v890_v57, %v889_v52 }
  0xd0   : > { %v983_v4 = vadd.f32 %v982_v58, %v981_v55 }
  0xd1   : > { %v995_v5 = vsel %vm994_vm7, %v993_v60, %v891_v1 }
  0xd2   : > { %v984_v6 = vrot.slane %v983_v4, 1  ;;  %v997_v49 = vsel %vm996_vm8, %v995_v5, %v938_v61 }
  0xd4   : > { %v985_v9 = vadd.f32 %v984_v6, %v983_v4 }
  0xd6   : > { %v999_v38 = vsel %vm998_vm9, %v997_v49, %v985_v9 }
  0xd7   : > { %1000 = vst.msk [vmem:[#allocation4] sm:$0xff] %vm557_vm0, %v999_v38 }
  0xde   : > { %v1003_v16 = vld [vmem:[#allocation4] sm:$0xff] }
  0xdf   : > { %v1012_v34 = vadd.f32 %v1011_v12, %v1003_v16 }
  0xe1   : > { %v1024_v63 = vmul.f32 %v1023_v15, %v1012_v34 }
  0xe3   : > { %v1025_v18 = vpack.c.bf16 %v1024_v63, %v1024_v63 }
  0xe5   : > { %1027 = vst.msk [vmem:[%s552_s18] sm:$0xf] %vm1026_vm11, %v1025_v18 }
  0xe6 PF: > { %s18_s29 = sadd.s32 1, %s1452_s29   ;;  %s1730_s27 = smov %s1448_s28 }
  0xe7   : > { %p15_p5 = scmp.ge.s32.totalorder %s18_s29, 6   ;;  %s1731_s28 = smov %s1733_s30 }
  0xe9   :  { %17 = sbr.rel (!%p15_p5) target bundleno = 2 (0x2), region = 107 }

// kernel: endomamba_forward.52
= control target key start
LH: loop header
LB: loop body
LE: loop exit
PB: predicated region body
PF: predicated region fallthrough
CT: control target
= control target key end

     0   :  { %vm28_vm0 = vcmask 261120   ;;  %vm35_vm1 = vcmask 257024   ;;  %vm77_vm2 = vcmask 254976   ;;  %s171_s0 = inlined_call_operand.vmem [shape: f32[20,32], index: 0, kind: input, shape index: {}]   ;;  %s172_s1 = inlined_call_operand.vmem [shape: f32[20,32], index: 1, kind: input, shape index: {}]   ;;  %s173_s4 = inlined_call_operand.vmem [shape: f32[20,32], index: 4, kind: output, shape index: {1}]   ;;  %s174_s2 = inlined_call_operand.vmem [shape: f32[1,32], index: 2, kind: input, shape index: {}]   ;;  %s175_s3 = inlined_call_operand.vmem [shape: bf16[20,32], index: 3, kind: output, shape index: {0}]  }
   0x1   :  { %v16_v0 = vld [vmem:[%s171_s0] sm:$0xff]  ;;  %v18_v2 = vld [vmem:[%s171_s0 + $0x10] sm:$0xf]  ;;  %v17_v5 = vld [vmem:[%s171_s0 + $0x8] sm:$0xff] }
   0x2   :  { %v19_v1 = vld [vmem:[%s172_s1] sm:$0xff]  ;;  %v21_v4 = vld [vmem:[%s172_s1 + $0x10] sm:$0xf]  ;;  %v20_v6 = vld [vmem:[%s172_s1 + $0x8] sm:$0xff] }
   0x3   :  { %v22_v3 = vadd.f32 %v19_v1, %v16_v0  ;;  %v24_v7 = vadd.f32 %v21_v4, %v18_v2  ;;  %v23_v8 = vadd.f32 %v20_v6, %v17_v5  ;;  %v90_v25 = vld [vmem:[%s174_s2] ss:$0 sm:$0xff] }
   0x5   :  { %v25_v9 = vmul.f32 %v22_v3, %v22_v3  ;;  %79 = vst.msk [vmem:[%s173_s4] sm:$0xff] %vm28_vm0, %v22_v3  ;;  %v27_v10 = vmul.f32 %v24_v7, %v24_v7  ;;  %v26_v11 = vmul.f32 %v23_v8, %v23_v8  ;;  %80 = vst.msk [vmem:[%s173_s4 + $0x8] sm:$0xff] %vm28_vm0, %v23_v8 }
   0x6   :  { %81 = vst.msk [vmem:[%s173_s4 + $0x10] sm:$0xf] %vm35_vm1, %v24_v7 }
   0x7   :  { %v29_v12 = vsel %vm28_vm0, %v25_v9, 0.0  ;;  %v36_v13 = vsel %vm35_vm1, %v27_v10, 0.0  ;;  %v32_v14 = vsel %vm28_vm0, %v26_v11, 0.0 }
   0x8   :  { %30 = vadd.xlane.f32.xlu0 %v29_v12  ;;  %37 = vadd.xlane.f32.xlu1 %v36_v13 }
   0xc   :  { %33 = vadd.xlane.f32.xlu0 %v32_v14 }
  0x95   :  { %v31_v15 = vpop.xlane.xlu0 %30  ;;  %v38_v17 = vpop.xlane.xlu1 %37 }
  0x96   :  { %v40_v16 = vmul.f32 0.03125, %v31_v15  ;;  %v42_v18 = vmul.f32 0.03125, %v38_v17 }
  0x98   :  { %v43_v19 = vadd.f32 1e-05, %v40_v16  ;;  %v45_v20 = vadd.f32 1e-05, %v42_v18 }
  0x99   :  { %v34_v21 = vpop.xlane.xlu0 %33 }
  0x9a   :  { %97 = vrsqrt.f32 %v43_v19  ;;  %v41_v22 = vmul.f32 0.03125, %v34_v21 }
  0x9b   :  { %99 = vrsqrt.f32 %v45_v20 }
  0x9c   :  { %v44_v23 = vadd.f32 1e-05, %v41_v22 }
  0x9e   :  { %101 = vrsqrt.f32 %v44_v23 }
  0xa4   :  { %v98_v24 = vpop.eup %97 }
  0xa5   :  { %v100_v26 = vpop.eup %99  ;;  %v49_v27 = vmul.f32 %v98_v24, %v22_v3 }
  0xa6   :  { %v51_v28 = vmul.f32 %v100_v26, %v24_v7 }
  0xa7   :  { %v59_v29 = vmul.f32 %v90_v25, %v49_v27 }
  0xa8   :  { %v102_v30 = vpop.eup %101  ;;  %v61_v31 = vmul.f32 %v90_v25, %v51_v28 }
  0xa9   :  { %v94_v32 = vpack.c.bf16 %v59_v29, %v59_v29  ;;  %v50_v33 = vmul.f32 %v102_v30, %v23_v8 }
  0xaa   :  { %v96_v34 = vpack.c.bf16 %v61_v31, %v61_v31 }
  0xab   :  { %75 = vst.msk [vmem:[%s175_s3] sm:$0xf] %vm35_vm1, %v94_v32  ;;  %v60_v35 = vmul.f32 %v90_v25, %v50_v33 }
  0xac   :  { %78 = vst.msk [vmem:[%s175_s3 + $0x8] sm:$0x3] %vm77_vm2, %v96_v34 }
  0xad   :  { %v95_v36 = vpack.c.bf16 %v60_v35, %v60_v35 }
  0xaf   :  { %76 = vst.msk [vmem:[%s175_s3 + $0x4] sm:$0xf] %vm35_vm1, %v95_v36 }

// kernel: endomamba_forward.77
= control target key start
LH: loop header
LB: loop body
LE: loop exit
PB: predicated region body
PF: predicated region fallthrough
CT: control target
= control target key end

     0   :  { %vm29_vm0 = vcmask 261120   ;;  %s217_s0 = inlined_call_operand.vmem [shape: f32[20,32], index: 0, kind: input, shape index: {}]   ;;  %s218_s1 = inlined_call_operand.vmem [shape: f32[20,32], index: 1, kind: input, shape index: {}]   ;;  %s219_s2 = inlined_call_operand.vmem [shape: f32[1,32], index: 2, kind: input, shape index: {}]   ;;  %s220_s3 = inlined_call_operand.vmem [shape: bf16[20,32], index: 3, kind: output, shape index: {0}]   ;;  %s221_s4 = inlined_call_operand.hbm [shape: f32[20,32], index: 4, kind: output, shape index: {1}]  }
   0x1   :  { %v17_v0 = vld [vmem:[%s217_s0] sm:$0xff]  ;;  %v19_v2 = vld [vmem:[%s217_s0 + $0x10] sm:$0xf]  ;;  %v18_v5 = vld [vmem:[%s217_s0 + $0x8] sm:$0xff] }
   0x2   :  { %v20_v1 = vld [vmem:[%s218_s1] sm:$0xff]  ;;  %v22_v4 = vld [vmem:[%s218_s1 + $0x10] sm:$0xf]  ;;  %v21_v6 = vld [vmem:[%s218_s1 + $0x8] sm:$0xff] }
   0x3   :  { %v23_v3 = vadd.f32 %v20_v1, %v17_v0  ;;  %v25_v7 = vadd.f32 %v22_v4, %v19_v2  ;;  %v24_v8 = vadd.f32 %v21_v6, %v18_v5 }
   0x4   :  { %10 = vsyncpa [#allocation3], 0  ;;  %vm36_vm1 = vcmask 257024   ;;  %s143_s0 = smov [#allocation2]  }
   0x5   :  { %v26_v9 = vmul.f32 %v23_v3, %v23_v3  ;;  %80 = vst.msk [vmem:[#allocation2] sm:$0xff] %vm29_vm0, %v23_v3  ;;  %v28_v10 = vmul.f32 %v25_v7, %v25_v7  ;;  %v27_v11 = vmul.f32 %v24_v8, %v24_v8  ;;  %81 = vst.msk [vmem:[#allocation2 + $0x8] sm:$0xff] %vm29_vm0, %v24_v8  ;;  %s90_s1 = sshll.u32 %s143_s0, 4  ;;  %s91_s1 = int_to_ptr.vmem [resolvable:$true] %s90_s1 }
   0x6   :  { %82 = vst.msk [vmem:[#allocation2 + $0x10] sm:$0xf] %vm36_vm1, %v25_v7  ;;  %s119_s27 = scalar_lea.vmem %s91_s1, 384  ;;  %p124_p1 = scmp.lt.s32.totalorder %s91_s1, %s91_s1 }
   0x7   :  { %v30_v12 = vsel %vm29_vm0, %v26_v9, 0.0  ;;  %v37_v13 = vsel %vm36_vm1, %v28_v10, 0.0  ;;  %v33_v14 = vsel %vm29_vm0, %v27_v11, 0.0  ;;  %p120_p0 = scmp.ne.s32.totalorder %s91_s1, %s119_s27  ;;  %p125_p2 = scmp.lt.s32.totalorder %s119_s27, %s119_s27 }
   0x8   :  { %31 = vadd.xlane.f32.xlu0 %v30_v12  ;;  %38 = vadd.xlane.f32.xlu1 %v37_v13 }
   0x9   :  { %p126_p3 = por %p125_p2, %p124_p1 }
   0xb   :  { %p127_p4 = pnand %p126_p3, %p120_p0 }
   0xc   :  { %34 = vadd.xlane.f32.xlu0 %v33_v14 }
   0xd   :  { %130 = shalt.err (!%p127_p4)
}
   0xe   :  { %s131_s30 = scalar_lea.hbm %s221_s4, 384 }
   0xf   :  { %p132_p5 = scmp.ne.s32.totalorder %s221_s4, %s131_s30  ;;  %p135_p6 = scmp.lt.u32.totalorder %s131_s30, %s221_s4 }
  0x11   :  { %p137_p7 = pnand %p135_p6, %p132_p5 }
  0x13   :  { %140 = shalt.err (!%p137_p7)
}
  0x14   :  { %s144_s9 = smov 128   ;;  %s145_s10 = smov 8   ;;  %v103_v25 = vld [vmem:[%s219_s2] ss:$0 sm:$0xff]  ;;  %vm78_vm2 = vcmask 254976  }
  0x15   :  { %96 = dma.vmem_to_hbm [thread:$0]  %s91_s1, 384, %s221_s4, [#allocation3], %s144_s9, %s144_s9, %s145_s10  }
  0x95   :  { %v32_v15 = vpop.xlane.xlu0 %31  ;;  %v39_v17 = vpop.xlane.xlu1 %38 }
  0x96   :  { %v41_v16 = vmul.f32 0.03125, %v32_v15  ;;  %v43_v18 = vmul.f32 0.03125, %v39_v17 }
  0x98   :  { %v44_v19 = vadd.f32 1e-05, %v41_v16  ;;  %v46_v20 = vadd.f32 1e-05, %v43_v18 }
  0x99   :  { %v35_v21 = vpop.xlane.xlu0 %34 }
  0x9a   :  { %113 = vrsqrt.f32 %v44_v19  ;;  %v42_v22 = vmul.f32 0.03125, %v35_v21 }
  0x9b   :  { %115 = vrsqrt.f32 %v46_v20 }
  0x9c   :  { %v45_v23 = vadd.f32 1e-05, %v42_v22 }
  0x9e   :  { %117 = vrsqrt.f32 %v45_v23 }
  0xa4   :  { %v114_v24 = vpop.eup %113 }
  0xa5   :  { %v116_v26 = vpop.eup %115  ;;  %v50_v27 = vmul.f32 %v114_v24, %v23_v3 }
  0xa6   :  { %v52_v28 = vmul.f32 %v116_v26, %v25_v7 }
  0xa7   :  { %v60_v29 = vmul.f32 %v103_v25, %v50_v27 }
  0xa8   :  { %v118_v30 = vpop.eup %117  ;;  %v62_v31 = vmul.f32 %v103_v25, %v52_v28 }
  0xa9   :  { %v107_v32 = vpack.c.bf16 %v60_v29, %v60_v29  ;;  %v51_v33 = vmul.f32 %v118_v30, %v24_v8 }
  0xaa   :  { %v109_v34 = vpack.c.bf16 %v62_v31, %v62_v31 }
  0xab   :  { %76 = vst.msk [vmem:[%s220_s3] sm:$0xf] %vm36_vm1, %v107_v32  ;;  %v61_v35 = vmul.f32 %v103_v25, %v51_v33 }
  0xac   :  { %79 = vst.msk [vmem:[%s220_s3 + $0x8] sm:$0x3] %vm78_vm2, %v109_v34 }
  0xad   :  { %v108_v36 = vpack.c.bf16 %v61_v35, %v61_v35 }
  0xaf   :  { %77 = vst.msk [vmem:[%s220_s3 + $0x4] sm:$0xf] %vm36_vm1, %v108_v36 }
  0xb0   :  { %141 = dma.done.wait [#allocation3], 384  }
  0xb1   :  { %142 = vsyncadd [#allocation3], 4294966912 }
  0xb2   :  { %102 = vsyncpa [#allocation3], 1 }

// kernel: endomamba_forward.78
= control target key start
LH: loop header
LB: loop body
LE: loop exit
PB: predicated region body
PF: predicated region fallthrough
CT: control target
= control target key end

     0   :  { %vm16_vm0 = vcmask 258048   ;;  %v61_v20 = vlaneseq  ;;  %v143_v24 = vmov 1983009808   ;;  %vm119_vm1 = vcmask 1041409   ;;  %s169_s0 = inlined_call_operand.vmem [shape: bf16[4,5,32], index: 0, kind: input, shape index: {}]   ;;  %s170_s1 = inlined_call_operand.vmem [shape: bf16[4,32], index: 1, kind: output, shape index: {}]  }
   0x1   :  { %v8_v0 = vld [vmem:[%s169_s0] sm:$0x7]  ;;  %v9_v1 = vld [vmem:[%s169_s0 + $0x4] sm:$0x7]  ;;  %v10_v2 = vld [vmem:[%s169_s0 + $0x8] sm:$0x7]  ;;  %v59_v25 = vunpack.c.l.s4 %v143_v24 }
   0x2   :  { %v11_v3 = vld [vmem:[%s169_s0 + $0xc] sm:$0x7]  ;;  %v12_v4 = vunpack.c.l.bf16 %v8_v0  ;;  %v13_v5 = vunpack.c.l.bf16 %v9_v1  ;;  %v14_v6 = vunpack.c.l.bf16 %v10_v2  ;;  %v62_v31 = vshrl.u32 %v61_v20, 7 }
   0x3   :  { %v15_v7 = vunpack.c.l.bf16 %v11_v3  ;;  %v60_v35 = vunpack.c.0.s8 %v59_v25  ;;  %vm122_vm2 = vcmask 1042434   ;;  %vm125_vm3 = vcmask 1043459  }
   0x4   :  { %v17_v8 = vsel %vm16_vm0, %v12_v4, 0.0  ;;  %v24_v9 = vsel %vm16_vm0, %v13_v5, 0.0  ;;  %v31_v10 = vsel %vm16_vm0, %v14_v6, 0.0  ;;  %vm136_vm4 = vcmask 254976  }
   0x5   :  { %v18_v11 = vrot.slane %v17_v8, 4  ;;  %v25_v12 = vrot.slane %v24_v9, 4  ;;  %v32_v13 = vrot.slane %v31_v10, 4  ;;  %v38_v14 = vsel %vm16_vm0, %v15_v7, 0.0 }
   0x6   :  { %v39_v15 = vrot.slane %v38_v14, 4  ;;  %v63_v44 = vsub.s32 %v60_v35, %v62_v31 }
   0x7   :  { %v19_v16 = vadd.f32 %v18_v11, %v17_v8  ;;  %v26_v17 = vadd.f32 %v25_v12, %v24_v9  ;;  %v33_v18 = vadd.f32 %v32_v13, %v31_v10 }
   0x8   :  { %v40_v19 = vadd.f32 %v39_v15, %v38_v14 }
   0x9   :  { %v20_v21 = vrot.slane %v19_v16, 2  ;;  %v27_v22 = vrot.slane %v26_v17, 2  ;;  %v34_v23 = vrot.slane %v33_v18, 2 }
   0xa   :  { %v41_v26 = vrot.slane %v40_v19, 2 }
   0xb   :  { %v21_v27 = vadd.f32 %v20_v21, %v19_v16  ;;  %v28_v28 = vadd.f32 %v27_v22, %v26_v17  ;;  %v35_v29 = vadd.f32 %v34_v23, %v33_v18 }
   0xc   :  { %v42_v30 = vadd.f32 %v41_v26, %v40_v19 }
   0xd   :  { %v22_v32 = vrot.slane %v21_v27, 1  ;;  %v29_v33 = vrot.slane %v28_v28, 1  ;;  %v36_v34 = vrot.slane %v35_v29, 1 }
   0xe   :  { %v43_v36 = vrot.slane %v42_v30, 1 }
   0xf   :  { %v23_v37 = vadd.f32 %v22_v32, %v21_v27  ;;  %v30_v38 = vadd.f32 %v29_v33, %v28_v28  ;;  %v37_v39 = vadd.f32 %v36_v34, %v35_v29 }
  0x10   :  { %v44_v40 = vadd.f32 %v43_v36, %v42_v30 }
  0x11   :  { %v46_v41 = vmul.f32 0.2, %v23_v37  ;;  %v47_v42 = vmul.f32 0.2, %v30_v38  ;;  %v48_v43 = vmul.f32 0.2, %v37_v39 }
  0x12   :  { %v49_v45 = vmul.f32 0.2, %v44_v40 }
  0x13   :  { %v50_v46 = vpack.c.bf16 %v46_v41, %v46_v41  ;;  %v51_v47 = vpack.c.bf16 %v47_v42, %v47_v42  ;;  %v52_v48 = vpack.c.bf16 %v48_v43, %v48_v43 }
  0x14   :  { %v53_v49 = vpack.c.bf16 %v49_v45, %v49_v45 }
  0x15   :  { %v64_v50 = vrot.slane %v50_v46, %v63_v44  ;;  %v71_v51 = vrot.slane %v51_v47, %v63_v44  ;;  %v78_v52 = vrot.slane %v52_v48, %v63_v44 }
  0x16   :  { %v85_v53 = vrot.slane %v53_v49, %v63_v44 }
  0x17   :  { %v92_v54 = vrot.slane %v64_v50, %v63_v44  ;;  %v99_v55 = vrot.slane %v71_v51, %v63_v44  ;;  %v106_v56 = vrot.slane %v78_v52, %v63_v44 }
  0x18   :  { %v113_v57 = vrot.slane %v85_v53, %v63_v44 }
  0x19   :  { %v114_v58 = vunpack.c.l.b16 %v92_v54  ;;  %v115_v59 = vunpack.c.l.b16 %v99_v55  ;;  %v116_v60 = vunpack.c.l.b16 %v106_v56 }
  0x1a   :  { %v117_v61 = vunpack.c.l.b16 %v113_v57 }
  0x1b   :  { %v118_v62 = vrot.slane %v115_v59, 7  ;;  %v121_v63 = vrot.slane %v116_v60, 6 }
  0x1c   :  { %v124_v0 = vrot.slane %v117_v61, 5 }
  0x1d   :  { %v120_v1 = vsel %vm119_vm1, %v118_v62, %v114_v58 }
  0x1e   :  { %v123_v2 = vsel %vm122_vm2, %v121_v63, %v120_v1 }
  0x1f   :  { %v126_v3 = vsel %vm125_vm3, %v124_v0, %v123_v2 }
  0x20   :  { %v127_v4 = vpack.c.b16 %v126_v3, %v126_v3 }
  0x22   :  { %v134_v5 = vrot.slane %v127_v4, %v63_v44 }
  0x24   :  { %137 = vst.msk [vmem:[%s170_s1] sm:$0x3] %vm136_vm4, %v134_v5 }

// kernel: endomamba_forward.65
= control target key start
LH: loop header
LB: loop body
LE: loop exit
PB: predicated region body
PF: predicated region fallthrough
CT: control target
= control target key end

     0   :  { %s618_s12 = smov 0   ;;  %s620_s13 = smov 0   ;;  %s673_s0 = inlined_call_operand.vmem [shape: bf16[2,16,64], index: 0, kind: input, shape index: {}]   ;;  %s674_s1 = inlined_call_operand.vmem [shape: f32[4,64], index: 1, kind: input, shape index: {}]   ;;  %s675_s2 = inlined_call_operand.vmem [shape: f32[1,64], index: 2, kind: input, shape index: {}]   ;;  %s676_s3 = inlined_call_operand.vmem [shape: bf16[2,16,64], index: 3, kind: output, shape index: {}]  }
   0x1   :  { %s622_s14 = smov 0  }
   0x2 LB: > { %s32_s15 = sadd.s32 1, %s591_s13  ;;  %p518_p0 = scmp.ge.s32.totalorder %s595_s14, 1  ;;  %s595_s14 = sphi %s622_s14, %s13_s14   ;;  %s591_s13 = sphi %s620_s13, %s678_s13   ;;  %s587_s12 = sphi %s618_s12, %s677_s12  }
   0x3   : > { %p34_p1 = scmp.ge.s32.totalorder %s32_s15, 2  ;;  %p189_p2 = scmp.lt.s32.totalorder %s595_s14, 3 }
   0x5   : > { %s680_s15 = smov (%p34_p1, %s32_s15), 0  ;;  %p190_p3 = pnand %p518_p0, %p189_p2 }
   0x6   : > { %vm271_vm0 = vcmask (!%p190_p3), 523264   ;;  %p235_p4 = scmp.lt.s32.totalorder (!%p190_p3), %s587_s12, 1  ;;  %v597_v0 = vmov (!%p190_p3), 0.0   ;;  %v523_v5 = vld [vmem:[%s674_s1] ss:$0 sm:$0xff] (!%p190_p3)  ;;  %v333_v44 = vlaneseq (!%p190_p3)  ;;  %vm378_vm4 = vcmask (!%p190_p3), 519168  }
   0x7   : > { %193 = sbr.rel (%p190_p3) target bundleno = 78 (0x4e), region = 32  ;;  %272 = vst.msk [vmem:[#allocation3] sm:$0xff] (!%p190_p3), %vm271_vm0, %v597_v0  ;;  %v524_v6 = vld [vmem:[%s675_s2] ss:$0 sm:$0xff] (!%p190_p3)  ;;  %v525_v9 = vld [vmem:[%s674_s1 + $0x1] ss:$0 sm:$0xff] (!%p190_p3) }
   0x8   : > { %v526_v14 = vld [vmem:[%s674_s1 + $0x2] ss:$0 sm:$0xff] (!%p190_p3)  ;;  %v527_v20 = vld [vmem:[%s674_s1 + $0x3] ss:$0 sm:$0xff] (!%p190_p3)  ;;  %v334_v45 = vshrl.u32 (!%p190_p3), %v333_v44, 7 }
   0xa   : > { %v335_v47 = vadd.s32 (!%p190_p3), 8, %v334_v45 }
   0xc   : > { %vm341_vm3 = vcmp.lt.s32.totalorder (!%p190_p3), %v335_v47, 10 }
   0xe   : > { %s682_s12 = smov (!%p235_p4, %s587_s12), 1  ;;  %v277_v4 = vld [vmem:[#allocation3] sm:$0xff] }
   0xf   : > { %s532_s16 = sshll.u32 %s682_s12, 3  ;;  %279 = vst.msk [vmem:[#allocation2] sm:$0xff] %vm271_vm0, %v277_v4 }
  0x10   : > { %s245_s19 = scalar_lea.vmem %s673_s0, %s532_s16  ;;  %s265_s5 = scalar_lea.vmem %s676_s3, %s532_s16 }
  0x11   : > { %v537_v1 = vld [vmem:[%s245_s19] sm:$0xff]  }
  0x12   : > { %v538_v2 = vunpack.c.l.bf16 %v537_v1  ;;  %v539_v3 = vunpack.c.h.bf16 %v537_v1 }
  0x14   : > { %280 = vst.msk [vmem:[#allocation2 + $0x8] sm:$0xff] %vm271_vm0, %v538_v2  ;;  %281 = vst.msk [vmem:[#allocation2 + $0x10] sm:$0xff] %vm271_vm0, %v539_v3 }
  0x15   : > { %381 = vst.msk [vmem:[#allocation3] sm:$0xff] %vm271_vm0, %v539_v3 }
  0x1b   : > { %v283_v7 = vld [vmem:[#allocation2 + $0x5] sm:$0xff]  ;;  %v284_v11 = vld [vmem:[#allocation2 + $0xd] sm:$0xff] }
  0x1c   : > { %v300_v8 = vld [vmem:[#allocation2 + $0x6] sm:$0xff]  ;;  %v290_v10 = vmul.f32 %v523_v5, %v283_v7  ;;  %v301_v12 = vld [vmem:[#allocation2 + $0xe] sm:$0xff]  ;;  %v291_v15 = vmul.f32 %v523_v5, %v284_v11 }
  0x1d   : > { %v311_v13 = vld [vmem:[#allocation2 + $0x7] sm:$0xff]  ;;  %v307_v17 = vmul.f32 %v525_v9, %v300_v8  ;;  %v312_v18 = vld [vmem:[#allocation2 + $0xf] sm:$0xff]  ;;  %v308_v22 = vmul.f32 %v525_v9, %v301_v12 }
  0x1e   : > { %v298_v16 = vadd.f32 %v524_v6, %v290_v10  ;;  %v322_v19 = vld [vmem:[#allocation2 + $0x8] sm:$0xff]  ;;  %v299_v21 = vadd.f32 %v524_v6, %v291_v15  ;;  %v318_v24 = vmul.f32 %v526_v14, %v311_v13  ;;  %v323_v25 = vld [vmem:[#allocation2 + $0x10] sm:$0xff]  ;;  %v319_v27 = vmul.f32 %v526_v14, %v312_v18 }
  0x1f   : > { %v329_v29 = vmul.f32 %v527_v20, %v322_v19  ;;  %v330_v31 = vmul.f32 %v527_v20, %v323_v25 }
  0x20   : > { %v309_v23 = vadd.f32 %v307_v17, %v298_v16  ;;  %v310_v26 = vadd.f32 %v308_v22, %v299_v21 }
  0x22   : > { %v320_v28 = vadd.f32 %v318_v24, %v309_v23  ;;  %v321_v30 = vadd.f32 %v319_v27, %v310_v26 }
  0x24   : > { %v331_v32 = vadd.f32 %v329_v29, %v320_v28  ;;  %v332_v33 = vadd.f32 %v330_v31, %v321_v30 }
  0x26   : > { %v342_v34 = vand.u32 2147483647, %v331_v32  ;;  %v343_v35 = vand.u32 2147483647, %v332_v33  ;;  %vm350_vm1 = vcmp.ge.f32.partialorder %v331_v32, 0.0  ;;  %vm351_vm2 = vcmp.ge.f32.partialorder %v332_v33, 0.0 }
  0x28   : > { %v344_v36 = vsub.f32 0.0, %v342_v34  ;;  %v345_v37 = vsub.f32 0.0, %v343_v35 }
  0x2a   : > { %v346_v38 = vmul.f32 1.442695, %v344_v36  ;;  %v348_v39 = vmul.f32 1.442695, %v345_v37 }
  0x2c   : > { %565 = vpow2.f32 %v346_v38 }
  0x2d   : > { %567 = vpow2.f32 %v348_v39 }
  0x36   : > { %v566_v40 = vpop.eup %565 }
  0x37   : > { %v568_v41 = vpop.eup %567  ;;  %v352_v42 = vadd.f32 1.0, %v566_v40 }
  0x38   : > { %v353_v43 = vadd.f32 1.0, %v568_v41 }
  0x39   : > { %569 = vrcp.f32 %v352_v42 }
  0x3a   : > { %571 = vrcp.f32 %v353_v43 }
  0x43   : > { %v570_v46 = vpop.eup %569 }
  0x44   : > { %v572_v48 = vpop.eup %571  ;;  %v358_v49 = vmul.f32 %v570_v46, %v566_v40 }
  0x45   : > { %v359_v50 = vmul.f32 %v572_v48, %v568_v41 }
  0x46   : > { %v360_v51 = vsel %vm350_vm1, %v570_v46, %v358_v49 }
  0x47   : > { %v362_v52 = vmul.f32 %v360_v51, %v331_v32  ;;  %v361_v53 = vsel %vm351_vm2, %v572_v48, %v359_v50 }
  0x48   : > { %v363_v54 = vmul.f32 %v361_v53, %v332_v33 }
  0x49   : > { %v534_v55 = vpack.c.bf16 %v362_v52, %v362_v52 }
  0x4a   : > { %v369_v56 = vsel %vm341_vm3, %v363_v54, 0.0 }
  0x4b   : > { %379 = vst.msk [vmem:[%s265_s5] sm:$0xf] %vm378_vm4, %v534_v55  ;;  %v535_v57 = vpack.c.bf16 %v369_v56, %v369_v56 }
  0x4d   : > { %380 = vst.msk [vmem:[%s265_s5 + $0x4] sm:$0xf] %vm378_vm4, %v535_v57 }
  0x4e PF: > { %s13_s14 = sadd.s32 1, %s595_s14   ;;  %s677_s12 = smov %s591_s13 }
  0x4f   : > { %p10_p5 = scmp.ge.s32.totalorder %s13_s14, 4   ;;  %s678_s13 = smov %s680_s15 }
  0x51   :  { %12 = sbr.rel (!%p10_p5) target bundleno = 2 (0x2), region = 72 }

// kernel: endomamba_forward.68
= control target key start
LH: loop header
LB: loop body
LE: loop exit
PB: predicated region body
PF: predicated region fallthrough
CT: control target
= control target key end

     0   :  { %s1727_s27 = smov 0   ;;  %s1729_s28 = smov 0   ;;  %s1969_s0 = inlined_call_operand.vmem [shape: bf16[2,16,64], index: 0, kind: input, shape index: {}]   ;;  %s1970_s1 = inlined_call_operand.vmem [shape: bf16[2,16,64], index: 1, kind: input, shape index: {}]   ;;  %s1971_s2 = inlined_call_operand.vmem [shape: bf16[2,16,64], index: 2, kind: input, shape index: {}]   ;;  %s1972_s3 = inlined_call_operand.vmem [shape: bf16[2,32,8], index: 3, kind: input, shape index: {}]   ;;  %s1973_s4 = inlined_call_operand.vmem [shape: bf16[2,32,8], index: 4, kind: input, shape index: {}]   ;;  %s1974_s5 = inlined_call_operand.vmem [shape: f32[16,64], index: 5, kind: input, shape index: {}]   ;;  %s1975_s6 = inlined_call_operand.vmem [shape: f32[1,64], index: 6, kind: input, shape index: {}]   ;;  %s1976_s7 = inlined_call_operand.vmem [shape: f32[1,64], index: 7, kind: input, shape index: {}]   ;;  %s1977_s8 = inlined_call_operand.vmem [shape: bf16[2,16,64], index: 8, kind: output, shape index: {}]  }
   0x1   :  { %s1731_s29 = smov 0  }
   0x2 LB: > { %s37_s30 = sadd.s32 1, %s1655_s28  ;;  %p1372_p0 = scmp.ge.s32.totalorder %s1659_s29, 1  ;;  %s1659_s29 = sphi %s1731_s29, %s18_s29   ;;  %s1655_s28 = sphi %s1729_s28, %s1981_s28   ;;  %s1651_s27 = sphi %s1727_s27, %s1980_s27  }
   0x3   : > { %p39_p1 = scmp.ge.s32.totalorder %s37_s30, 2  ;;  %p400_p2 = scmp.lt.s32.totalorder %s1659_s29, 3 }
   0x5   : > { %s1983_s30 = smov (%p39_p1, %s37_s30), 0  ;;  %p401_p3 = pnand %p1372_p0, %p400_p2 }
   0x6   : > { %vm586_vm0 = vcmask (!%p401_p3), 523264   ;;  %v1748_v0 = vld [vmem:[%s1974_s5] sm:$0xff] (!%p401_p3)  ;;  %v1753_v1 = vld [vmem:[%s1974_s5 + $0x8] sm:$0xff] (!%p401_p3)  ;;  %p501_p4 = scmp.lt.s32.totalorder (!%p401_p3), %s1651_s27, 1  ;;  %v1673_v2 = vmov (!%p401_p3), 0.0  }
   0x7   : > { %404 = sbr.rel (%p401_p3) target bundleno = 283 (0x11b), region = 52  ;;  %587 = vst.msk [vmem:[#allocation2] sm:$0xff] (!%p401_p3), %vm586_vm0, %v1673_v2  ;;  %588 = vst.msk [vmem:[#allocation2 + $0x8] sm:$0xff] (!%p401_p3), %vm586_vm0, %v1673_v2  ;;  %v1385_v5 = vld [vmem:[%s1976_s7] ss:$0 sm:$0xff] (!%p401_p3) }
   0xe   : > { %s1985_s27 = smov (!%p501_p4, %s1651_s27), 1  ;;  %v643_v11 = vld [vmem:[#allocation2] sm:$0xff]   ;;  %v644_v12 = vld [vmem:[#allocation2 + $0x8] sm:$0xff]  }
   0xf   : > { %s1396_s13 = sshll.u32 %s1985_s27, 3  ;;  %s1399_s14 = sshll.u32 %s1985_s27, 4 }
  0x10   : > { %s1760_s17 = scalar_lea.vmem %s1969_s0, %s1396_s13  ;;  %s524_s20 = scalar_lea.vmem %s1970_s1, %s1396_s13 }
  0x11   : > { %s537_s23 = scalar_lea.vmem %s1971_s2, %s1396_s13  ;;  %s1771_s26 = scalar_lea.vmem %s1972_s3, %s1399_s14  ;;  %v1774_v3 = vld [vmem:[%s1760_s17] sm:$0xff]  }
  0x12   : > { %v1413_v4 = vld [vmem:[%s524_s20] sm:$0xff]   ;;  %s1782_s12 = scalar_lea.vmem %s1973_s4, %s1399_s14  ;;  %s1787_s18 = scalar_lea.vmem %s1977_s8, %s1396_s13  ;;  %v1406_v6 = vunpack.c.l.bf16 %v1774_v3  ;;  %v1407_v7 = vunpack.c.h.bf16 %v1774_v3 }
  0x13   : > { %v1409_v8 = vld [vmem:[%s537_s23] sm:$0xff]   ;;  %v1414_v9 = vunpack.c.l.bf16 %v1413_v4  ;;  %v1415_v10 = vunpack.c.h.bf16 %v1413_v4  ;;  %s1801_s13 = smov 0  }
  0x14   : > { %v1791_v13 = vunpack.c.l.bf16 %v1409_v8  ;;  %v1793_v14 = vunpack.c.h.bf16 %v1409_v8 }
  0x15   : > { %v610_v15 = vadd.f32 %v1414_v9, %v1385_v5  ;;  %v611_v16 = vadd.f32 %v1415_v10, %v1385_v5 }
  0x17   : > { %v614_v17 = vmin.f32 %v610_v15, 20.0  ;;  %v615_v18 = vmin.f32 %v611_v16, 20.0  ;;  %vm612_vm2 = vcmp.gt.f32.partialorder %v610_v15, 20.0  ;;  %vm613_vm4 = vcmp.gt.f32.partialorder %v611_v16, 20.0 }
  0x19   : > { %v616_v19 = vmul.f32 1.442695, %v614_v17  ;;  %v618_v20 = vmul.f32 1.442695, %v615_v18 }
  0x1b   : > { %1481 = vpow2.f32 %v616_v19 }
  0x1c   : > { %1483 = vpow2.f32 %v618_v20 }
  0x25   : > { %v1482_v21 = vpop.eup %1481 }
  0x26   : > { %v1484_v22 = vpop.eup %1483  ;;  %v620_v23 = vadd.f32 1.0, %v1482_v21  ;;  %v623_v25 = vmul.f32 -0.5, %v1482_v21  ;;  %v626_v28 = vand.u32 2147483647, %v1482_v21 }
  0x27   : > { %v629_v24 = vadd.f32 1.0, %v1484_v22  ;;  %v632_v26 = vmul.f32 -0.5, %v1484_v22  ;;  %v635_v30 = vand.u32 2147483647, %v1484_v22 }
  0x28   : > { %1485 = vlog2.f32 %v620_v23  ;;  %v624_v27 = vadd.f32 1.0, %v623_v25  ;;  %vm627_vm1 = vcmp.lt.f32.partialorder %v626_v28, 0.0004427343 }
  0x29   : > { %1487 = vlog2.f32 %v629_v24  ;;  %v633_v29 = vadd.f32 1.0, %v632_v26  ;;  %vm636_vm3 = vcmp.lt.f32.partialorder %v635_v30, 0.0004427343 }
  0x2a   : > { %v625_v31 = vmul.f32 %v1482_v21, %v624_v27 }
  0x2b   : > { %v634_v33 = vmul.f32 %v1484_v22, %v633_v29 }
  0x32   : > { %v1486_v32 = vpop.eup %1485 }
  0x33   : > { %v1488_v34 = vpop.eup %1487  ;;  %v622_v35 = vmul.f32 0.6931472, %v1486_v32 }
  0x34   : > { %v631_v36 = vmul.f32 0.6931472, %v1488_v34 }
  0x35   : > { %v628_v37 = vsel %vm627_vm1, %v625_v31, %v622_v35 }
  0x36   : > { %v638_v38 = vsel %vm612_vm2, %v610_v15, %v628_v37  ;;  %v637_v39 = vsel %vm636_vm3, %v634_v33, %v631_v36 }
  0x37   : > { %641 = vst.msk [vmem:[#allocation3] sm:$0xff] %vm586_vm0, %v638_v38  ;;  %v639_v40 = vsel %vm613_vm4, %v611_v16, %v637_v39 }
  0x38   : > { %642 = vst.msk [vmem:[#allocation3 + $0x8] sm:$0xff] %vm586_vm0, %v639_v40 }
  0x39 LB: >> { %v1674_v41 = vmov 1   ;;  %v1675_v42 = vmov 0   ;;  %s1387_s14 = sshll.u32 %s1671_s13, 4  ;;  %v1676_v51 = vmov 2   ;;  %v1677_v52 = vmov 3   ;;  %s1816_s23 = sshll.u32 %s1671_s13, 3  ;;  %s1671_s13 = sphi %s1801_s13, %s650_s13   ;;  %v1667_v11 = vphi %v643_v11, %v1979_v11   ;;  %v1663_v12 = vphi %v644_v12, %v1978_v12  }
  0x3a   : >> { %1500 = vset.pattern.permute.xlu1 %v1674_v41  ;;  %1489 = vset.pattern.permute.xlu0 %v1675_v42  ;;  %s664_s19 = sshra.s32 %s1387_s14, 3  ;;  %v1678_v53 = vmov 4   ;;  %v1679_v54 = vmov 6   ;;  %v1680_v55 = vmov 5   ;;  %v1681_v56 = vmov 7   ;;  %s655_s24 = scalar_lea.vmem [#allocation3], %s1816_s23 }
  0x3b   : >> { %s1389_s20 = sshll.u32 %s664_s19, 2  ;;  %v678_v57 = vlaneseq  ;;  %s657_s25 = sshra.s32 %s1816_s23, 3  ;;  %vm1058_vm5 = vcmask 1040384   ;;  %vm1060_vm6 = vcmask 1041408   ;;  %vm1062_vm7 = vcmask 1042432  }
  0x3c   : >> { %s667_s21 = scalar_lea.vmem %s1771_s26, %s1389_s20  ;;  %s673_s22 = scalar_lea.vmem %s1782_s12, %s1389_s20  ;;  %vm1064_vm8 = vcmask 1043456   ;;  %vm1066_vm9 = vcmask 1044480   ;;  %vm1068_vm10 = vcmask 1045504   ;;  %vm1070_vm11 = vcmask 1046528  }
  0x3d   : >> { %v1417_v43 = vld [vmem:[%s667_s21] sm:$0xff]   ;;  %v1818_v58 = vshrl.u32 %v678_v57, 7  ;;  %s1388_s27 = sshll.u32 %s657_s25, 2  ;;  %s1072_s10 = scalar_lea.vmem [#allocation4], %s1816_s23 }
  0x3e   : >> { %v1421_v44 = vld [vmem:[%s673_s22] sm:$0xff]   ;;  %v1418_v45 = vunpack.c.l.bf16 %v1417_v43  ;;  %v1419_v46 = vunpack.c.h.bf16 %v1417_v43  ;;  %s660_s9 = scalar_lea.vmem %s1760_s17, %s1388_s27  ;;  %s650_s13 = sadd.s32 1, %s1671_s13  }
  0x3f   : >> { %v1422_v47 = vunpack.c.l.bf16 %v1421_v44  ;;  %v1423_v48 = vunpack.c.h.bf16 %v1421_v44  ;;  %v680_v59 = vsub.s32 0, %v1818_v58  ;;  %v1822_v60 = vld [vmem:[%s655_s24] sm:$0xff]  ;;  %v731_v62 = vsub.s32 1, %v1818_v58  ;;  %p647_p5 = scmp.ge.s32.totalorder %s650_s13, 2  }
  0x40   : >> { %v1501_v49 = vpack.i.bf16 %v1419_v46, %v1418_v45  ;;  %v778_v5 = vsub.s32 2, %v1818_v58  ;;  %v825_v10 = vsub.s32 3, %v1818_v58  ;;  %v661_v18 = vld [vmem:[%s660_s9] sm:$0xf]  ;;  %v872_v19 = vsub.s32 4, %v1818_v58 }
  0x41   : >> { %v1495_v50 = vpack.i.bf16 %v1423_v48, %v1422_v47  ;;  %v681_v61 = vrot.slane %v1822_v60, %v680_v59  ;;  %v732_v4 = vrot.slane %v1822_v60, %v731_v62  ;;  %v662_v25 = vunpack.c.l.bf16 %v661_v18 }
  0x42   : >> { %1502 = vperm.xlu1 %1500, %v1501_v49   ;;  %1491 = vperm.xlu0 %1489, %v1501_v49   ;;  %v779_v16 = vrot.slane %v1822_v60, %v778_v5  ;;  %v826_v20 = vrot.slane %v1822_v60, %v825_v10  ;;  %v873_v26 = vrot.slane %v1822_v60, %v872_v19  ;;  %v919_v28 = vsub.s32 5, %v1818_v58 }
  0x43   : >> { %v682_v63 = vmul.f32 %v681_v61, %v1748_v0  ;;  %v683_v2 = vmul.f32 %v681_v61, %v1753_v1  ;;  %v733_v15 = vmul.f32 %v732_v4, %v1748_v0  ;;  %v734_v17 = vmul.f32 %v732_v4, %v1753_v1 }
  0x44   : >> { %v780_v22 = vmul.f32 %v779_v16, %v1748_v0  ;;  %v781_v24 = vmul.f32 %v779_v16, %v1753_v1  ;;  %v827_v27 = vmul.f32 %v826_v20, %v1748_v0  ;;  %v828_v31 = vmul.f32 %v826_v20, %v1753_v1 }
  0x45   : >> { %v684_v8 = vmul.f32 1.442695, %v682_v63  ;;  %v686_v9 = vmul.f32 1.442695, %v683_v2  ;;  %v735_v21 = vmul.f32 1.442695, %v733_v15  ;;  %v1849_v32 = vmul.f32 %v662_v25, %v1822_v60 }
  0x46   : >> { %1506 = vset.pattern.permute.xlu1 %v1676_v51  ;;  %1496 = vperm.xlu0 %1489, %v1495_v50   ;;  %v737_v23 = vmul.f32 1.442695, %v734_v17  ;;  %v782_v29 = vmul.f32 1.442695, %v780_v22  ;;  %v784_v30 = vmul.f32 1.442695, %v781_v24  ;;  %v874_v33 = vmul.f32 %v873_v26, %v1748_v0 }
  0x47   : >> { %1508 = vperm.xlu1 %1506, %v1501_v49   ;;  %1585 = vpow2.f32 %v684_v8  ;;  %v829_v34 = vmul.f32 1.442695, %v827_v27  ;;  %v920_v35 = vrot.slane %v1822_v60, %v919_v28  ;;  %v875_v38 = vmul.f32 %v873_v26, %v1753_v1 }
  0x48   : >> { %1587 = vpow2.f32 %v686_v9  ;;  %v831_v39 = vmul.f32 1.442695, %v828_v31  ;;  %v750_v40 = vrot.slane %v1849_v32, %v731_v62  ;;  %v966_v42 = vsub.s32 6, %v1818_v58 }
  0x49   : >> { %1589 = vpow2.f32 %v735_v21  ;;  %v876_v45 = vmul.f32 1.442695, %v874_v33  ;;  %v921_v46 = vmul.f32 %v920_v35, %v1748_v0  ;;  %v922_v47 = vmul.f32 %v920_v35, %v1753_v1 }
  0x4a   : >> { %1512 = vset.pattern.permute.xlu0 %v1677_v52  ;;  %1591 = vpow2.f32 %v737_v23  ;;  %v797_v61 = vrot.slane %v1849_v32, %v778_v5  ;;  %v967_v63 = vrot.slane %v1822_v60, %v966_v42  ;;  %v844_v26 = vrot.slane %v1849_v32, %v825_v10 }
  0x4b   : >> { %1518 = vset.pattern.permute.xlu1 %v1678_v53  ;;  %1514 = vperm.xlu0 %1512, %v1501_v49   ;;  %1593 = vpow2.f32 %v782_v29  ;;  %v925_v15 = vmul.f32 1.442695, %v922_v47  ;;  %v1013_v33 = vsub.s32 7, %v1818_v58  ;;  %v891_v47 = vrot.slane %v1849_v32, %v872_v19 }
  0x4c   : >> { %1520 = vperm.xlu1 %1518, %v1501_v49   ;;  %1595 = vpow2.f32 %v784_v30  ;;  %v968_v22 = vmul.f32 %v967_v63, %v1748_v0  ;;  %vm1097_vm12 = vcmp.ge.f32.partialorder (%p647_p5), %v1791_v13, 0.0  ;;  %vm1098_vm13 = vcmp.ge.f32.partialorder (%p647_p5), %v1793_v14, 0.0 }
  0x4d   : >> { %1597 = vpow2.f32 %v829_v34  ;;  %vm1121_vm14 = vcmask (%p647_p5), 519168  }
  0x4e   : >> { %1599 = vpow2.f32 %v831_v39  ;;  %v969_v39 = vmul.f32 %v967_v63, %v1753_v1 }
  0x4f   : >> { %1530 = vset.pattern.permute.xlu0 %v1679_v54  ;;  %1601 = vpow2.f32 %v876_v45 }
  0x50   : >> { %1524 = vset.pattern.permute.xlu1 %v1680_v55  ;;  %1532 = vperm.xlu0 %1530, %v1501_v49   ;;  %v972_v19 = vmul.f32 1.442695, %v969_v39 }
  0x51   : >> { %1526 = vperm.xlu1 %1524, %v1501_v49   ;;  %v1586_v36 = vpop.eup %1585 }
  0x52   : >> { %v1588_v37 = vpop.eup %1587 }
  0x54   : >> { %1548 = vset.pattern.permute.xlu0 %v1677_v52 }
  0x55   : >> { %1536 = vset.pattern.permute.xlu1 %v1674_v41  ;;  %1550 = vperm.xlu0 %1548, %v1495_v50   ;;  %v701_v41 = vrot.slane %v1849_v32, %v680_v59 }
  0x56   : >> { %1538 = vperm.xlu1 %1536, %v1495_v50  }
  0x59   : >> { %1566 = vset.pattern.permute.xlu0 %v1680_v55  ;;  %v1590_v55 = vpop.eup %1589 }
  0x5a   : >> { %1542 = vset.pattern.permute.xlu1 %v1676_v51  ;;  %1568 = vperm.xlu0 %1566, %v1495_v50   ;;  %v705_v51 = vmul.f32 %v1663_v12, %v1588_v37  ;;  %v1592_v59 = vpop.eup %1591  ;;  %v923_v12 = vmul.f32 1.442695, %v921_v46 }
  0x5b   : >> { %1544 = vperm.xlu1 %1542, %v1495_v50   ;;  %v1594_v16 = vpop.eup %1593 }
  0x5c   : >> { %v1596_v5 = vpop.eup %1595 }
  0x5d   : >> { %v1598_v27 = vpop.eup %1597 }
  0x5e   : >> { %1584 = vset.pattern.permute.xlu0 %v1681_v56 }
  0x5f   : >> { %1554 = vset.pattern.permute.xlu1 %v1681_v56 }
  0x60   : >> { %1556 = vperm.xlu1 %1554, %v1501_v49  }
  0x64   : >> { %1560 = vset.pattern.permute.xlu1 %v1678_v53 }
  0x65   : >> { %1562 = vperm.xlu1 %1560, %v1495_v50  }
  0x69   : >> { %1572 = vset.pattern.permute.xlu1 %v1679_v54  ;;  %v878_v54 = vmul.f32 1.442695, %v875_v38  ;;  %v1600_v38 = vpop.eup %1599 }
  0x6a   : >> { %1574 = vperm.xlu1 %1572, %v1495_v50  }
  0x6b   : >> { %1603 = vpow2.f32 %v878_v54 }
  0x6c   : >> { %1605 = vpow2.f32 %v923_v12 }
  0x6d   : >> { %1607 = vpow2.f32 %v925_v15 }
  0x6e   : >> { %1578 = vset.pattern.permute.xlu1 %v1681_v56 }
  0x6f   : >> { %1580 = vperm.xlu1 %1578, %v1495_v50   ;;  %v704_v50 = vmul.f32 %v1667_v11, %v1586_v36 }
  0xc1   : >> { %v1503_v43 = vpop.permute.xlu1 %1502  ;;  %v1492_v44 = vpop.permute.xlu0 %1491 }
  0xc2   : >> { %v1494_v48 = vunpack.i.h.bf16 %v1492_v44  ;;  %v1493_v49 = vunpack.i.l.bf16 %v1492_v44  ;;  %v1505_v52 = vunpack.i.h.bf16 %v1503_v43  ;;  %v1504_v53 = vunpack.i.l.bf16 %v1503_v43 }
  0xc4   : >> { %v702_v56 = vmul.f32 %v1493_v49, %v701_v41  ;;  %v703_v57 = vmul.f32 %v1494_v48, %v701_v41  ;;  %v751_v8 = vmul.f32 %v1504_v53, %v750_v40  ;;  %v752_v9 = vmul.f32 %v1505_v52, %v750_v40 }
  0xc5   : >> { %v1497_v62 = vpop.permute.xlu0 %1496  ;;  %v970_v40 = vmul.f32 1.442695, %v968_v22  ;;  %v1014_v49 = vrot.slane %v1822_v60, %v1013_v33 }
  0xc6   : >> { %v706_v2 = vadd.f32 %v704_v50, %v702_v56  ;;  %v707_v4 = vadd.f32 %v705_v51, %v703_v57  ;;  %v1509_v11 = vpop.permute.xlu1 %1508  ;;  %v1499_v45 = vunpack.i.h.bf16 %v1497_v62  ;;  %v1498_v46 = vunpack.i.l.bf16 %v1497_v62  ;;  %v1602_v50 = vpop.eup %1601 }
  0xc7   : >> { %v1511_v20 = vunpack.i.h.bf16 %v1509_v11  ;;  %v1510_v21 = vunpack.i.l.bf16 %v1509_v11  ;;  %v1604_v56 = vpop.eup %1603  ;;  %v938_v57 = vrot.slane %v1849_v32, %v919_v28  ;;  %1609 = vpow2.f32 %v970_v40 }
  0xc8   : >> { %v753_v17 = vmul.f32 %v1590_v55, %v706_v2  ;;  %v754_v18 = vmul.f32 %v1592_v59, %v707_v4  ;;  %v718_v62 = vmul.f32 %v1498_v46, %v706_v2  ;;  %v719_v63 = vmul.f32 %v1499_v45, %v707_v4  ;;  %v1606_v12 = vpop.eup %1605 }
  0xc9   : >> { %v798_v34 = vmul.f32 %v1510_v21, %v797_v61  ;;  %v799_v35 = vmul.f32 %v1511_v20, %v797_v61  ;;  %v1015_v60 = vmul.f32 %v1014_v49, %v1748_v0  ;;  %v1016_v11 = vmul.f32 %v1014_v49, %v1753_v1  ;;  %v1391_v0 = vld [vmem:[%s1975_s6] ss:$0 sm:$0xff] (%p647_p5) }
  0xca   : >> { %v1868_v23 = vadd.f32 %v753_v17, %v751_v8  ;;  %v1870_v24 = vadd.f32 %v754_v18, %v752_v9  ;;  %v1515_v25 = vpop.permute.xlu0 %1514  ;;  %v1608_v18 = vpop.eup %1607  ;;  %1611 = vpow2.f32 %v972_v19  ;;  %v1085_v1 = vmul.f32 (%p647_p5), %v1406_v6, %v1391_v0 }
  0xcb   : >> { %v1521_v29 = vpop.permute.xlu1 %1520  ;;  %v1517_v30 = vunpack.i.h.bf16 %v1515_v25  ;;  %v1516_v31 = vunpack.i.l.bf16 %v1515_v25 }
  0xcc   : >> { %v800_v36 = vmul.f32 %v1594_v16, %v1868_v23  ;;  %v801_v37 = vmul.f32 %v1596_v5, %v1870_v24  ;;  %v1523_v51 = vunpack.i.h.bf16 %v1521_v29  ;;  %v1522_v52 = vunpack.i.l.bf16 %v1521_v29 }
  0xcd   : >> { %v845_v43 = vmul.f32 %v1516_v31, %v844_v26  ;;  %v846_v44 = vmul.f32 %v1517_v30, %v844_v26  ;;  %v721_v29 = vsel %vm586_vm0, %v719_v63, 0.0  ;;  %v1017_v30 = vmul.f32 1.442695, %v1015_v60 }
  0xce   : >> { %v1879_v41 = vadd.f32 %v800_v36, %v798_v34  ;;  %v1881_v10 = vadd.f32 %v801_v37, %v799_v35  ;;  %v892_v8 = vmul.f32 %v1522_v52, %v891_v47  ;;  %v893_v9 = vmul.f32 %v1523_v51, %v891_v47 }
  0xcf   : >> { %v1886_v48 = vpop.permute.xlu0 %1532  ;;  %1613 = vpow2.f32 %v1017_v30 }
  0xd0   : >> { %v1527_v53 = vpop.permute.xlu1 %1526  ;;  %v847_v54 = vmul.f32 %v1598_v27, %v1879_v41  ;;  %v848_v55 = vmul.f32 %v1600_v38, %v1881_v10  ;;  %v720_v27 = vsel %vm586_vm0, %v718_v62, 0.0  ;;  %v1535_v60 = vunpack.i.h.bf16 %v1886_v48 }
  0xd1   : >> { %v1529_v20 = vunpack.i.h.bf16 %v1527_v53  ;;  %v1528_v21 = vunpack.i.l.bf16 %v1527_v53  ;;  %v1610_v52 = vpop.eup %1609 }
  0xd2   : >> { %v849_v59 = vadd.f32 %v847_v54, %v845_v43  ;;  %v850_v61 = vadd.f32 %v848_v55, %v846_v44  ;;  %v722_v44 = vadd.f32 %v721_v29, %v720_v27 }
  0xd3   : >> { %v939_v37 = vmul.f32 %v1528_v21, %v938_v57  ;;  %v940_v38 = vmul.f32 %v1529_v20, %v938_v57 }
  0xd4   : >> { %v1551_v15 = vpop.permute.xlu0 %1550  ;;  %v894_v16 = vmul.f32 %v1602_v50, %v849_v59  ;;  %v895_v17 = vmul.f32 %v1604_v56, %v850_v61 }
  0xd5   : >> { %v1553_v28 = vunpack.i.h.bf16 %v1551_v15  ;;  %v1552_v5 = vunpack.i.l.bf16 %v1551_v15  ;;  %v1539_v22 = vpop.permute.xlu1 %1538 }
  0xd6   : >> { %v1541_v25 = vunpack.i.h.bf16 %v1539_v22  ;;  %v1540_v26 = vunpack.i.l.bf16 %v1539_v22  ;;  %v1898_v2 = vadd.f32 %v894_v16, %v892_v8  ;;  %v1900_v4 = vadd.f32 %v895_v17, %v893_v9 }
  0xd7   : >> { %v859_v39 = vmul.f32 %v1552_v5, %v849_v59  ;;  %v860_v40 = vmul.f32 %v1553_v28, %v850_v61  ;;  %v723_v61 = vrot.slane %v722_v44, 4 }
  0xd8   : >> { %v765_v31 = vmul.f32 %v1540_v26, %v1868_v23  ;;  %v766_v34 = vmul.f32 %v1541_v25, %v1870_v24  ;;  %v941_v35 = vmul.f32 %v1606_v12, %v1898_v2  ;;  %v942_v36 = vmul.f32 %v1608_v18, %v1900_v4 }
  0xd9   : >> { %v1569_v43 = vpop.permute.xlu0 %1568  ;;  %v1019_v24 = vmul.f32 1.442695, %v1016_v11  ;;  %v861_v56 = vsel %vm586_vm0, %v859_v39, 0.0  ;;  %v862_v57 = vsel %vm586_vm0, %v860_v40, 0.0  ;;  %v1534_v11 = vunpack.i.l.bf16 %v1886_v48 }
  0xda   : >> { %v767_v45 = vsel %vm586_vm0, %v765_v31, 0.0  ;;  %v768_v46 = vsel %vm586_vm0, %v766_v34, 0.0  ;;  %v1571_v47 = vunpack.i.h.bf16 %v1569_v43  ;;  %v1545_v49 = vpop.permute.xlu1 %1544  ;;  %v1570_v50 = vunpack.i.l.bf16 %v1569_v43 }
  0xdb   : >> { %v943_v23 = vadd.f32 %v941_v35, %v939_v37  ;;  %v944_v51 = vadd.f32 %v942_v36, %v940_v38  ;;  %v769_v53 = vadd.f32 %v768_v46, %v767_v45  ;;  %v1547_v54 = vunpack.i.h.bf16 %v1545_v49 }
  0xdc   : >> { %v1546_v55 = vunpack.i.l.bf16 %v1545_v49  ;;  %v985_v12 = vrot.slane %v1849_v32, %v966_v42  ;;  %1615 = vpow2.f32 %v1019_v24  ;;  %v863_v9 = vadd.f32 %v862_v57, %v861_v56 }
  0xdd   : >> { %v953_v19 = vmul.f32 %v1570_v50, %v943_v23  ;;  %v954_v59 = vmul.f32 %v1571_v47, %v944_v51  ;;  %v813_v63 = vmul.f32 %v1547_v54, %v1881_v10  ;;  %v770_v15 = vrot.slane %v769_v53, 4 }
  0xde   : >> { %v812_v62 = vmul.f32 %v1546_v55, %v1879_v41  ;;  %v1612_v41 = vpop.eup %1611  ;;  %v724_v21 = vadd.f32 %v723_v61, %v722_v44  ;;  %v986_v48 = vmul.f32 %v1534_v11, %v985_v12  ;;  %v988_v28 = vmul.f32 %v1610_v52, %v943_v23 }
  0xdf   : >> { %v1557_v8 = vpop.permute.xlu1 %1556  ;;  %v815_v17 = vsel %vm586_vm0, %v813_v63, 0.0  ;;  %v955_v10 = vsel %vm586_vm0, %v953_v19, 0.0  ;;  %v956_v18 = vsel %vm586_vm0, %v954_v59, 0.0  ;;  %v987_v22 = vmul.f32 %v1535_v60, %v985_v12  ;;  %v1614_v44 = vpop.eup %1613 }
  0xe0   : >> { %v814_v16 = vsel %vm586_vm0, %v812_v62, 0.0  ;;  %v864_v42 = vrot.slane %v863_v9, 4  ;;  %v771_v25 = vadd.f32 %v770_v15, %v769_v53  ;;  %v957_v26 = vadd.f32 %v956_v18, %v955_v10 }
  0xe1   : >> { %v816_v20 = vadd.f32 %v815_v17, %v814_v16  ;;  %v989_v29 = vmul.f32 %v1612_v41, %v944_v51  ;;  %v725_v35 = vrot.slane %v724_v21, 2  ;;  %v1558_v36 = vunpack.i.l.bf16 %v1557_v8 }
  0xe2   : >> { %v1032_v37 = vrot.slane %v1849_v32, %v1013_v33  ;;  %v1559_v38 = vunpack.i.h.bf16 %v1557_v8  ;;  %v990_v43 = vadd.f32 %v988_v28, %v986_v48  ;;  %v865_v45 = vadd.f32 %v864_v42, %v863_v9 }
  0xe3   : >> { %v817_v5 = vrot.slane %v816_v20, 4  ;;  %v772_v46 = vrot.slane %v771_v25, 2  ;;  %v958_v47 = vrot.slane %v957_v26, 4  ;;  %v991_v58 = vadd.f32 %v989_v29, %v987_v22 }
  0xe4   : >> { %v1563_v27 = vpop.permute.xlu1 %1562  ;;  %v1033_v52 = vmul.f32 %v1558_v36, %v1032_v37  ;;  %v1034_v54 = vmul.f32 %v1559_v38, %v1032_v37  ;;  %v866_v59 = vrot.slane %v865_v45, 2 }
  0xe5   : >> { %v818_v30 = vadd.f32 %v817_v5, %v816_v20  ;;  %v1565_v31 = vunpack.i.h.bf16 %v1563_v27  ;;  %v1564_v34 = vunpack.i.l.bf16 %v1563_v27  ;;  %v773_v55 = vadd.f32 %v772_v46, %v771_v25 }
  0xe6   : >> { %v1616_v49 = vpop.eup %1615  ;;  %v959_v61 = vadd.f32 %v958_v47, %v957_v26  ;;  %v867_v22 = vadd.f32 %v866_v59, %v865_v45 }
  0xe7   : >> { %v906_v39 = vmul.f32 %v1564_v34, %v1898_v2  ;;  %v907_v40 = vmul.f32 %v1565_v31, %v1900_v4  ;;  %v819_v50 = vrot.slane %v818_v30, 2  ;;  %v726_v2 = vadd.f32 %v725_v35, %v724_v21 }
  0xe8   : >> { %v1035_v4 = vmul.f32 %v1614_v44, %v990_v43  ;;  %v1036_v63 = vmul.f32 %v1616_v49, %v991_v58  ;;  %v774_v10 = vrot.slane %v773_v55, 1  ;;  %v960_v42 = vrot.slane %v959_v61, 2 }
  0xe9   : >> { %v908_v23 = vsel %vm586_vm0, %v906_v39, 0.0  ;;  %v909_v51 = vsel %vm586_vm0, %v907_v40, 0.0  ;;  %v1575_v24 = vpop.permute.xlu1 %1574  ;;  %v820_v62 = vadd.f32 %v819_v50, %v818_v30  ;;  %v727_v5 = vrot.slane %v726_v2, 1 }
  0xea   : >> { %v910_v32 = vadd.f32 %v909_v51, %v908_v23  ;;  %v1577_v33 = vunpack.i.h.bf16 %v1575_v24  ;;  %v1576_v53 = vunpack.i.l.bf16 %v1575_v24  ;;  %v1037_v9 = vadd.f32 %v1035_v4, %v1033_v52  }
  0xeb   : >> { %v1038_v41 = vadd.f32 %v1036_v63, %v1034_v54   ;;  %v821_v20 = vrot.slane %v820_v62, 1  ;;  %v775_v30 = vadd.f32 %v774_v10, %v773_v55  ;;  %v728_v37 = vadd.f32 %v727_v5, %v726_v2 }
  0xec   : >> { %v911_v56 = vrot.slane %v910_v32, 4  ;;  %v1000_v57 = vmul.f32 %v1576_v53, %v990_v43  ;;  %v1001_v19 = vmul.f32 %v1577_v33, %v991_v58  ;;  %v868_v38 = vrot.slane %v867_v22, 1  ;;  %1074 = vst.msk [vmem:[#allocation2] sm:$0xff] (%p647_p5), %vm586_vm0, %v1037_v9 }
  0xed   : >> { %v822_v34 = vadd.f32 %v821_v20, %v820_v62  ;;  %v961_v39 = vadd.f32 %v960_v42, %v959_v61  ;;  %v1059_v44 = vsel %vm1058_vm5, %v728_v37, %v775_v30  ;;  %1075 = vst.msk [vmem:[#allocation2 + $0x8] sm:$0xff] (%p647_p5), %vm586_vm0, %v1038_v41 }
  0xee   : >> { %v912_v60 = vadd.f32 %v911_v56, %v910_v32  ;;  %v1002_v11 = vsel %vm586_vm0, %v1000_v57, 0.0  ;;  %v1003_v12 = vsel %vm586_vm0, %v1001_v19, 0.0  ;;  %v1581_v8 = vpop.permute.xlu1 %1580  ;;  %v869_v50 = vadd.f32 %v868_v38, %v867_v22 }
  0xef   : >> { %v1004_v15 = vadd.f32 %v1003_v12, %v1002_v11  ;;  %v1583_v16 = vunpack.i.h.bf16 %v1581_v8  ;;  %v1582_v17 = vunpack.i.l.bf16 %v1581_v8  ;;  %v1061_v46 = vsel %vm1060_vm6, %v1059_v44, %v822_v34 }
  0xf0   : >> { %v913_v18 = vrot.slane %v912_v60, 2  ;;  %v962_v23 = vrot.slane %v961_v39, 1  ;;  %v1063_v24 = vsel %vm1062_vm7, %v1061_v46, %v869_v50  ;;  %v1978_v12 = vmov %v1038_v41 }
  0xf1   : >> { %v1005_v21 = vrot.slane %v1004_v15, 4  ;;  %v1047_v48 = vmul.f32 %v1582_v17, %v1037_v9  ;;  %v1048_v28 = vmul.f32 %v1583_v16, %v1038_v41  ;;  %v1979_v11 = vmov %v1037_v9 }
  0xf2   : >> { %v914_v25 = vadd.f32 %v913_v18, %v912_v60  ;;  %v963_v33 = vadd.f32 %v962_v23, %v961_v39  ;;  %v1089_v56 = vand.u32 (%p647_p5), 2147483647, %v1791_v13  ;;  %v1090_v57 = vand.u32 (%p647_p5), 2147483647, %v1793_v14 }
  0xf3   : >> { %v1006_v26 = vadd.f32 %v1005_v21, %v1004_v15  ;;  %v1049_v27 = vsel %vm586_vm0, %v1047_v48, 0.0  ;;  %v1050_v29 = vsel %vm586_vm0, %v1048_v28, 0.0  ;;  %v1086_v9 = vmul.f32 (%p647_p5), %v1407_v7, %v1391_v0 }
  0xf4   : >> { %v1051_v31 = vadd.f32 %v1050_v29, %v1049_v27  ;;  %v915_v35 = vrot.slane %v914_v25, 1  ;;  %v1091_v19 = vsub.f32 (%p647_p5), 0.0, %v1089_v56  ;;  %v1092_v59 = vsub.f32 (%p647_p5), 0.0, %v1090_v57 }
  0xf5   : >> { %v1007_v36 = vrot.slane %v1006_v26, 2 }
  0xf6   : >> { %v1052_v40 = vrot.slane %v1051_v31, 4  ;;  %v916_v47 = vadd.f32 %v915_v35, %v914_v25  ;;  %v1093_v61 = vmul.f32 (%p647_p5), 1.442695, %v1091_v19  ;;  %v1095_v62 = vmul.f32 (%p647_p5), 1.442695, %v1092_v59 }
  0xf7   : >> { %v1008_v43 = vadd.f32 %v1007_v36, %v1006_v26 }
  0xf8   : >> { %v1053_v45 = vadd.f32 %v1052_v40, %v1051_v31  ;;  %v1065_v52 = vsel %vm1064_vm8, %v1063_v24, %v916_v47  ;;  %1617 = vpow2.f32 (%p647_p5), %v1093_v61 }
  0xf9   : >> { %v1009_v49 = vrot.slane %v1008_v43, 1  ;;  %v1067_v2 = vsel %vm1066_vm9, %v1065_v52, %v963_v33  ;;  %1619 = vpow2.f32 (%p647_p5), %v1095_v62 }
  0xfa   : >> { %v1054_v51 = vrot.slane %v1053_v45, 2 }
  0xfb   : >> { %v1010_v32 = vadd.f32 %v1009_v49, %v1008_v43 }
  0xfc   : >> { %v1055_v58 = vadd.f32 %v1054_v51, %v1053_v45 }
  0xfd   : >> { %v1069_v4 = vsel %vm1068_vm10, %v1067_v2, %v1010_v32  ;;  %649 = sbr.rel (!%p647_p5) target bundleno = 57 (0x39), region = 119 }
  0xfe   : >> { %v1056_v53 = vrot.slane %v1055_v58, 1 }
 0x100   : >> { %v1057_v54 = vadd.f32 %v1056_v53, %v1055_v58 }
 0x102   : >> { %v1071_v55 = vsel %vm1070_vm11, %v1069_v4, %v1057_v54  ;;  %v1618_v63 = vpop.eup (%p647_p5), %1617 }
 0x103   : >> { %1073 = vst.msk [vmem:[%s1072_s10] sm:$0xff] %vm586_vm0, %v1071_v55  ;;  %v1620_v60 = vpop.eup (%p647_p5), %1619  ;;  %v1099_v11 = vadd.f32 (%p647_p5), 1.0, %v1618_v63 }
 0x104   : > { %v1100_v8 = vadd.f32 1.0, %v1620_v60 }
 0x105   : > { %1621 = vrcp.f32 %v1099_v11 }
 0x106   : > { %1623 = vrcp.f32 %v1100_v8 }
 0x10a   : > { %v1076_v12 = vld [vmem:[#allocation4] sm:$0xff]  ;;  %v1077_v16 = vld [vmem:[#allocation4 + $0x8] sm:$0xff] }
 0x10b   : > { %v1087_v10 = vadd.f32 %v1085_v1, %v1076_v12  ;;  %v1088_v21 = vadd.f32 %v1086_v9, %v1077_v16 }
 0x10f   : > { %v1622_v15 = vpop.eup %1621 }
 0x110   : > { %v1624_v17 = vpop.eup %1623  ;;  %v1105_v41 = vmul.f32 %v1622_v15, %v1618_v63 }
 0x111   : > { %v1106_v18 = vmul.f32 %v1624_v17, %v1620_v60 }
 0x112   : > { %v1107_v20 = vsel %vm1097_vm12, %v1622_v15, %v1105_v41 }
 0x113   : > { %v1109_v6 = vmul.f32 %v1791_v13, %v1107_v20  ;;  %v1108_v48 = vsel %vm1098_vm13, %v1624_v17, %v1106_v18 }
 0x114   : > { %v1110_v3 = vmul.f32 %v1793_v14, %v1108_v48 }
 0x115   : > { %v1111_v7 = vmul.f32 %v1109_v6, %v1087_v10 }
 0x116   : > { %v1112_v28 = vmul.f32 %v1110_v3, %v1088_v21 }
 0x117   : > { %v1402_v5 = vpack.c.bf16 %v1111_v7, %v1111_v7 }
 0x118   : > { %v1403_v22 = vpack.c.bf16 %v1112_v28, %v1112_v28 }
 0x119   : > { %1122 = vst.msk [vmem:[%s1787_s18] sm:$0xf] %vm1121_vm14, %v1402_v5 }
 0x11a   : > { %1123 = vst.msk [vmem:[%s1787_s18 + $0x4] sm:$0xf] %vm1121_vm14, %v1403_v22 }
 0x11b PF: > { %s18_s29 = sadd.s32 1, %s1659_s29   ;;  %s1980_s27 = smov %s1655_s28 }
 0x11c   : > { %p15_p6 = scmp.ge.s32.totalorder %s18_s29, 4   ;;  %s1981_s28 = smov %s1983_s30 }
 0x11e   :  { %17 = sbr.rel (!%p15_p6) target bundleno = 2 (0x2), region = 130 }

// kernel: endomamba_forward.79
= control target key start
LH: loop header
LB: loop body
LE: loop exit
PB: predicated region body
PF: predicated region fallthrough
CT: control target
= control target key end

     0   :  { %v158_v1 = vmov 0.0   ;;  %vm159_vm0 = vmmov 0   ;;  %vm20_vm1 = vcmask 76800   ;;  %s208_s0 = inlined_call_operand.vmem [shape: bf16[4,32], index: 0, kind: input, shape index: {}]   ;;  %s209_s1 = inlined_call_operand.vmem [shape: bf16[32,10], index: 1, kind: input, shape index: {}]   ;;  %s210_s2 = inlined_call_operand.vmem [shape: f32[1,10], index: 2, kind: input, shape index: {}]   ;;  %s211_s3 = inlined_call_operand.hbm [shape: f32[4,10], index: 3, kind: output, shape index: {}]  }
   0x1   :  { %v132_v0 = vld [vmem:[%s209_s1] sm:$0xff]   ;;  %121 = vmatprep.subr.bf16.mxu0 %v158_v1  ;;  %v133_v2 = vld [vmem:[%s209_s1 + $0x8] sm:$0xff]   ;;  %125 = vmatprep.mubr.msk.bf16.mxu0 %vm159_vm0, %v158_v1 }
   0x2   :  { %122 = vmatpush3.bf16.msra.mxu0 %v132_v0 }
   0x3   :  { %8 = vsyncpa [#allocation4], 0  ;;  %123 = vmatprep.subr.bf16.mxu0 %v158_v1  ;;  %21 = vst.msk [vmem:[#allocation2] sm:$0xf] %vm20_vm1, %v158_v1  ;;  %v23_v3 = vld [vmem:[%s208_s0] sm:$0x3] }
   0x4   :  { %vm40_vm2 = vcmask 261120   ;;  %v117_v10 = vld [vmem:[%s210_s2] ss:$0 sm:$0xff]  ;;  %s160_s19 = smov [#allocation3]  }
   0x5   :  { %s106_s20 = sshll.u32 %s160_s19, 4  ;;  %s107_s20 = int_to_ptr.vmem [resolvable:$true] %s106_s20 }
   0x6   :  { %124 = vmatpush3.bf16.msra.mxu0 %v133_v2  ;;  %s134_s0 = scalar_lea.vmem %s107_s20, 64  ;;  %p139_p1 = scmp.lt.s32.totalorder %s107_s20, %s107_s20 }
   0x7   :  { %p135_p0 = scmp.ne.s32.totalorder %s107_s20, %s134_s0  ;;  %p140_p2 = scmp.lt.s32.totalorder %s134_s0, %s134_s0 }
   0x9   :  { %126 = vmatmul.mubr.msk.bf16.vlgmr.msra.gmra.mrb[0].mxu0 %vm40_vm2, %v23_v3  ;;  %p141_p3 = por %p140_p2, %p139_p1 }
   0xa   :  { %v22_v4 = vld [vmem:[#allocation2] sm:$0xf] }
   0xb   :  { %p142_p4 = pnand %p141_p3, %p135_p0 }
  0xdc   :  { %v78_v5 = vpop.f32.mrb[0].mxu0 }
  0xdd   :  { %v84_v6 = vadd.f32 %v78_v5, %v22_v4  ;;  %v127_v7 = vpop.f32.mrb[1].mxu0 }
  0xde   :  { %v81_v8 = vpop.f32.mrb[2].mxu0 }
  0xdf   :  { %86 = vst.msk [vmem:[#allocation2] sm:$0xf] %vm20_vm1, %v84_v6  ;;  %v128_v9 = vpop.f32.mrb[3].mxu0 }
  0xe6   :  { %v90_v11 = vld [vmem:[#allocation2] sm:$0xf] }
  0xe7   :  { %v98_v12 = vadd.f32 %v117_v10, %v90_v11 }
  0xe9   :  { %99 = vst.msk [vmem:[#allocation3] sm:$0xf] %vm20_vm1, %v98_v12 }
  0xea   :  { %145 = shalt.err (!%p142_p4)
}
  0xeb   :  { %s146_s23 = scalar_lea.hbm %s211_s3, 64 }
  0xec   :  { %p147_p5 = scmp.ne.s32.totalorder %s211_s3, %s146_s23  ;;  %p150_p6 = scmp.lt.u32.totalorder %s146_s23, %s211_s3 }
  0xee   :  { %p152_p7 = pnand %p150_p6, %p147_p5 }
  0xf0   :  { %155 = shalt.err (!%p152_p7)
}
  0xf1   :  { %109 = dma.vmem_to_hbm [thread:$0]  %s107_s20, 64, %s211_s3, [#allocation4]  }
  0xf2   :  { %156 = dma.done.wait [#allocation4], 64  }
  0xf3   :  { %157 = vsyncadd [#allocation4], 4294967232 }
  0xf4   :  { %113 = vsyncpa [#allocation4], 1 }

</bundles_post_ra>
